<compile_context>
chip_gen: v7x
topology: tpu7x:2x2x1
jax: 0.10.0
libtpu: 0.0.40
codegen_flags: <defaults>
</compile_context>

<pallas_src>
import functools

import jax
import jax.numpy as jnp
from jax import lax
from jax.experimental import pallas as pl
from jax.experimental.pallas import tpu as pltpu


# ---------------------------------------------------------------------------
# Per-generation budgets (v5e/v6e: 128 MiB VMEM, v7x: 64 MiB per TensorCore).
# ---------------------------------------------------------------------------
def _query_vmem_capacity_bytes():
    try:
        info = pltpu.get_tpu_info()
        cap = getattr(info, "vmem_capacity_bytes", None)
        if cap:
            return int(cap)
    except Exception:
        pass
    return 64 * 1024 * 1024  # conservative default (v7x per-TC VMEM)


_VMEM_PHYS_BYTES = _query_vmem_capacity_bytes()
# Scoped-VMEM cap: ~3/8 of physical (48 MiB on 128 MiB parts, 24 MiB on v7x).
_VMEM_LIMIT_BYTES = max(16 << 20, min((_VMEM_PHYS_BYTES * 3) // 8, 100 << 20))
# Target bytes per row-tiled block (~2 MiB on 128 MiB parts, ~1 MiB on v7x).
_BLOCK_TARGET_BYTES = max(512 << 10, min(_VMEM_PHYS_BYTES // 64, 2 << 20))


def _compiler_params(grid_rank=1):
    return pltpu.CompilerParams(
        dimension_semantics=("parallel",) * grid_rank,
        vmem_limit_bytes=_VMEM_LIMIT_BYTES,
    )


def _pick_block_rows(rows, row_bytes, target_bytes=_BLOCK_TARGET_BYTES):
    """Row-block size: a multiple of 8 (sublane) dividing `rows` (or `rows`
    itself), sized by bytes, preferring >=2 grid steps for megacore."""
    cands = [rows] + [t for t in (8192, 4096, 2048, 1024, 512, 256, 128,
                                  64, 32, 16, 8)
                      if t < rows and rows % t == 0]
    fit2 = [t for t in cands if t * row_bytes <= target_bytes and rows // t >= 2]
    if fit2:
        return max(fit2)
    fit = [t for t in cands if t * row_bytes <= target_bytes]
    if fit:
        return max(fit)
    return min(cands)


# ---------------------------------------------------------------------------
# ConvTranspose2d(k=2, s=2) as a row-tiled matmul with fused bias (bf16 out)
# ---------------------------------------------------------------------------
def _convt_kernel(x_ref, w_ref, b_ref, o_ref):
    # x: (TM, Cin) f32; w: (Cin, 4*Co) bf16 (pre-cast); b: (1, 4*Co) f32.
    y = jnp.dot(x_ref[...].astype(jnp.bfloat16), w_ref[...],
                preferred_element_type=jnp.float32) + b_ref[...]
    o_ref[...] = y.astype(o_ref.dtype)


def conv_transpose_2x2(x, w, b):
    """ConvTranspose2d(k=2, s=2). x: (N,H,W,Cin) NHWC; w: (Cin,Co,2,2) torch
    layout; b: (Co,). Returns the upsampled map (N, 2H, 2W, Co) in bf16."""
    N, H, W, Cin = x.shape
    Co = w.shape[1]
    M = N * H * W
    wt = jnp.transpose(w, (0, 2, 3, 1)).reshape(Cin, 4 * Co).astype(jnp.bfloat16)
    b4 = jnp.tile(b, 4).reshape(1, 4 * Co).astype(jnp.float32)

    row_bytes = Cin * 4 + 4 * Co * 2          # f32 input row + bf16 output row
    tm = _pick_block_rows(M, row_bytes)

    y4 = pl.pallas_call(
        _convt_kernel,
        out_shape=jax.ShapeDtypeStruct((M, 4 * Co), jnp.bfloat16),
        grid=(M // tm,),
        in_specs=[pl.BlockSpec((tm, Cin), lambda i: (i, 0)),
                  pl.BlockSpec((Cin, 4 * Co), lambda i: (0, 0)),
                  pl.BlockSpec((1, 4 * Co), lambda i: (0, 0))],
        out_specs=pl.BlockSpec((tm, 4 * Co), lambda i: (i, 0)),
        compiler_params=_compiler_params(1),
    )(x.reshape(M, Cin), wt, b4)

    # 2x2 pixel shuffle kept as a (now bf16, i.e. half-traffic) XLA relayout.
    # TODO(synk): fold this shuffle into the kernel's output indexing to drop
    # the extra HBM round trip entirely.
    y4 = y4.reshape(N, H, W, 2, 2, Co)
    return jnp.transpose(y4, (0, 1, 3, 2, 4, 5)).reshape(N, 2 * H, 2 * W, Co)


# ---------------------------------------------------------------------------
# Fused 3x3 reflect conv: in-VMEM reflect border, fused channel concat
# (multi-input K-blocks), optional BN+ReLU input prologue, 9 accumulated
# dots (no lane-axis tap concat), BN partial-sum side outputs, optional
# lane-dense channels-first output.
# ---------------------------------------------------------------------------
def _conv3x3_kernel(*refs, n_inputs, fused_affine, transpose_out):
    x_refs = refs[:n_inputs]
    w_refs = refs[n_inputs:2 * n_inputs]
    pos = 2 * n_inputs
    if fused_affine:
        scale_ref, shift_ref = refs[pos], refs[pos + 1]
        pos += 2
    o_ref, s_ref, ss_ref = refs[pos], refs[pos + 1], refs[pos + 2]

    H, W = x_refs[0].shape[1], x_refs[0].shape[2]
    Cout = o_ref.shape[1] if transpose_out else o_ref.shape[3]

    if transpose_out:
        acc = jnp.zeros((Cout, H * W), jnp.float32)    # lane-dense accumulator
    else:
        acc = jnp.zeros((H * W, Cout), jnp.float32)

    for x_ref, w_ref in zip(x_refs, w_refs):
        C = x_ref.shape[3]
        x = x_ref[0]                                   # (H, W, C)
        if fused_affine:
            # Previous layer's BN + ReLU folded in as a per-channel affine.
            x = jnp.maximum(
                x.astype(jnp.float32) * scale_ref[...].reshape(1, 1, C)
                + shift_ref[...].reshape(1, 1, C), 0.0)
        xb = x.astype(jnp.bfloat16)                    # single cast, pre-gather
        # 1-px reflect border built in VMEM (no padded copy in HBM).
        xp = jnp.concatenate([xb[1:2], xb, xb[H - 2:H - 1]], axis=0)
        xp = jnp.concatenate([xp[:, 1:2], xp, xp[:, W - 2:W - 1]], axis=1)
        w = w_ref[...]                                 # bf16, pre-cast outside
        for dy in range(3):
            for dx in range(3):
                tap = xp[dy:dy + H, dx:dx + W, :].reshape(H * W, C)
                if transpose_out:
                    # w[dy,dx]: (Cout, C); tap: (H*W, C) -> (Cout, H*W)
                    acc = acc + lax.dot_general(
                        w[dy, dx], tap, (((1,), (1,)), ((), ())),
                        preferred_element_type=jnp.float32)
                else:
                    # w[dy,dx]: (C, Cout); tap: (H*W, C) -> (H*W, Cout)
                    acc = acc + jnp.dot(tap, w[dy, dx],
                                        preferred_element_type=jnp.float32)

    red_axis = 1 if transpose_out else 0
    s_ref[...] = jnp.sum(acc, axis=red_axis).reshape(1, 1, Cout)
    ss_ref[...] = jnp.sum(acc * acc, axis=red_axis).reshape(1, 1, Cout)
    if transpose_out:
        o_ref[...] = acc.reshape(1, Cout, H * W).astype(o_ref.dtype)
    else:
        o_ref[...] = acc.reshape(1, H, W, Cout).astype(o_ref.dtype)


def conv3x3_reflect_fused(inputs, torch_weights, scale=None, shift=None,
                          out_dtype=jnp.bfloat16, transpose_out=False):
    """Conv2d k=3, s=1, p=1, padding_mode='reflect', no bias, fully fused.

    `inputs` is a tuple of NHWC tensors that are implicitly concatenated along
    channels (concat fused as per-input K-blocks). torch_weights[i] has shape
    (Cout, Cin_i, 3, 3).  If scale/shift are given, relu(x*scale+shift) (the
    previous BN+ReLU) is applied to the single input as an in-kernel prologue.
    Returns (out, ch_sum (N,1,Cout), ch_sumsq (N,1,Cout))."""
    N, H, W, _ = inputs[0].shape
    Cout = torch_weights[0].shape[0]
    fused_affine = scale is not None
    n_inputs = len(inputs)

    if transpose_out:
        wks = tuple(jnp.transpose(w, (2, 3, 0, 1)).astype(jnp.bfloat16)
                    for w in torch_weights)            # (3,3,Cout,Cin_i)
    else:
        wks = tuple(jnp.transpose(w, (2, 3, 1, 0)).astype(jnp.bfloat16)
                    for w in torch_weights)            # (3,3,Cin_i,Cout)

    in_specs, args = [], []
    for x in inputs:
        C = x.shape[-1]
        in_specs.append(pl.BlockSpec((1, H, W, C), lambda n: (n, 0, 0, 0)))
        args.append(x)
    for wk in wks:
        in_specs.append(pl.BlockSpec(wk.shape, lambda n, nd=wk.ndim: (0,) * nd))
        args.append(wk)
    if fused_affine:
        C0 = inputs[0].shape[-1]
        in_specs += [pl.BlockSpec((1, C0), lambda n: (0, 0)),
                     pl.BlockSpec((1, C0), lambda n: (0, 0))]
        args += [scale.reshape(1, C0).astype(jnp.float32),
                 shift.reshape(1, C0).astype(jnp.float32)]

    if transpose_out:
        o_shape = (N, Cout, H * W)
        o_spec = pl.BlockSpec((1, Cout, H * W), lambda n: (n, 0, 0))
    else:
        o_shape = (N, H, W, Cout)
        o_spec = pl.BlockSpec((1, H, W, Cout), lambda n: (n, 0, 0, 0))

    kernel = functools.partial(_conv3x3_kernel, n_inputs=n_inputs,
                               fused_affine=fused_affine,
                               transpose_out=transpose_out)

    # TODO(synk): for production-size feature maps add an H-tile grid axis with
    # a 1-row halo so each block stays within v7x's 64 MiB VMEM budget (and
    # provides >=2 parallel steps when N == 1).
    out, s, ss = pl.pallas_call(
        kernel,
        out_shape=(jax.ShapeDtypeStruct(o_shape, out_dtype),
                   jax.ShapeDtypeStruct((N, 1, Cout), jnp.float32),
                   jax.ShapeDtypeStruct((N, 1, Cout), jnp.float32)),
        grid=(N,),
        in_specs=in_specs,
        out_specs=(o_spec,
                   pl.BlockSpec((1, 1, Cout), lambda n: (n, 0, 0)),
                   pl.BlockSpec((1, 1, Cout), lambda n: (n, 0, 0))),
        compiler_params=_compiler_params(1),
    )(*args)
    return out, s, ss


# ---------------------------------------------------------------------------
# BatchNorm (train-mode batch stats) folded into per-channel scale/shift,
# plus a lane-dense fused normalize+ReLU kernel for the final stage.
# ---------------------------------------------------------------------------
def _bn_affine_from_sums(ch_sum, ch_sumsq, count, gamma, beta, eps=1e-5):
    # TODO(synk): running_mean / running_var buffer updates (training-mode
    # bookkeeping) are not implemented; forward uses batch statistics only.
    s = jnp.sum(ch_sum, axis=(0, 1))       # (C,)
    ss = jnp.sum(ch_sumsq, axis=(0, 1))    # (C,)
    mean = s / count
    var = jnp.maximum(ss / count - mean * mean, 0.0)   # biased var (torch train)
    scale = gamma * lax.rsqrt(var + eps)
    shift = beta - mean * scale
    return scale, shift


def _bn_relu_kernel(x_ref, s_ref, t_ref, o_ref):
    o_ref[...] = jnp.maximum(
        x_ref[...].astype(jnp.float32) * s_ref[...] + t_ref[...], 0.0)


def apply_bn_relu_chw(x, scale, shift):
    """Fused y = relu(x*scale + shift), per channel, on a channels-first
    (N, C, H*W) activation.  Blocks are lane-dense: rows are flattened so the
    last block dim is 128 (or H*W) and scale/shift become per-row scalars."""
    N, C, HW = x.shape
    if HW % 128 == 0:
        L, reps = 128, HW // 128
    else:
        L, reps = HW, 1
    R = N * C * reps
    xs = x.reshape(R, L)
    per_row_scale = jnp.repeat(jnp.tile(scale.astype(jnp.float32), N), reps)
    per_row_shift = jnp.repeat(jnp.tile(shift.astype(jnp.float32), N), reps)

    row_bytes = L * (x.dtype.itemsize + 4) + 8
    tr = _pick_block_rows(R, row_bytes)

    out = pl.pallas_call(
        _bn_relu_kernel,
        out_shape=jax.ShapeDtypeStruct((R, L), jnp.float32),
        grid=(R // tr,),
        in_specs=[pl.BlockSpec((tr, L), lambda i: (i, 0)),
                  pl.BlockSpec((tr, 1), lambda i: (i, 0)),
                  pl.BlockSpec((tr, 1), lambda i: (i, 0))],
        out_specs=pl.BlockSpec((tr, L), lambda i: (i, 0)),
        compiler_params=_compiler_params(1),
    )(xs, per_row_scale.reshape(R, 1), per_row_shift.reshape(R, 1))
    return out.reshape(N, C, HW)


# ---------------------------------------------------------------------------
# F.pad to the skip connection's spatial size (negative pads crop, like torch)
# ---------------------------------------------------------------------------
def _match_spatial(y, th, tw):
    dh, dw = th - y.shape[1], tw - y.shape[2]
    if dh == 0 and dw == 0:
        return y
    pt, pb = dh // 2, dh - dh // 2
    pl_, pr = dw // 2, dw - dw // 2
    y = jnp.pad(y, ((0, 0), (max(pt, 0), max(pb, 0)),
                    (max(pl_, 0), max(pr, 0)), (0, 0)))
    hs, ws = max(-pt, 0), max(-pl_, 0)
    return y[:, hs:hs + th, ws:ws + tw, :]


# ---------------------------------------------------------------------------
# UpSample module forward (NCHW in / NCHW out, matching PyTorch)
# ---------------------------------------------------------------------------
def init_upsample_params(key, in_channel, out_channel):
    ks = jax.random.split(key, 8)
    ch2 = in_channel // 2
    return {
        # ConvTranspose2d(in, in//2, 2, 2): weight (Cin, Co, 2, 2)
        "up_w": 0.1 * jax.random.normal(ks[0], (in_channel, ch2, 2, 2), jnp.float32),
        "up_b": 0.1 * jax.random.normal(ks[1], (ch2,), jnp.float32),
        # Conv_Block(in_channel, out_channel)
        "conv1_w": 0.1 * jax.random.normal(ks[2], (out_channel, in_channel, 3, 3), jnp.float32),
        "bn1_g": 1.0 + 0.1 * jax.random.normal(ks[3], (out_channel,), jnp.float32),
        "bn1_b": 0.1 * jax.random.normal(ks[4], (out_channel,), jnp.float32),
        "conv2_w": 0.1 * jax.random.normal(ks[5], (out_channel, out_channel, 3, 3), jnp.float32),
        "bn2_g": 1.0 + 0.1 * jax.random.normal(ks[6], (out_channel,), jnp.float32),
        "bn2_b": 0.1 * jax.random.normal(ks[7], (out_channel,), jnp.float32),
    }


@jax.jit
def upsample_forward(x1_nchw, x2_nchw, params):
    # NCHW -> NHWC (channels on the lane axis inside the kernels).
    x1 = jnp.transpose(x1_nchw, (0, 2, 3, 1)).astype(jnp.float32)
    x2 = jnp.transpose(x2_nchw, (0, 2, 3, 1)).astype(jnp.float32)

    # 1) ConvTranspose2d(in, in//2, k=2, s=2): matmul kernel with fused bias,
    #    bf16 output; 2x2 pixel shuffle runs on the half-width tensor.
    y1 = conv_transpose_2x2(x1, params["up_w"], params["up_b"])

    # 2) F.pad to x2's spatial size (crops for negative diffs, like torch).
    y1 = _match_spatial(y1, x2.shape[1], x2.shape[2])

    N, H, W, C2 = x2.shape
    count = jnp.float32(N * H * W)
    c_out = params["conv1_w"].shape[0]

    # 3+4a) torch.cat([x2, x1], dim=1) + conv1: the channel concat and the
    #       reflect pad are fused inside the conv kernel (two K-blocks).
    h1, s1, ss1 = conv3x3_reflect_fused(
        inputs=(x2, y1),
        torch_weights=(params["conv1_w"][:, :C2], params["conv1_w"][:, C2:]),
        out_dtype=jnp.bfloat16, transpose_out=False)
    sc1, sh1 = _bn_affine_from_sums(s1, ss1, count, params["bn1_g"], params["bn1_b"])

    # 4b) BN1+ReLU fused as conv2's input prologue; conv2 stores channels-first
    #     (lane-dense), so the final BN2+ReLU and NCHW output need no transpose.
    h2, s2, ss2 = conv3x3_reflect_fused(
        inputs=(h1,), torch_weights=(params["conv2_w"],),
        scale=sc1, shift=sh1, out_dtype=jnp.bfloat16, transpose_out=True)
    sc2, sh2 = _bn_affine_from_sums(s2, ss2, count, params["bn2_g"], params["bn2_b"])

    # 4c) Final BN2 + ReLU: lane-dense row-tiled elementwise kernel.
    out = apply_bn_relu_chw(h2, sc2, sh2)          # (N, Cout, H*W) f32
    return out.reshape(N, c_out, H, W)             # already NCHW


if __name__ == "__main__":
    key = jax.random.PRNGKey(0)
    k_x1, k_x2, k_p = jax.random.split(key, 3)

    in_channel, out_channel = 8, 4
    N = 2
    # x1: deeper (coarser) feature map; x2: skip connection at 2x resolution.
    x1 = jax.random.normal(k_x1, (N, in_channel, 8, 8), jnp.float32)
    x2 = jax.random.normal(k_x2, (N, in_channel // 2, 16, 16), jnp.float32)

    params = init_upsample_params(k_p, in_channel, out_channel)

    out = jax.block_until_ready(upsample_forward(x1, x2, params))

    assert out.shape == (N, out_channel, 16, 16), out.shape
    assert bool(jnp.all(jnp.isfinite(out)))
    assert bool(jnp.all(out >= 0.0))  # final ReLU
    print("KERNEL_OK")
</pallas_src>

<mosaic_0001>
module attributes {stable_mosaic.version = 11 : i64} {
  func.func @_convt_kernel(%arg0: i32, %arg1: memref<64x8xf32, #tpu.memory_space<vmem>>, %arg2: memref<8x16xbf16, #tpu.memory_space<vmem>>, %arg3: memref<1x16xf32, #tpu.memory_space<vmem>>, %arg4: memref<64x16xbf16, #tpu.memory_space<vmem>>) attributes {dimension_semantics = [#tpu.dimension_semantics<parallel>], iteration_bounds = array<i64: 2>, scalar_prefetch = 0 : i64, scratch_operands = 0 : i64, tpu.core_type = #tpu.core_type<tc>, window_params = [{transform_indices = @transform_0, window_bounds = array<i64: 64, 8>}, {pipeline_mode = #tpu.pipeline_mode<synchronous>, transform_indices = @transform_1, window_bounds = array<i64: 8, 16>}, {pipeline_mode = #tpu.pipeline_mode<synchronous>, transform_indices = @transform_2, window_bounds = array<i64: 1, 16>}, {transform_indices = @transform_3, window_bounds = array<i64: 64, 16>}]} {
    %c0 = arith.constant 0 : index
    %c0_0 = arith.constant 0 : index
    %0 = vector.load %arg1[%c0, %c0_0] : memref<64x8xf32, #tpu.memory_space<vmem>>, vector<64x8xf32>
    %1 = arith.truncf %0 : vector<64x8xf32> to vector<64x8xbf16>
    %c0_1 = arith.constant 0 : index
    %c0_2 = arith.constant 0 : index
    %2 = vector.load %arg2[%c0_1, %c0_2] : memref<8x16xbf16, #tpu.memory_space<vmem>>, vector<8x16xbf16>
    %cst = arith.constant dense<0.000000e+00> : vector<64x16xf32>
    %3 = tpu.matmul %1, %2, %cst {dimension_numbers = #tpu.dot_dimension_numbers<[1], [0], [0], [1], [0, 0, 1, 1], [], []>} : vector<64x8xbf16>, vector<8x16xbf16>, vector<64x16xf32> -> vector<64x16xf32>
    %c0_3 = arith.constant 0 : index
    %c0_4 = arith.constant 0 : index
    %4 = vector.load %arg3[%c0_3, %c0_4] : memref<1x16xf32, #tpu.memory_space<vmem>>, vector<1x16xf32>
    %5 = vector.broadcast %4 : vector<1x16xf32> to vector<64x16xf32>
    %6 = arith.addf %3, %5 : vector<64x16xf32>
    %7 = arith.truncf %6 : vector<64x16xf32> to vector<64x16xbf16>
    %c0_5 = arith.constant 0 : index
    %c0_6 = arith.constant 0 : index
    %8 = vector.load %arg4[%c0_5, %c0_6] : memref<64x16xbf16, #tpu.memory_space<vmem>>, vector<64x16xbf16>
    tpu.vector_store %arg4[%c0_5, %c0_6], %7 {strides = array<i32>} : memref<64x16xbf16, #tpu.memory_space<vmem>>, vector<64x16xbf16>,
    return
  }
  func.func @transform_0(%arg0: i32) -> (i32, i32) {
    %c0_i32 = arith.constant 0 : i32
    %c0_i32_0 = arith.constant 0 : i32
    return %arg0, %c0_i32 : i32, i32
  }
  func.func @transform_1(%arg0: i32) -> (i32, i32) {
    %c0_i32 = arith.constant 0 : i32
    %c0_i32_0 = arith.constant 0 : i32
    %c0_i32_1 = arith.constant 0 : i32
    return %c0_i32, %c0_i32_0 : i32, i32
  }
  func.func @transform_2(%arg0: i32) -> (i32, i32) {
    %c0_i32 = arith.constant 0 : i32
    %c0_i32_0 = arith.constant 0 : i32
    %c0_i32_1 = arith.constant 0 : i32
    return %c0_i32, %c0_i32_0 : i32, i32
  }
  func.func @transform_3(%arg0: i32) -> (i32, i32) {
    %c0_i32 = arith.constant 0 : i32
    %c0_i32_0 = arith.constant 0 : i32
    return %arg0, %c0_i32 : i32, i32
  }
}

module attributes {stable_mosaic.version = 11 : i64} {
  func.func @_conv3x3_kernel(%arg0: i32, %arg1: memref<1x16x16x4xf32, #tpu.memory_space<vmem>>, %arg2: memref<1x16x16x4xbf16, #tpu.memory_space<vmem>>, %arg3: memref<3x3x4x4xbf16, #tpu.memory_space<vmem>>, %arg4: memref<3x3x4x4xbf16, #tpu.memory_space<vmem>>, %arg5: memref<1x16x16x4xbf16, #tpu.memory_space<vmem>>, %arg6: memref<1x1x4xf32, #tpu.memory_space<vmem>>, %arg7: memref<1x1x4xf32, #tpu.memory_space<vmem>>) attributes {dimension_semantics = [#tpu.dimension_semantics<parallel>], iteration_bounds = array<i64: 2>, scalar_prefetch = 0 : i64, scratch_operands = 0 : i64, tpu.core_type = #tpu.core_type<tc>, window_params = [{transform_indices = @transform_0, window_bounds = array<i64: 1, 16, 16, 4>}, {transform_indices = @transform_1, window_bounds = array<i64: 1, 16, 16, 4>}, {pipeline_mode = #tpu.pipeline_mode<synchronous>, transform_indices = @transform_2, window_bounds = array<i64: 3, 3, 4, 4>}, {pipeline_mode = #tpu.pipeline_mode<synchronous>, transform_indices = @transform_3, window_bounds = array<i64: 3, 3, 4, 4>}, {transform_indices = @transform_4, window_bounds = array<i64: 1, 16, 16, 4>}, {transform_indices = @transform_5, window_bounds = array<i64: 1, 1, 4>}, {transform_indices = @transform_6, window_bounds = array<i64: 1, 1, 4>}]} {
    %cst = arith.constant 0.000000e+00 : f32
    %0 = vector.broadcast %cst : f32 to vector<256x4xf32>
    %c0 = arith.constant 0 : index
    %c0_0 = arith.constant 0 : index
    %c0_1 = arith.constant 0 : index
    %c0_2 = arith.constant 0 : index
    %1 = vector.load %arg1[%c0, %c0_0, %c0_1, %c0_2] : memref<1x16x16x4xf32, #tpu.memory_space<vmem>>, vector<1x16x16x4xf32>
    %2 = vector.shape_cast %1 : vector<1x16x16x4xf32> to vector<16x16x4xf32>
    %3 = arith.truncf %2 : vector<16x16x4xf32> to vector<16x16x4xbf16>
    %4 = vector.extract_strided_slice %3 {offsets = [1, 0, 0], sizes = [1, 16, 4], strides = [1, 1, 1]} : vector<16x16x4xbf16> to vector<1x16x4xbf16>
    %5 = vector.extract_strided_slice %3 {offsets = [14, 0, 0], sizes = [1, 16, 4], strides = [1, 1, 1]} : vector<16x16x4xbf16> to vector<1x16x4xbf16>
    %6 = tpu.concatenate %4, %3, %5 in 0 : vector<1x16x4xbf16>, vector<16x16x4xbf16>, vector<1x16x4xbf16> -> vector<18x16x4xbf16>
    %7 = vector.extract_strided_slice %6 {offsets = [0, 1, 0], sizes = [18, 1, 4], strides = [1, 1, 1]} : vector<18x16x4xbf16> to vector<18x1x4xbf16>
    %8 = vector.extract_strided_slice %6 {offsets = [0, 14, 0], sizes = [18, 1, 4], strides = [1, 1, 1]} : vector<18x16x4xbf16> to vector<18x1x4xbf16>
    %9 = tpu.concatenate %7, %6, %8 in 1 : vector<18x1x4xbf16>, vector<18x16x4xbf16>, vector<18x1x4xbf16> -> vector<18x18x4xbf16>
    %c0_3 = arith.constant 0 : index
    %c0_4 = arith.constant 0 : index
    %c0_5 = arith.constant 0 : index
    %c0_6 = arith.constant 0 : index
    %10 = vector.load %arg3[%c0_3, %c0_4, %c0_5, %c0_6] : memref<3x3x4x4xbf16, #tpu.memory_space<vmem>>, vector<3x3x4x4xbf16>
    %11 = vector.extract_strided_slice %9 {offsets = [0, 0, 0], sizes = [16, 16, 4], strides = [1, 1, 1]} : vector<18x18x4xbf16> to vector<16x16x4xbf16>
    %12 = vector.shape_cast %11 : vector<16x16x4xbf16> to vector<256x4xbf16>
    %13 = vector.extract_strided_slice %10 {offsets = [0, 0, 0, 0], sizes = [1, 1, 4, 4], strides = [1, 1, 1, 1]} : vector<3x3x4x4xbf16> to vector<1x1x4x4xbf16>
    %14 = vector.shape_cast %13 : vector<1x1x4x4xbf16> to vector<4x4xbf16>
    %cst_7 = arith.constant dense<0.000000e+00> : vector<256x4xf32>
    %15 = tpu.matmul %12, %14, %cst_7 {dimension_numbers = #tpu.dot_dimension_numbers<[1], [0], [0], [1], [0, 0, 1, 1], [], []>} : vector<256x4xbf16>, vector<4x4xbf16>, vector<256x4xf32> -> vector<256x4xf32>
    %16 = arith.addf %0, %15 : vector<256x4xf32>
    %17 = vector.extract_strided_slice %9 {offsets = [0, 1, 0], sizes = [16, 16, 4], strides = [1, 1, 1]} : vector<18x18x4xbf16> to vector<16x16x4xbf16>
    %18 = vector.shape_cast %17 : vector<16x16x4xbf16> to vector<256x4xbf16>
    %19 = vector.extract_strided_slice %10 {offsets = [0, 1, 0, 0], sizes = [1, 1, 4, 4], strides = [1, 1, 1, 1]} : vector<3x3x4x4xbf16> to vector<1x1x4x4xbf16>
    %20 = vector.shape_cast %19 : vector<1x1x4x4xbf16> to vector<4x4xbf16>
    %cst_8 = arith.constant dense<0.000000e+00> : vector<256x4xf32>
    %21 = tpu.matmul %18, %20, %cst_8 {dimension_numbers = #tpu.dot_dimension_numbers<[1], [0], [0], [1], [0, 0, 1, 1], [], []>} : vector<256x4xbf16>, vector<4x4xbf16>, vector<256x4xf32> -> vector<256x4xf32>
    %22 = arith.addf %16, %21 : vector<256x4xf32>
    %23 = vector.extract_strided_slice %9 {offsets = [0, 2, 0], sizes = [16, 16, 4], strides = [1, 1, 1]} : vector<18x18x4xbf16> to vector<16x16x4xbf16>
    %24 = vector.shape_cast %23 : vector<16x16x4xbf16> to vector<256x4xbf16>
    %25 = vector.extract_strided_slice %10 {offsets = [0, 2, 0, 0], sizes = [1, 1, 4, 4], strides = [1, 1, 1, 1]} : vector<3x3x4x4xbf16> to vector<1x1x4x4xbf16>
    %26 = vector.shape_cast %25 : vector<1x1x4x4xbf16> to vector<4x4xbf16>
    %cst_9 = arith.constant dense<0.000000e+00> : vector<256x4xf32>
    %27 = tpu.matmul %24, %26, %cst_9 {dimension_numbers = #tpu.dot_dimension_numbers<[1], [0], [0], [1], [0, 0, 1, 1], [], []>} : vector<256x4xbf16>, vector<4x4xbf16>, vector<256x4xf32> -> vector<256x4xf32>
    %28 = arith.addf %22, %27 : vector<256x4xf32>
    %29 = vector.extract_strided_slice %9 {offsets = [1, 0, 0], sizes = [16, 16, 4], strides = [1, 1, 1]} : vector<18x18x4xbf16> to vector<16x16x4xbf16>
    %30 = vector.shape_cast %29 : vector<16x16x4xbf16> to vector<256x4xbf16>
    %31 = vector.extract_strided_slice %10 {offsets = [1, 0, 0, 0], sizes = [1, 1, 4, 4], strides = [1, 1, 1, 1]} : vector<3x3x4x4xbf16> to vector<1x1x4x4xbf16>
    %32 = vector.shape_cast %31 : vector<1x1x4x4xbf16> to vector<4x4xbf16>
    %cst_10 = arith.constant dense<0.000000e+00> : vector<256x4xf32>
    %33 = tpu.matmul %30, %32, %cst_10 {dimension_numbers = #tpu.dot_dimension_numbers<[1], [0], [0], [1], [0, 0, 1, 1], [], []>} : vector<256x4xbf16>, vector<4x4xbf16>, vector<256x4xf32> -> vector<256x4xf32>
    %34 = arith.addf %28, %33 : vector<256x4xf32>
    %35 = vector.extract_strided_slice %9 {offsets = [1, 1, 0], sizes = [16, 16, 4], strides = [1, 1, 1]} : vector<18x18x4xbf16> to vector<16x16x4xbf16>
    %36 = vector.shape_cast %35 : vector<16x16x4xbf16> to vector<256x4xbf16>
    %37 = vector.extract_strided_slice %10 {offsets = [1, 1, 0, 0], sizes = [1, 1, 4, 4], strides = [1, 1, 1, 1]} : vector<3x3x4x4xbf16> to vector<1x1x4x4xbf16>
    %38 = vector.shape_cast %37 : vector<1x1x4x4xbf16> to vector<4x4xbf16>
    %cst_11 = arith.constant dense<0.000000e+00> : vector<256x4xf32>
    %39 = tpu.matmul %36, %38, %cst_11 {dimension_numbers = #tpu.dot_dimension_numbers<[1], [0], [0], [1], [0, 0, 1, 1], [], []>} : vector<256x4xbf16>, vector<4x4xbf16>, vector<256x4xf32> -> vector<256x4xf32>
    %40 = arith.addf %34, %39 : vector<256x4xf32>
    %41 = vector.extract_strided_slice %9 {offsets = [1, 2, 0], sizes = [16, 16, 4], strides = [1, 1, 1]} : vector<18x18x4xbf16> to vector<16x16x4xbf16>
    %42 = vector.shape_cast %41 : vector<16x16x4xbf16> to vector<256x4xbf16>
    %43 = vector.extract_strided_slice %10 {offsets = [1, 2, 0, 0], sizes = [1, 1, 4, 4], strides = [1, 1, 1, 1]} : vector<3x3x4x4xbf16> to vector<1x1x4x4xbf16>
    %44 = vector.shape_cast %43 : vector<1x1x4x4xbf16> to vector<4x4xbf16>
    %cst_12 = arith.constant dense<0.000000e+00> : vector<256x4xf32>
    %45 = tpu.matmul %42, %44, %cst_12 {dimension_numbers = #tpu.dot_dimension_numbers<[1], [0], [0], [1], [0, 0, 1, 1], [], []>} : vector<256x4xbf16>, vector<4x4xbf16>, vector<256x4xf32> -> vector<256x4xf32>
    %46 = arith.addf %40, %45 : vector<256x4xf32>
    %47 = vector.extract_strided_slice %9 {offsets = [2, 0, 0], sizes = [16, 16, 4], strides = [1, 1, 1]} : vector<18x18x4xbf16> to vector<16x16x4xbf16>
    %48 = vector.shape_cast %47 : vector<16x16x4xbf16> to vector<256x4xbf16>
    %49 = vector.extract_strided_slice %10 {offsets = [2, 0, 0, 0], sizes = [1, 1, 4, 4], strides = [1, 1, 1, 1]} : vector<3x3x4x4xbf16> to vector<1x1x4x4xbf16>
    %50 = vector.shape_cast %49 : vector<1x1x4x4xbf16> to vector<4x4xbf16>
    %cst_13 = arith.constant dense<0.000000e+00> : vector<256x4xf32>
    %51 = tpu.matmul %48, %50, %cst_13 {dimension_numbers = #tpu.dot_dimension_numbers<[1], [0], [0], [1], [0, 0, 1, 1], [], []>} : vector<256x4xbf16>, vector<4x4xbf16>, vector<256x4xf32> -> vector<256x4xf32>
    %52 = arith.addf %46, %51 : vector<256x4xf32>
    %53 = vector.extract_strided_slice %9 {offsets = [2, 1, 0], sizes = [16, 16, 4], strides = [1, 1, 1]} : vector<18x18x4xbf16> to vector<16x16x4xbf16>
    %54 = vector.shape_cast %53 : vector<16x16x4xbf16> to vector<256x4xbf16>
    %55 = vector.extract_strided_slice %10 {offsets = [2, 1, 0, 0], sizes = [1, 1, 4, 4], strides = [1, 1, 1, 1]} : vector<3x3x4x4xbf16> to vector<1x1x4x4xbf16>
    %56 = vector.shape_cast %55 : vector<1x1x4x4xbf16> to vector<4x4xbf16>
    %cst_14 = arith.constant dense<0.000000e+00> : vector<256x4xf32>
    %57 = tpu.matmul %54, %56, %cst_14 {dimension_numbers = #tpu.dot_dimension_numbers<[1], [0], [0], [1], [0, 0, 1, 1], [], []>} : vector<256x4xbf16>, vector<4x4xbf16>, vector<256x4xf32> -> vector<256x4xf32>
    %58 = arith.addf %52, %57 : vector<256x4xf32>
    %59 = vector.extract_strided_slice %9 {offsets = [2, 2, 0], sizes = [16, 16, 4], strides = [1, 1, 1]} : vector<18x18x4xbf16> to vector<16x16x4xbf16>
    %60 = vector.shape_cast %59 : vector<16x16x4xbf16> to vector<256x4xbf16>
    %61 = vector.extract_strided_slice %10 {offsets = [2, 2, 0, 0], sizes = [1, 1, 4, 4], strides = [1, 1, 1, 1]} : vector<3x3x4x4xbf16> to vector<1x1x4x4xbf16>
    %62 = vector.shape_cast %61 : vector<1x1x4x4xbf16> to vector<4x4xbf16>
    %cst_15 = arith.constant dense<0.000000e+00> : vector<256x4xf32>
    %63 = tpu.matmul %60, %62, %cst_15 {dimension_numbers = #tpu.dot_dimension_numbers<[1], [0], [0], [1], [0, 0, 1, 1], [], []>} : vector<256x4xbf16>, vector<4x4xbf16>, vector<256x4xf32> -> vector<256x4xf32>
    %64 = arith.addf %58, %63 : vector<256x4xf32>
    %c0_16 = arith.constant 0 : index
    %c0_17 = arith.constant 0 : index
    %c0_18 = arith.constant 0 : index
    %c0_19 = arith.constant 0 : index
    %65 = vector.load %arg2[%c0_16, %c0_17, %c0_18, %c0_19] : memref<1x16x16x4xbf16, #tpu.memory_space<vmem>>, vector<1x16x16x4xbf16>
    %66 = vector.shape_cast %65 : vector<1x16x16x4xbf16> to vector<16x16x4xbf16>
    %67 = vector.extract_strided_slice %66 {offsets = [1, 0, 0], sizes = [1, 16, 4], strides = [1, 1, 1]} : vector<16x16x4xbf16> to vector<1x16x4xbf16>
    %68 = vector.extract_strided_slice %66 {offsets = [14, 0, 0], sizes = [1, 16, 4], strides = [1, 1, 1]} : vector<16x16x4xbf16> to vector<1x16x4xbf16>
    %69 = tpu.concatenate %67, %66, %68 in 0 : vector<1x16x4xbf16>, vector<16x16x4xbf16>, vector<1x16x4xbf16> -> vector<18x16x4xbf16>
    %70 = vector.extract_strided_slice %69 {offsets = [0, 1, 0], sizes = [18, 1, 4], strides = [1, 1, 1]} : vector<18x16x4xbf16> to vector<18x1x4xbf16>
    %71 = vector.extract_strided_slice %69 {offsets = [0, 14, 0], sizes = [18, 1, 4], strides = [1, 1, 1]} : vector<18x16x4xbf16> to vector<18x1x4xbf16>
    %72 = tpu.concatenate %70, %69, %71 in 1 : vector<18x1x4xbf16>, vector<18x16x4xbf16>, vector<18x1x4xbf16> -> vector<18x18x4xbf16>
    %c0_20 = arith.constant 0 : index
    %c0_21 = arith.constant 0 : index
    %c0_22 = arith.constant 0 : index
    %c0_23 = arith.constant 0 : index
    %73 = vector.load %arg4[%c0_20, %c0_21, %c0_22, %c0_23] : memref<3x3x4x4xbf16, #tpu.memory_space<vmem>>, vector<3x3x4x4xbf16>
    %74 = vector.extract_strided_slice %72 {offsets = [0, 0, 0], sizes = [16, 16, 4], strides = [1, 1, 1]} : vector<18x18x4xbf16> to vector<16x16x4xbf16>
    %75 = vector.shape_cast %74 : vector<16x16x4xbf16> to vector<256x4xbf16>
    %76 = vector.extract_strided_slice %73 {offsets = [0, 0, 0, 0], sizes = [1, 1, 4, 4], strides = [1, 1, 1, 1]} : vector<3x3x4x4xbf16> to vector<1x1x4x4xbf16>
    %77 = vector.shape_cast %76 : vector<1x1x4x4xbf16> to vector<4x4xbf16>
    %cst_24 = arith.constant dense<0.000000e+00> : vector<256x4xf32>
    %78 = tpu.matmul %75, %77, %cst_24 {dimension_numbers = #tpu.dot_dimension_numbers<[1], [0], [0], [1], [0, 0, 1, 1], [], []>} : vector<256x4xbf16>, vector<4x4xbf16>, vector<256x4xf32> -> vector<256x4xf32>
    %79 = arith.addf %64, %78 : vector<256x4xf32>
    %80 = vector.extract_strided_slice %72 {offsets = [0, 1, 0], sizes = [16, 16, 4], strides = [1, 1, 1]} : vector<18x18x4xbf16> to vector<16x16x4xbf16>
    %81 = vector.shape_cast %80 : vector<16x16x4xbf16> to vector<256x4xbf16>
    %82 = vector.extract_strided_slice %73 {offsets = [0, 1, 0, 0], sizes = [1, 1, 4, 4], strides = [1, 1, 1, 1]} : vector<3x3x4x4xbf16> to vector<1x1x4x4xbf16>
    %83 = vector.shape_cast %82 : vector<1x1x4x4xbf16> to vector<4x4xbf16>
    %cst_25 = arith.constant dense<0.000000e+00> : vector<256x4xf32>
    %84 = tpu.matmul %81, %83, %cst_25 {dimension_numbers = #tpu.dot_dimension_numbers<[1], [0], [0], [1], [0, 0, 1, 1], [], []>} : vector<256x4xbf16>, vector<4x4xbf16>, vector<256x4xf32> -> vector<256x4xf32>
    %85 = arith.addf %79, %84 : vector<256x4xf32>
    %86 = vector.extract_strided_slice %72 {offsets = [0, 2, 0], sizes = [16, 16, 4], strides = [1, 1, 1]} : vector<18x18x4xbf16> to vector<16x16x4xbf16>
    %87 = vector.shape_cast %86 : vector<16x16x4xbf16> to vector<256x4xbf16>
    %88 = vector.extract_strided_slice %73 {offsets = [0, 2, 0, 0], sizes = [1, 1, 4, 4], strides = [1, 1, 1, 1]} : vector<3x3x4x4xbf16> to vector<1x1x4x4xbf16>
    %89 = vector.shape_cast %88 : vector<1x1x4x4xbf16> to vector<4x4xbf16>
    %cst_26 = arith.constant dense<0.000000e+00> : vector<256x4xf32>
    %90 = tpu.matmul %87, %89, %cst_26 {dimension_numbers = #tpu.dot_dimension_numbers<[1], [0], [0], [1], [0, 0, 1, 1], [], []>} : vector<256x4xbf16>, vector<4x4xbf16>, vector<256x4xf32> -> vector<256x4xf32>
    %91 = arith.addf %85, %90 : vector<256x4xf32>
    %92 = vector.extract_strided_slice %72 {offsets = [1, 0, 0], sizes = [16, 16, 4], strides = [1, 1, 1]} : vector<18x18x4xbf16> to vector<16x16x4xbf16>
    %93 = vector.shape_cast %92 : vector<16x16x4xbf16> to vector<256x4xbf16>
    %94 = vector.extract_strided_slice %73 {offsets = [1, 0, 0, 0], sizes = [1, 1, 4, 4], strides = [1, 1, 1, 1]} : vector<3x3x4x4xbf16> to vector<1x1x4x4xbf16>
    %95 = vector.shape_cast %94 : vector<1x1x4x4xbf16> to vector<4x4xbf16>
    %cst_27 = arith.constant dense<0.000000e+00> : vector<256x4xf32>
    %96 = tpu.matmul %93, %95, %cst_27 {dimension_numbers = #tpu.dot_dimension_numbers<[1], [0], [0], [1], [0, 0, 1, 1], [], []>} : vector<256x4xbf16>, vector<4x4xbf16>, vector<256x4xf32> -> vector<256x4xf32>
    %97 = arith.addf %91, %96 : vector<256x4xf32>
    %98 = vector.extract_strided_slice %72 {offsets = [1, 1, 0], sizes = [16, 16, 4], strides = [1, 1, 1]} : vector<18x18x4xbf16> to vector<16x16x4xbf16>
    %99 = vector.shape_cast %98 : vector<16x16x4xbf16> to vector<256x4xbf16>
    %100 = vector.extract_strided_slice %73 {offsets = [1, 1, 0, 0], sizes = [1, 1, 4, 4], strides = [1, 1, 1, 1]} : vector<3x3x4x4xbf16> to vector<1x1x4x4xbf16>
    %101 = vector.shape_cast %100 : vector<1x1x4x4xbf16> to vector<4x4xbf16>
    %cst_28 = arith.constant dense<0.000000e+00> : vector<256x4xf32>
    %102 = tpu.matmul %99, %101, %cst_28 {dimension_numbers = #tpu.dot_dimension_numbers<[1], [0], [0], [1], [0, 0, 1, 1], [], []>} : vector<256x4xbf16>, vector<4x4xbf16>, vector<256x4xf32> -> vector<256x4xf32>
    %103 = arith.addf %97, %102 : vector<256x4xf32>
    %104 = vector.extract_strided_slice %72 {offsets = [1, 2, 0], sizes = [16, 16, 4], strides = [1, 1, 1]} : vector<18x18x4xbf16> to vector<16x16x4xbf16>
    %105 = vector.shape_cast %104 : vector<16x16x4xbf16> to vector<256x4xbf16>
    %106 = vector.extract_strided_slice %73 {offsets = [1, 2, 0, 0], sizes = [1, 1, 4, 4], strides = [1, 1, 1, 1]} : vector<3x3x4x4xbf16> to vector<1x1x4x4xbf16>
    %107 = vector.shape_cast %106 : vector<1x1x4x4xbf16> to vector<4x4xbf16>
    %cst_29 = arith.constant dense<0.000000e+00> : vector<256x4xf32>
    %108 = tpu.matmul %105, %107, %cst_29 {dimension_numbers = #tpu.dot_dimension_numbers<[1], [0], [0], [1], [0, 0, 1, 1], [], []>} : vector<256x4xbf16>, vector<4x4xbf16>, vector<256x4xf32> -> vector<256x4xf32>
    %109 = arith.addf %103, %108 : vector<256x4xf32>
    %110 = vector.extract_strided_slice %72 {offsets = [2, 0, 0], sizes = [16, 16, 4], strides = [1, 1, 1]} : vector<18x18x4xbf16> to vector<16x16x4xbf16>
    %111 = vector.shape_cast %110 : vector<16x16x4xbf16> to vector<256x4xbf16>
    %112 = vector.extract_strided_slice %73 {offsets = [2, 0, 0, 0], sizes = [1, 1, 4, 4], strides = [1, 1, 1, 1]} : vector<3x3x4x4xbf16> to vector<1x1x4x4xbf16>
    %113 = vector.shape_cast %112 : vector<1x1x4x4xbf16> to vector<4x4xbf16>
    %cst_30 = arith.constant dense<0.000000e+00> : vector<256x4xf32>
    %114 = tpu.matmul %111, %113, %cst_30 {dimension_numbers = #tpu.dot_dimension_numbers<[1], [0], [0], [1], [0, 0, 1, 1], [], []>} : vector<256x4xbf16>, vector<4x4xbf16>, vector<256x4xf32> -> vector<256x4xf32>
    %115 = arith.addf %109, %114 : vector<256x4xf32>
    %116 = vector.extract_strided_slice %72 {offsets = [2, 1, 0], sizes = [16, 16, 4], strides = [1, 1, 1]} : vector<18x18x4xbf16> to vector<16x16x4xbf16>
    %117 = vector.shape_cast %116 : vector<16x16x4xbf16> to vector<256x4xbf16>
    %118 = vector.extract_strided_slice %73 {offsets = [2, 1, 0, 0], sizes = [1, 1, 4, 4], strides = [1, 1, 1, 1]} : vector<3x3x4x4xbf16> to vector<1x1x4x4xbf16>
    %119 = vector.shape_cast %118 : vector<1x1x4x4xbf16> to vector<4x4xbf16>
    %cst_31 = arith.constant dense<0.000000e+00> : vector<256x4xf32>
    %120 = tpu.matmul %117, %119, %cst_31 {dimension_numbers = #tpu.dot_dimension_numbers<[1], [0], [0], [1], [0, 0, 1, 1], [], []>} : vector<256x4xbf16>, vector<4x4xbf16>, vector<256x4xf32> -> vector<256x4xf32>
    %121 = arith.addf %115, %120 : vector<256x4xf32>
    %122 = vector.extract_strided_slice %72 {offsets = [2, 2, 0], sizes = [16, 16, 4], strides = [1, 1, 1]} : vector<18x18x4xbf16> to vector<16x16x4xbf16>
    %123 = vector.shape_cast %122 : vector<16x16x4xbf16> to vector<256x4xbf16>
    %124 = vector.extract_strided_slice %73 {offsets = [2, 2, 0, 0], sizes = [1, 1, 4, 4], strides = [1, 1, 1, 1]} : vector<3x3x4x4xbf16> to vector<1x1x4x4xbf16>
    %125 = vector.shape_cast %124 : vector<1x1x4x4xbf16> to vector<4x4xbf16>
    %cst_32 = arith.constant dense<0.000000e+00> : vector<256x4xf32>
    %126 = tpu.matmul %123, %125, %cst_32 {dimension_numbers = #tpu.dot_dimension_numbers<[1], [0], [0], [1], [0, 0, 1, 1], [], []>} : vector<256x4xbf16>, vector<4x4xbf16>, vector<256x4xf32> -> vector<256x4xf32>
    %127 = arith.addf %121, %126 : vector<256x4xf32>
    %cst_33 = arith.constant dense<0.000000e+00> : vector<4xf32>
    %128 = vector.multi_reduction <add>, %127, %cst_33 [0] : vector<256x4xf32> to vector<4xf32>
    %129 = vector.shape_cast %128 : vector<4xf32> to vector<1x1x4xf32>
    %c0_34 = arith.constant 0 : index
    %c0_35 = arith.constant 0 : index
    %c0_36 = arith.constant 0 : index
    %130 = vector.load %arg6[%c0_34, %c0_35, %c0_36] : memref<1x1x4xf32, #tpu.memory_space<vmem>>, vector<1x1x4xf32>
    tpu.vector_store %arg6[%c0_34, %c0_35, %c0_36], %129 {strides = array<i32>} : memref<1x1x4xf32, #tpu.memory_space<vmem>>, vector<1x1x4xf32>,
    %131 = arith.mulf %127, %127 : vector<256x4xf32>
    %cst_37 = arith.constant dense<0.000000e+00> : vector<4xf32>
    %132 = vector.multi_reduction <add>, %131, %cst_37 [0] : vector<256x4xf32> to vector<4xf32>
    %133 = vector.shape_cast %132 : vector<4xf32> to vector<1x1x4xf32>
    %c0_38 = arith.constant 0 : index
    %c0_39 = arith.constant 0 : index
    %c0_40 = arith.constant 0 : index
    %134 = vector.load %arg7[%c0_38, %c0_39, %c0_40] : memref<1x1x4xf32, #tpu.memory_space<vmem>>, vector<1x1x4xf32>
    tpu.vector_store %arg7[%c0_38, %c0_39, %c0_40], %133 {strides = array<i32>} : memref<1x1x4xf32, #tpu.memory_space<vmem>>, vector<1x1x4xf32>,
    %135 = vector.shape_cast %127 : vector<256x4xf32> to vector<1x16x16x4xf32>
    %136 = arith.truncf %135 : vector<1x16x16x4xf32> to vector<1x16x16x4xbf16>
    %c0_41 = arith.constant 0 : index
    %c0_42 = arith.constant 0 : index
    %c0_43 = arith.constant 0 : index
    %c0_44 = arith.constant 0 : index
    %137 = vector.load %arg5[%c0_41, %c0_42, %c0_43, %c0_44] : memref<1x16x16x4xbf16, #tpu.memory_space<vmem>>, vector<1x16x16x4xbf16>
    tpu.vector_store %arg5[%c0_41, %c0_42, %c0_43, %c0_44], %136 {strides = array<i32>} : memref<1x16x16x4xbf16, #tpu.memory_space<vmem>>, vector<1x16x16x4xbf16>,
    return
  }
  func.func @transform_0(%arg0: i32) -> (i32, i32, i32, i32) {
    %c0_i32 = arith.constant 0 : i32
    %c0_i32_0 = arith.constant 0 : i32
    %c0_i32_1 = arith.constant 0 : i32
    %c0_i32_2 = arith.constant 0 : i32
    return %arg0, %c0_i32, %c0_i32_0, %c0_i32_1 : i32, i32, i32, i32
  }
  func.func @transform_1(%arg0: i32) -> (i32, i32, i32, i32) {
    %c0_i32 = arith.constant 0 : i32
    %c0_i32_0 = arith.constant 0 : i32
    %c0_i32_1 = arith.constant 0 : i32
    %c0_i32_2 = arith.constant 0 : i32
    return %arg0, %c0_i32, %c0_i32_0, %c0_i32_1 : i32, i32, i32, i32
  }
  func.func @transform_2(%arg0: i32) -> (i32, i32, i32, i32) {
    %c0_i32 = arith.constant 0 : i32
    %c0_i32_0 = arith.constant 0 : i32
    %c0_i32_1 = arith.constant 0 : i32
    %c0_i32_2 = arith.constant 0 : i32
    %c0_i32_3 = arith.constant 0 : i32
    return %c0_i32, %c0_i32_0, %c0_i32_1, %c0_i32_2 : i32, i32, i32, i32
  }
  func.func @transform_3(%arg0: i32) -> (i32, i32, i32, i32) {
    %c0_i32 = arith.constant 0 : i32
    %c0_i32_0 = arith.constant 0 : i32
    %c0_i32_1 = arith.constant 0 : i32
    %c0_i32_2 = arith.constant 0 : i32
    %c0_i32_3 = arith.constant 0 : i32
    return %c0_i32, %c0_i32_0, %c0_i32_1, %c0_i32_2 : i32, i32, i32, i32
  }
  func.func @transform_4(%arg0: i32) -> (i32, i32, i32, i32) {
    %c0_i32 = arith.constant 0 : i32
    %c0_i32_0 = arith.constant 0 : i32
    %c0_i32_1 = arith.constant 0 : i32
    %c0_i32_2 = arith.constant 0 : i32
    return %arg0, %c0_i32, %c0_i32_0, %c0_i32_1 : i32, i32, i32, i32
  }
  func.func @transform_5(%arg0: i32) -> (i32, i32, i32) {
    %c0_i32 = arith.constant 0 : i32
    %c0_i32_0 = arith.constant 0 : i32
    %c0_i32_1 = arith.constant 0 : i32
    return %arg0, %c0_i32, %c0_i32_0 : i32, i32, i32
  }
  func.func @transform_6(%arg0: i32) -> (i32, i32, i32) {
    %c0_i32 = arith.constant 0 : i32
    %c0_i32_0 = arith.constant 0 : i32
    %c0_i32_1 = arith.constant 0 : i32
    return %arg0, %c0_i32, %c0_i32_0 : i32, i32, i32
  }
}

module attributes {stable_mosaic.version = 11 : i64} {
  func.func @_conv3x3_kernel(%arg0: i32, %arg1: memref<1x16x16x4xbf16, #tpu.memory_space<vmem>>, %arg2: memref<3x3x4x4xbf16, #tpu.memory_space<vmem>>, %arg3: memref<1x4xf32, #tpu.memory_space<vmem>>, %arg4: memref<1x4xf32, #tpu.memory_space<vmem>>, %arg5: memref<1x4x256xbf16, #tpu.memory_space<vmem>>, %arg6: memref<1x1x4xf32, #tpu.memory_space<vmem>>, %arg7: memref<1x1x4xf32, #tpu.memory_space<vmem>>) attributes {dimension_semantics = [#tpu.dimension_semantics<parallel>], iteration_bounds = array<i64: 2>, scalar_prefetch = 0 : i64, scratch_operands = 0 : i64, tpu.core_type = #tpu.core_type<tc>, window_params = [{transform_indices = @transform_0, window_bounds = array<i64: 1, 16, 16, 4>}, {pipeline_mode = #tpu.pipeline_mode<synchronous>, transform_indices = @transform_1, window_bounds = array<i64: 3, 3, 4, 4>}, {pipeline_mode = #tpu.pipeline_mode<synchronous>, transform_indices = @transform_2, window_bounds = array<i64: 1, 4>}, {pipeline_mode = #tpu.pipeline_mode<synchronous>, transform_indices = @transform_3, window_bounds = array<i64: 1, 4>}, {transform_indices = @transform_4, window_bounds = array<i64: 1, 4, 256>}, {transform_indices = @transform_5, window_bounds = array<i64: 1, 1, 4>}, {transform_indices = @transform_6, window_bounds = array<i64: 1, 1, 4>}]} {
    %cst = arith.constant 0.000000e+00 : f32
    %0 = vector.broadcast %cst : f32 to vector<4x256xf32>
    %c0 = arith.constant 0 : index
    %c0_0 = arith.constant 0 : index
    %c0_1 = arith.constant 0 : index
    %c0_2 = arith.constant 0 : index
    %1 = vector.load %arg1[%c0, %c0_0, %c0_1, %c0_2] : memref<1x16x16x4xbf16, #tpu.memory_space<vmem>>, vector<1x16x16x4xbf16>
    %2 = vector.shape_cast %1 : vector<1x16x16x4xbf16> to vector<16x16x4xbf16>
    %3 = arith.extf %2 : vector<16x16x4xbf16> to vector<16x16x4xf32>
    %c0_3 = arith.constant 0 : index
    %c0_4 = arith.constant 0 : index
    %4 = vector.load %arg3[%c0_3, %c0_4] : memref<1x4xf32, #tpu.memory_space<vmem>>, vector<1x4xf32>
    %5 = vector.shape_cast %4 : vector<1x4xf32> to vector<1x1x4xf32>
    %6 = vector.broadcast %5 : vector<1x1x4xf32> to vector<16x16x4xf32>
    %7 = arith.mulf %3, %6 : vector<16x16x4xf32>
    %c0_5 = arith.constant 0 : index
    %c0_6 = arith.constant 0 : index
    %8 = vector.load %arg4[%c0_5, %c0_6] : memref<1x4xf32, #tpu.memory_space<vmem>>, vector<1x4xf32>
    %9 = vector.shape_cast %8 : vector<1x4xf32> to vector<1x1x4xf32>
    %10 = vector.broadcast %9 : vector<1x1x4xf32> to vector<16x16x4xf32>
    %11 = arith.addf %7, %10 : vector<16x16x4xf32>
    %cst_7 = arith.constant 0.000000e+00 : f32
    %12 = vector.broadcast %cst_7 : f32 to vector<16x16x4xf32>
    %13 = arith.maximumf %11, %12 : vector<16x16x4xf32>
    %14 = arith.truncf %13 : vector<16x16x4xf32> to vector<16x16x4xbf16>
    %15 = vector.extract_strided_slice %14 {offsets = [1, 0, 0], sizes = [1, 16, 4], strides = [1, 1, 1]} : vector<16x16x4xbf16> to vector<1x16x4xbf16>
    %16 = vector.extract_strided_slice %14 {offsets = [14, 0, 0], sizes = [1, 16, 4], strides = [1, 1, 1]} : vector<16x16x4xbf16> to vector<1x16x4xbf16>
    %17 = tpu.concatenate %15, %14, %16 in 0 : vector<1x16x4xbf16>, vector<16x16x4xbf16>, vector<1x16x4xbf16> -> vector<18x16x4xbf16>
    %18 = vector.extract_strided_slice %17 {offsets = [0, 1, 0], sizes = [18, 1, 4], strides = [1, 1, 1]} : vector<18x16x4xbf16> to vector<18x1x4xbf16>
    %19 = vector.extract_strided_slice %17 {offsets = [0, 14, 0], sizes = [18, 1, 4], strides = [1, 1, 1]} : vector<18x16x4xbf16> to vector<18x1x4xbf16>
    %20 = tpu.concatenate %18, %17, %19 in 1 : vector<18x1x4xbf16>, vector<18x16x4xbf16>, vector<18x1x4xbf16> -> vector<18x18x4xbf16>
    %c0_8 = arith.constant 0 : index
    %c0_9 = arith.constant 0 : index
    %c0_10 = arith.constant 0 : index
    %c0_11 = arith.constant 0 : index
    %21 = vector.load %arg2[%c0_8, %c0_9, %c0_10, %c0_11] : memref<3x3x4x4xbf16, #tpu.memory_space<vmem>>, vector<3x3x4x4xbf16>
    %22 = vector.extract_strided_slice %20 {offsets = [0, 0, 0], sizes = [16, 16, 4], strides = [1, 1, 1]} : vector<18x18x4xbf16> to vector<16x16x4xbf16>
    %23 = vector.shape_cast %22 : vector<16x16x4xbf16> to vector<256x4xbf16>
    %24 = vector.extract_strided_slice %21 {offsets = [0, 0, 0, 0], sizes = [1, 1, 4, 4], strides = [1, 1, 1, 1]} : vector<3x3x4x4xbf16> to vector<1x1x4x4xbf16>
    %25 = vector.shape_cast %24 : vector<1x1x4x4xbf16> to vector<4x4xbf16>
    %cst_12 = arith.constant dense<0.000000e+00> : vector<4x256xf32>
    %26 = tpu.matmul %25, %23, %cst_12 {dimension_numbers = #tpu.dot_dimension_numbers<[1], [1], [0], [0], [0, 0, 1, 0], [], []>} : vector<4x4xbf16>, vector<256x4xbf16>, vector<4x256xf32> -> vector<4x256xf32>
    %27 = arith.addf %0, %26 : vector<4x256xf32>
    %28 = vector.extract_strided_slice %20 {offsets = [0, 1, 0], sizes = [16, 16, 4], strides = [1, 1, 1]} : vector<18x18x4xbf16> to vector<16x16x4xbf16>
    %29 = vector.shape_cast %28 : vector<16x16x4xbf16> to vector<256x4xbf16>
    %30 = vector.extract_strided_slice %21 {offsets = [0, 1, 0, 0], sizes = [1, 1, 4, 4], strides = [1, 1, 1, 1]} : vector<3x3x4x4xbf16> to vector<1x1x4x4xbf16>
    %31 = vector.shape_cast %30 : vector<1x1x4x4xbf16> to vector<4x4xbf16>
    %cst_13 = arith.constant dense<0.000000e+00> : vector<4x256xf32>
    %32 = tpu.matmul %31, %29, %cst_13 {dimension_numbers = #tpu.dot_dimension_numbers<[1], [1], [0], [0], [0, 0, 1, 0], [], []>} : vector<4x4xbf16>, vector<256x4xbf16>, vector<4x256xf32> -> vector<4x256xf32>
    %33 = arith.addf %27, %32 : vector<4x256xf32>
    %34 = vector.extract_strided_slice %20 {offsets = [0, 2, 0], sizes = [16, 16, 4], strides = [1, 1, 1]} : vector<18x18x4xbf16> to vector<16x16x4xbf16>
    %35 = vector.shape_cast %34 : vector<16x16x4xbf16> to vector<256x4xbf16>
    %36 = vector.extract_strided_slice %21 {offsets = [0, 2, 0, 0], sizes = [1, 1, 4, 4], strides = [1, 1, 1, 1]} : vector<3x3x4x4xbf16> to vector<1x1x4x4xbf16>
    %37 = vector.shape_cast %36 : vector<1x1x4x4xbf16> to vector<4x4xbf16>
    %cst_14 = arith.constant dense<0.000000e+00> : vector<4x256xf32>
    %38 = tpu.matmul %37, %35, %cst_14 {dimension_numbers = #tpu.dot_dimension_numbers<[1], [1], [0], [0], [0, 0, 1, 0], [], []>} : vector<4x4xbf16>, vector<256x4xbf16>, vector<4x256xf32> -> vector<4x256xf32>
    %39 = arith.addf %33, %38 : vector<4x256xf32>
    %40 = vector.extract_strided_slice %20 {offsets = [1, 0, 0], sizes = [16, 16, 4], strides = [1, 1, 1]} : vector<18x18x4xbf16> to vector<16x16x4xbf16>
    %41 = vector.shape_cast %40 : vector<16x16x4xbf16> to vector<256x4xbf16>
    %42 = vector.extract_strided_slice %21 {offsets = [1, 0, 0, 0], sizes = [1, 1, 4, 4], strides = [1, 1, 1, 1]} : vector<3x3x4x4xbf16> to vector<1x1x4x4xbf16>
    %43 = vector.shape_cast %42 : vector<1x1x4x4xbf16> to vector<4x4xbf16>
    %cst_15 = arith.constant dense<0.000000e+00> : vector<4x256xf32>
    %44 = tpu.matmul %43, %41, %cst_15 {dimension_numbers = #tpu.dot_dimension_numbers<[1], [1], [0], [0], [0, 0, 1, 0], [], []>} : vector<4x4xbf16>, vector<256x4xbf16>, vector<4x256xf32> -> vector<4x256xf32>
    %45 = arith.addf %39, %44 : vector<4x256xf32>
    %46 = vector.extract_strided_slice %20 {offsets = [1, 1, 0], sizes = [16, 16, 4], strides = [1, 1, 1]} : vector<18x18x4xbf16> to vector<16x16x4xbf16>
    %47 = vector.shape_cast %46 : vector<16x16x4xbf16> to vector<256x4xbf16>
    %48 = vector.extract_strided_slice %21 {offsets = [1, 1, 0, 0], sizes = [1, 1, 4, 4], strides = [1, 1, 1, 1]} : vector<3x3x4x4xbf16> to vector<1x1x4x4xbf16>
    %49 = vector.shape_cast %48 : vector<1x1x4x4xbf16> to vector<4x4xbf16>
    %cst_16 = arith.constant dense<0.000000e+00> : vector<4x256xf32>
    %50 = tpu.matmul %49, %47, %cst_16 {dimension_numbers = #tpu.dot_dimension_numbers<[1], [1], [0], [0], [0, 0, 1, 0], [], []>} : vector<4x4xbf16>, vector<256x4xbf16>, vector<4x256xf32> -> vector<4x256xf32>
    %51 = arith.addf %45, %50 : vector<4x256xf32>
    %52 = vector.extract_strided_slice %20 {offsets = [1, 2, 0], sizes = [16, 16, 4], strides = [1, 1, 1]} : vector<18x18x4xbf16> to vector<16x16x4xbf16>
    %53 = vector.shape_cast %52 : vector<16x16x4xbf16> to vector<256x4xbf16>
    %54 = vector.extract_strided_slice %21 {offsets = [1, 2, 0, 0], sizes = [1, 1, 4, 4], strides = [1, 1, 1, 1]} : vector<3x3x4x4xbf16> to vector<1x1x4x4xbf16>
    %55 = vector.shape_cast %54 : vector<1x1x4x4xbf16> to vector<4x4xbf16>
    %cst_17 = arith.constant dense<0.000000e+00> : vector<4x256xf32>
    %56 = tpu.matmul %55, %53, %cst_17 {dimension_numbers = #tpu.dot_dimension_numbers<[1], [1], [0], [0], [0, 0, 1, 0], [], []>} : vector<4x4xbf16>, vector<256x4xbf16>, vector<4x256xf32> -> vector<4x256xf32>
    %57 = arith.addf %51, %56 : vector<4x256xf32>
    %58 = vector.extract_strided_slice %20 {offsets = [2, 0, 0], sizes = [16, 16, 4], strides = [1, 1, 1]} : vector<18x18x4xbf16> to vector<16x16x4xbf16>
    %59 = vector.shape_cast %58 : vector<16x16x4xbf16> to vector<256x4xbf16>
    %60 = vector.extract_strided_slice %21 {offsets = [2, 0, 0, 0], sizes = [1, 1, 4, 4], strides = [1, 1, 1, 1]} : vector<3x3x4x4xbf16> to vector<1x1x4x4xbf16>
    %61 = vector.shape_cast %60 : vector<1x1x4x4xbf16> to vector<4x4xbf16>
    %cst_18 = arith.constant dense<0.000000e+00> : vector<4x256xf32>
    %62 = tpu.matmul %61, %59, %cst_18 {dimension_numbers = #tpu.dot_dimension_numbers<[1], [1], [0], [0], [0, 0, 1, 0], [], []>} : vector<4x4xbf16>, vector<256x4xbf16>, vector<4x256xf32> -> vector<4x256xf32>
    %63 = arith.addf %57, %62 : vector<4x256xf32>
    %64 = vector.extract_strided_slice %20 {offsets = [2, 1, 0], sizes = [16, 16, 4], strides = [1, 1, 1]} : vector<18x18x4xbf16> to vector<16x16x4xbf16>
    %65 = vector.shape_cast %64 : vector<16x16x4xbf16> to vector<256x4xbf16>
    %66 = vector.extract_strided_slice %21 {offsets = [2, 1, 0, 0], sizes = [1, 1, 4, 4], strides = [1, 1, 1, 1]} : vector<3x3x4x4xbf16> to vector<1x1x4x4xbf16>
    %67 = vector.shape_cast %66 : vector<1x1x4x4xbf16> to vector<4x4xbf16>
    %cst_19 = arith.constant dense<0.000000e+00> : vector<4x256xf32>
    %68 = tpu.matmul %67, %65, %cst_19 {dimension_numbers = #tpu.dot_dimension_numbers<[1], [1], [0], [0], [0, 0, 1, 0], [], []>} : vector<4x4xbf16>, vector<256x4xbf16>, vector<4x256xf32> -> vector<4x256xf32>
    %69 = arith.addf %63, %68 : vector<4x256xf32>
    %70 = vector.extract_strided_slice %20 {offsets = [2, 2, 0], sizes = [16, 16, 4], strides = [1, 1, 1]} : vector<18x18x4xbf16> to vector<16x16x4xbf16>
    %71 = vector.shape_cast %70 : vector<16x16x4xbf16> to vector<256x4xbf16>
    %72 = vector.extract_strided_slice %21 {offsets = [2, 2, 0, 0], sizes = [1, 1, 4, 4], strides = [1, 1, 1, 1]} : vector<3x3x4x4xbf16> to vector<1x1x4x4xbf16>
    %73 = vector.shape_cast %72 : vector<1x1x4x4xbf16> to vector<4x4xbf16>
    %cst_20 = arith.constant dense<0.000000e+00> : vector<4x256xf32>
    %74 = tpu.matmul %73, %71, %cst_20 {dimension_numbers = #tpu.dot_dimension_numbers<[1], [1], [0], [0], [0, 0, 1, 0], [], []>} : vector<4x4xbf16>, vector<256x4xbf16>, vector<4x256xf32> -> vector<4x256xf32>
    %75 = arith.addf %69, %74 : vector<4x256xf32>
    %cst_21 = arith.constant dense<0.000000e+00> : vector<4xf32>
    %76 = vector.multi_reduction <add>, %75, %cst_21 [1] : vector<4x256xf32> to vector<4xf32>
    %77 = vector.shape_cast %76 : vector<4xf32> to vector<1x1x4xf32>
    %c0_22 = arith.constant 0 : index
    %c0_23 = arith.constant 0 : index
    %c0_24 = arith.constant 0 : index
    %78 = vector.load %arg6[%c0_22, %c0_23, %c0_24] : memref<1x1x4xf32, #tpu.memory_space<vmem>>, vector<1x1x4xf32>
    tpu.vector_store %arg6[%c0_22, %c0_23, %c0_24], %77 {strides = array<i32>} : memref<1x1x4xf32, #tpu.memory_space<vmem>>, vector<1x1x4xf32>,
    %79 = arith.mulf %75, %75 : vector<4x256xf32>
    %cst_25 = arith.constant dense<0.000000e+00> : vector<4xf32>
    %80 = vector.multi_reduction <add>, %79, %cst_25 [1] : vector<4x256xf32> to vector<4xf32>
    %81 = vector.shape_cast %80 : vector<4xf32> to vector<1x1x4xf32>
    %c0_26 = arith.constant 0 : index
    %c0_27 = arith.constant 0 : index
    %c0_28 = arith.constant 0 : index
    %82 = vector.load %arg7[%c0_26, %c0_27, %c0_28] : memref<1x1x4xf32, #tpu.memory_space<vmem>>, vector<1x1x4xf32>
    tpu.vector_store %arg7[%c0_26, %c0_27, %c0_28], %81 {strides = array<i32>} : memref<1x1x4xf32, #tpu.memory_space<vmem>>, vector<1x1x4xf32>,
    %83 = vector.shape_cast %75 : vector<4x256xf32> to vector<1x4x256xf32>
    %84 = arith.truncf %83 : vector<1x4x256xf32> to vector<1x4x256xbf16>
    %c0_29 = arith.constant 0 : index
    %c0_30 = arith.constant 0 : index
    %c0_31 = arith.constant 0 : index
    %85 = vector.load %arg5[%c0_29, %c0_30, %c0_31] : memref<1x4x256xbf16, #tpu.memory_space<vmem>>, vector<1x4x256xbf16>
    tpu.vector_store %arg5[%c0_29, %c0_30, %c0_31], %84 {strides = array<i32>} : memref<1x4x256xbf16, #tpu.memory_space<vmem>>, vector<1x4x256xbf16>,
    return
  }
  func.func @transform_0(%arg0: i32) -> (i32, i32, i32, i32) {
    %c0_i32 = arith.constant 0 : i32
    %c0_i32_0 = arith.constant 0 : i32
    %c0_i32_1 = arith.constant 0 : i32
    %c0_i32_2 = arith.constant 0 : i32
    return %arg0, %c0_i32, %c0_i32_0, %c0_i32_1 : i32, i32, i32, i32
  }
  func.func @transform_1(%arg0: i32) -> (i32, i32, i32, i32) {
    %c0_i32 = arith.constant 0 : i32
    %c0_i32_0 = arith.constant 0 : i32
    %c0_i32_1 = arith.constant 0 : i32
    %c0_i32_2 = arith.constant 0 : i32
    %c0_i32_3 = arith.constant 0 : i32
    return %c0_i32, %c0_i32_0, %c0_i32_1, %c0_i32_2 : i32, i32, i32, i32
  }
  func.func @transform_2(%arg0: i32) -> (i32, i32) {
    %c0_i32 = arith.constant 0 : i32
    %c0_i32_0 = arith.constant 0 : i32
    %c0_i32_1 = arith.constant 0 : i32
    return %c0_i32, %c0_i32_0 : i32, i32
  }
  func.func @transform_3(%arg0: i32) -> (i32, i32) {
    %c0_i32 = arith.constant 0 : i32
    %c0_i32_0 = arith.constant 0 : i32
    %c0_i32_1 = arith.constant 0 : i32
    return %c0_i32, %c0_i32_0 : i32, i32
  }
  func.func @transform_4(%arg0: i32) -> (i32, i32, i32) {
    %c0_i32 = arith.constant 0 : i32
    %c0_i32_0 = arith.constant 0 : i32
    %c0_i32_1 = arith.constant 0 : i32
    return %arg0, %c0_i32, %c0_i32_0 : i32, i32, i32
  }
  func.func @transform_5(%arg0: i32) -> (i32, i32, i32) {
    %c0_i32 = arith.constant 0 : i32
    %c0_i32_0 = arith.constant 0 : i32
    %c0_i32_1 = arith.constant 0 : i32
    return %arg0, %c0_i32, %c0_i32_0 : i32, i32, i32
  }
  func.func @transform_6(%arg0: i32) -> (i32, i32, i32) {
    %c0_i32 = arith.constant 0 : i32
    %c0_i32_0 = arith.constant 0 : i32
    %c0_i32_1 = arith.constant 0 : i32
    return %arg0, %c0_i32, %c0_i32_0 : i32, i32, i32
  }
}

module attributes {stable_mosaic.version = 11 : i64} {
  func.func @_bn_relu_kernel(%arg0: i32, %arg1: memref<8x128xbf16, #tpu.memory_space<vmem>>, %arg2: memref<8x1xf32, #tpu.memory_space<vmem>>, %arg3: memref<8x1xf32, #tpu.memory_space<vmem>>, %arg4: memref<8x128xf32, #tpu.memory_space<vmem>>) attributes {dimension_semantics = [#tpu.dimension_semantics<parallel>], iteration_bounds = array<i64: 2>, scalar_prefetch = 0 : i64, scratch_operands = 0 : i64, tpu.core_type = #tpu.core_type<tc>, window_params = [{transform_indices = @transform_0, window_bounds = array<i64: 8, 128>}, {transform_indices = @transform_1, window_bounds = array<i64: 8, 1>}, {transform_indices = @transform_2, window_bounds = array<i64: 8, 1>}, {transform_indices = @transform_3, window_bounds = array<i64: 8, 128>}]} {
    %c0 = arith.constant 0 : index
    %c0_0 = arith.constant 0 : index
    %0 = vector.load %arg1[%c0, %c0_0] : memref<8x128xbf16, #tpu.memory_space<vmem>>, vector<8x128xbf16>
    %1 = arith.extf %0 : vector<8x128xbf16> to vector<8x128xf32>
    %c0_1 = arith.constant 0 : index
    %c0_2 = arith.constant 0 : index
    %2 = vector.load %arg2[%c0_1, %c0_2] : memref<8x1xf32, #tpu.memory_space<vmem>>, vector<8x1xf32>
    %3 = vector.broadcast %2 : vector<8x1xf32> to vector<8x128xf32>
    %4 = arith.mulf %1, %3 : vector<8x128xf32>
    %c0_3 = arith.constant 0 : index
    %c0_4 = arith.constant 0 : index
    %5 = vector.load %arg3[%c0_3, %c0_4] : memref<8x1xf32, #tpu.memory_space<vmem>>, vector<8x1xf32>
    %6 = vector.broadcast %5 : vector<8x1xf32> to vector<8x128xf32>
    %7 = arith.addf %4, %6 : vector<8x128xf32>
    %cst = arith.constant 0.000000e+00 : f32
    %8 = vector.broadcast %cst : f32 to vector<8x128xf32>
    %9 = arith.maximumf %7, %8 : vector<8x128xf32>
    %c0_5 = arith.constant 0 : index
    %c0_6 = arith.constant 0 : index
    %10 = vector.load %arg4[%c0_5, %c0_6] : memref<8x128xf32, #tpu.memory_space<vmem>>, vector<8x128xf32>
    tpu.vector_store %arg4[%c0_5, %c0_6], %9 {strides = array<i32>} : memref<8x128xf32, #tpu.memory_space<vmem>>, vector<8x128xf32>,
    return
  }
  func.func @transform_0(%arg0: i32) -> (i32, i32) {
    %c0_i32 = arith.constant 0 : i32
    %c0_i32_0 = arith.constant 0 : i32
    return %arg0, %c0_i32 : i32, i32
  }
  func.func @transform_1(%arg0: i32) -> (i32, i32) {
    %c0_i32 = arith.constant 0 : i32
    %c0_i32_0 = arith.constant 0 : i32
    return %arg0, %c0_i32 : i32, i32
  }
  func.func @transform_2(%arg0: i32) -> (i32, i32) {
    %c0_i32 = arith.constant 0 : i32
    %c0_i32_0 = arith.constant 0 : i32
    return %arg0, %c0_i32 : i32, i32
  }
  func.func @transform_3(%arg0: i32) -> (i32, i32) {
    %c0_i32 = arith.constant 0 : i32
    %c0_i32_0 = arith.constant 0 : i32
    return %arg0, %c0_i32 : i32, i32
  }
}

</mosaic_0001>

<bundles_post_ra>
// kernel: tile.18
= control target key start
LH: loop header
LB: loop body
LE: loop exit
PB: predicated region body
PF: predicated region fallthrough
CT: control target
= control target key end

     0   :  { %s22_s0 = inlined_call_operand.vmem [shape: f32[4], index: 0, kind: input, shape index: {}]   ;;  %s23_s1 = inlined_call_operand.vmem [shape: f32[4,4], index: 1, kind: output, shape index: {}]  }
   0x1   :  { %v4_v0 = vld [vmem:[%s22_s0] ss:$0 sm:$0xff] }
   0x2   :  { %5 = vst [vmem:[%s23_s1] sm:$0xf] %v4_v0 }

// kernel: tile.19
= control target key start
LH: loop header
LB: loop body
LE: loop exit
PB: predicated region body
PF: predicated region fallthrough
CT: control target
= control target key end

     0   :  { %vm7_vm0 = vcmask 31744   ;;  %s37_s8 = smov 4   ;;  %s38_s9 = smov 8   ;;  %vm13_vm1 = vcmask 130144   ;;  %vm19_vm2 = vcmask 97344   ;;  %vm25_vm3 = vcmask 64544   ;;  %s55_s0 = inlined_call_operand.vmem [shape: f32[4,4], index: 0, kind: input, shape index: {}]   ;;  %s56_s1 = inlined_call_operand.vmem [shape: f32[1,16], index: 1, kind: output, shape index: {}]  }
   0x1   :  { %v4_v0 = vld [vmem:[%s55_s0] sm:$0xf]  ;;  %s36_s0 = smov 12  }
   0x2   :  { %5 = vst [vmem:[#allocation1] sm:$0xf] %v4_v0 }
   0x9   :  { %v10_v1 = vld [vmem:[#allocation1 + $0x3] sm:$0x1]   ;;  %v22_v2 = vld [vmem:[#allocation1 + $0x1] sm:$0x1]   ;;  %v6_v3 = vld [vmem:[#allocation1] sm:$0x1]  }
   0xa   :  { %11 = vrot.lane.b32.xlu0 %v10_v1, %s36_s0  ;;  %23 = vrot.lane.b32.xlu1 %v22_v2, %s37_s8  ;;  %v16_v4 = vld [vmem:[#allocation1 + $0x2] sm:$0x1]   ;;  %8 = vst.msk [vmem:[#allocation0] sm:$0x1] %vm7_vm0, %v6_v3  }
   0xe   :  { %17 = vrot.lane.b32.xlu0 %v16_v4, %s38_s9 }
  0x7c   :  { %v12_v5 = vpop.permute.xlu0 %11   ;;  %v24_v6 = vpop.permute.xlu1 %23  }
  0x7d   :  { %14 = vst.msk [vmem:[#allocation0] sm:$0x1] %vm13_vm1, %v12_v5  }
  0x80   :  { %v18_v7 = vpop.permute.xlu0 %17  }
  0x81   :  { %20 = vst.msk [vmem:[#allocation0] sm:$0x1] %vm19_vm2, %v18_v7  }
  0x82   :  { %26 = vst.msk [vmem:[#allocation0] sm:$0x1] %vm25_vm3, %v24_v6  }
  0x89   :  { %v30_v8 = vld [vmem:[#allocation0] sm:$0x1] }
  0x8a   :  { %32 = vst [vmem:[%s56_s1] sm:$0x1] %v30_v8 }

// kernel: tile.23
= control target key start
LH: loop header
LB: loop body
LE: loop exit
PB: predicated region body
PF: predicated region fallthrough
CT: control target
= control target key end

     0   :  { %s22_s0 = inlined_call_operand.vmem [shape: f32[4], index: 0, kind: input, shape index: {}]   ;;  %s23_s1 = inlined_call_operand.vmem [shape: f32[2,4], index: 1, kind: output, shape index: {}]  }
   0x1   :  { %v4_v0 = vld [vmem:[%s22_s0] ss:$0 sm:$0xff] }
   0x2   :  { %5 = vst [vmem:[%s23_s1] sm:$0x3] %v4_v0 }

// kernel: tile.24
= control target key start
LH: loop header
LB: loop body
LE: loop exit
PB: predicated region body
PF: predicated region fallthrough
CT: control target
= control target key end

     0   :  { %vm7_vm0 = vcmask 31744   ;;  %vm13_vm1 = vcmask 64544   ;;  %s39_s0 = inlined_call_operand.vmem [shape: f32[2,4], index: 0, kind: input, shape index: {}]   ;;  %s40_s1 = inlined_call_operand.vmem [shape: f32[8], index: 1, kind: output, shape index: {}]  }
   0x1   :  { %v4_v0 = vld [vmem:[%s39_s0] sm:$0x3]  ;;  %s22_s0 = smov 4  }
   0x2   :  { %5 = vst [vmem:[#allocation1] sm:$0x3] %v4_v0 }
   0x9   :  { %v10_v1 = vld [vmem:[#allocation1 + $0x1] sm:$0x1]   ;;  %v6_v2 = vld [vmem:[#allocation1] sm:$0x1]  }
   0xa   :  { %11 = vrot.lane.b32.xlu0 %v10_v1, %s22_s0  ;;  %8 = vst.msk [vmem:[#allocation0] sm:$0x1] %vm7_vm0, %v6_v2  }
  0x7c   :  { %v12_v3 = vpop.permute.xlu0 %11  }
  0x7d   :  { %14 = vst.msk [vmem:[#allocation0] sm:$0x1] %vm13_vm1, %v12_v3  }
  0x84   :  { %v18_v4 = vld [vmem:[#allocation0] sm:$0x1] }
  0x85   :  { %20 = vst [vmem:[%s40_s1] sm:$0x1] %v18_v4 }

// kernel: upsample_forward.4
= control target key start
LH: loop header
LB: loop body
LE: loop exit
PB: predicated region body
PF: predicated region fallthrough
CT: control target
= control target key end

     0   :  { %s461_s12 = smov 0   ;;  %s492_s0 = inlined_call_operand.vmem [shape: f32[128,8], index: 0, kind: input, shape index: {}]   ;;  %s493_s1 = inlined_call_operand.vmem [shape: bf16[8,16], index: 1, kind: input, shape index: {}]   ;;  %s494_s2 = inlined_call_operand.vmem [shape: f32[1,16], index: 2, kind: input, shape index: {}]   ;;  %s495_s3 = inlined_call_operand.vmem [shape: bf16[128,16], index: 3, kind: output, shape index: {}]  }
   0x1 LB: > { %s374_s13 = sadd.s32 4294967295, %s439_s12   ;;  %p378_p0 = scmp.ge.s32.totalorder %s439_s12, 1  ;;  %s439_s12 = sphi %s461_s12, %s13_s12  }
   0x2   : > { %p138_p1 = scmp.lt.s32.totalorder %s439_s12, 3 }
   0x4   : > { %p139_p2 = pnand %p378_p0, %p138_p1 }
   0x5   : > { %v187_v0 = vld [vmem:[%s493_s1] sm:$0xf] (!%p139_p2)  ;;  %vm208_vm0 = vcmask (!%p139_p2), 1043456   ;;  %s379_s16 = sshll.u32 (!%p139_p2), %s374_s13, 3  ;;  %vm195_vm1 = vcmask (!%p139_p2), 64512   ;;  %vm309_vm2 = vcmask (!%p139_p2), 125952  }
   0x6   : > { %142 = sbr.rel (%p139_p2) target bundleno = 241 (0xf1), region = 32  ;;  %423 = vmatprep.subr.msk.bf16.mxu0 (!%p139_p2), %vm208_vm0, %v187_v0  ;;  %424 = vmatprep.subr.msk.bf16.mxu1 (!%p139_p2), %vm208_vm0, %v187_v0  ;;  %v210_v1 = vsel (!%p139_p2), %vm208_vm0, %v187_v0, 0  ;;  %p163_p3 = scmp.lt.s32.totalorder (!%p139_p2), %s379_s16, 15  ;;  %v383_v14 = vld [vmem:[%s494_s2] ss:$0 sm:$0xff] (!%p139_p2) }
   0x7   : > { %412 = vmatpush3.bf16.msra.mxu0 (!%p139_p2), %v210_v1  ;;  %422 = vmatpush3.bf16.msra.mxu1 (!%p139_p2), %v210_v1 }
   0xd   : > { %s497_s16 = smov (!%p163_p3, %s379_s16), 15 }
   0xe   : > { %s380_s17 = sshll.u32 %s497_s16, 3  ;;  %s382_s23 = sshll.u32 %s497_s16, 2 }
   0xf   : > { %s166_s20 = scalar_lea.vmem %s492_s0, %s380_s17  ;;  %s172_s26 = scalar_lea.vmem %s495_s3, %s382_s23 }
  0x10   : > { %v175_v2 = vld [vmem:[%s166_s20] sm:$0xff]  ;;  %v176_v3 = vld [vmem:[%s166_s20 + $0x8] sm:$0xff]  ;;  %v177_v7 = vld [vmem:[%s166_s20 + $0x10] sm:$0xff] }
  0x11   : > { %v179_v4 = vld [vmem:[%s166_s20 + $0x20] sm:$0xff]  ;;  %v183_v5 = vpack.c.bf16 %v176_v3, %v175_v2  ;;  %v180_v6 = vld [vmem:[%s166_s20 + $0x28] sm:$0xff]  ;;  %v178_v8 = vld [vmem:[%s166_s20 + $0x18] sm:$0xff] }
  0x12   : > { %v185_v9 = vpack.c.bf16 %v180_v6, %v179_v4  ;;  %v184_v10 = vpack.c.bf16 %v178_v8, %v177_v7  ;;  %v181_v11 = vld [vmem:[%s166_s20 + $0x30] sm:$0xff]  ;;  %v182_v12 = vld [vmem:[%s166_s20 + $0x38] sm:$0xff] }
  0x13   : > { %413 = vmatprep.mubr.msk.bf16.mxu0 %vm195_vm1, %v183_v5  ;;  %v186_v13 = vpack.c.bf16 %v182_v12, %v181_v11 }
  0x14   : > { %417 = vmatprep.mubr.msk.bf16.mxu1 %vm195_vm1, %v185_v9  ;;  %414 = vmatmul.mubr.msk.bf16.vlgmr.msra.gmra.mrb[0].mxu0 %vm195_vm1, %v184_v10 }
  0x15   : > { %418 = vmatmul.mubr.msk.bf16.vlgmr.msra.gmra.mrb[0].mxu1 %vm195_vm1, %v186_v13 }
  0xe7   : > { %v415_v15 = vpop.f32.mrb[0].mxu0 }
  0xe8   : > { %v255_v16 = vadd.f32 %v415_v15, %v383_v14  ;;  %v419_v17 = vpop.f32.mrb[0].mxu1  ;;  %v246_v18 = vpop.f32.mrb[1].mxu0 }
  0xe9   : > { %v271_v19 = vadd.f32 %v419_v17, %v383_v14  ;;  %v247_v20 = vadd.f32 %v383_v14, %v246_v18  ;;  %v262_v21 = vpop.f32.mrb[1].mxu1  ;;  %v416_v22 = vpop.f32.mrb[2].mxu0 }
  0xea   : > { %v400_v23 = vpack.c.bf16 %v255_v16, %v255_v16  ;;  %v263_v24 = vadd.f32 %v383_v14, %v262_v21  ;;  %v258_v25 = vadd.f32 %v416_v22, %v383_v14  ;;  %v420_v26 = vpop.f32.mrb[2].mxu1  ;;  %v249_v27 = vpop.f32.mrb[3].mxu0 }
  0xeb   : > { %v404_v28 = vpack.c.bf16 %v271_v19, %v271_v19  ;;  %v398_v29 = vpack.c.bf16 %v247_v20, %v247_v20  ;;  %v274_v30 = vadd.f32 %v420_v26, %v383_v14  ;;  %v250_v31 = vadd.f32 %v383_v14, %v249_v27  ;;  %v265_v32 = vpop.f32.mrb[3].mxu1 }
  0xec   : > { %312 = vst.msk [vmem:[%s172_s26 + $0x8] sm:$0xf] %vm309_vm2, %v400_v23  ;;  %v402_v33 = vpack.c.bf16 %v263_v24, %v263_v24  ;;  %v401_v34 = vpack.c.bf16 %v258_v25, %v258_v25  ;;  %v266_v35 = vadd.f32 %v383_v14, %v265_v32 }
  0xed   : > { %316 = vst.msk [vmem:[%s172_s26 + $0x18] sm:$0xf] %vm309_vm2, %v404_v28  ;;  %310 = vst.msk [vmem:[%s172_s26] sm:$0xf] %vm309_vm2, %v398_v29  ;;  %v405_v36 = vpack.c.bf16 %v274_v30, %v274_v30  ;;  %v399_v37 = vpack.c.bf16 %v250_v31, %v250_v31 }
  0xee   : > { %314 = vst.msk [vmem:[%s172_s26 + $0x10] sm:$0xf] %vm309_vm2, %v402_v33  ;;  %313 = vst.msk [vmem:[%s172_s26 + $0xc] sm:$0xf] %vm309_vm2, %v401_v34  ;;  %v403_v38 = vpack.c.bf16 %v266_v35, %v266_v35 }
  0xef   : > { %317 = vst.msk [vmem:[%s172_s26 + $0x1c] sm:$0xf] %vm309_vm2, %v405_v36  ;;  %311 = vst.msk [vmem:[%s172_s26 + $0x4] sm:$0xf] %vm309_vm2, %v399_v37 }
  0xf0   : > { %315 = vst.msk [vmem:[%s172_s26 + $0x14] sm:$0xf] %vm309_vm2, %v403_v38 }
  0xf1 PF: > { %s13_s12 = sadd.s32 1, %s439_s12  }
  0xf2   : > { %p10_p4 = scmp.ge.s32.totalorder %s13_s12, 4  }
  0xf4   :  { %12 = sbr.rel (!%p10_p4) target bundleno = 1 (0x1), region = 62 }

// kernel: upsample_forward.7
= control target key start
LH: loop header
LB: loop body
LE: loop exit
PB: predicated region body
PF: predicated region fallthrough
CT: control target
= control target key end

     0   :  { %s345_s12 = smov 0   ;;  %s368_s0 = inlined_call_operand.vmem [shape: bf16[16,128], index: 0, kind: input, shape index: {}]   ;;  %s369_s1 = inlined_call_operand.vmem [shape: f32[16,1], index: 1, kind: input, shape index: {}]   ;;  %s370_s2 = inlined_call_operand.vmem [shape: f32[16,1], index: 2, kind: input, shape index: {}]   ;;  %s371_s3 = inlined_call_operand.vmem [shape: f32[16,128], index: 3, kind: output, shape index: {}]  }
   0x1 LB: > { %s295_s13 = sadd.s32 4294967295, %s322_s12   ;;  %p299_p0 = scmp.ge.s32.totalorder %s322_s12, 1  ;;  %s322_s12 = sphi %s345_s12, %s13_s12  }
   0x2   : > { %p154_p1 = scmp.lt.s32.totalorder %s322_s12, 3 }
   0x4   : > { %p155_p2 = pnand %p299_p0, %p154_p1 }
   0x5   : > { %p184_p3 = scmp.lt.s32.totalorder (!%p155_p2), %s295_s13, 1  ;;  %v324_v0 = vmov (!%p155_p2), 0  }
   0x6   : > { %158 = sbr.rel (%p155_p2) target bundleno = 154 (0x9a), region = 32  ;;  %315 = vset.pattern.permute.xlu0 (!%p155_p2), %v324_v0 }
   0xd   : > { %s373_s13 = smov (!%p184_p3, %s295_s13), 1 }
   0xe   : > { %s301_s14 = sshll.u32 %s373_s13, 3  ;;  %s300_s21 = sshll.u32 %s373_s13, 2 }
   0xf   : > { %s191_s17 = scalar_lea.vmem %s369_s1, %s301_s14  ;;  %s195_s20 = scalar_lea.vmem %s370_s2, %s301_s14 }
  0x10   : > { %v202_v1 = vld [vmem:[%s191_s17] sm:$0xff]  ;;  %s187_s24 = scalar_lea.vmem %s368_s0, %s300_s21  ;;  %s199_s27 = scalar_lea.vmem %s371_s3, %s301_s14 }
  0x11   : > { %205 = vperm.xlu0 %315, %v202_v1   ;;  %v209_v2 = vld [vmem:[%s195_s20] sm:$0xff] }
  0x12   : > { %v200_v3 = vld [vmem:[%s187_s24] sm:$0xf] }
  0x13   : > { %v201_v4 = vunpack.c.l.bf16 %v200_v3 }
  0x15   : > { %212 = vperm.xlu0 %315, %v209_v2  }
  0x90   : > { %v206_v5 = vpop.permute.xlu0 %205 }
  0x91   : > { %v208_v6 = vmul.f32 %v206_v5, %v201_v4 }
  0x94   : > { %v213_v7 = vpop.permute.xlu0 %212 }
  0x95   : > { %v215_v8 = vadd.f32 %v213_v7, %v208_v6 }
  0x97   : > { %v216_v9 = vmax.f32 %v215_v8, 0.0 }
  0x99   : > { %217 = vst [vmem:[%s199_s27] sm:$0xff] %v216_v9 }
  0x9a PF: > { %s13_s12 = sadd.s32 1, %s322_s12  }
  0x9b   : > { %p10_p4 = scmp.ge.s32.totalorder %s13_s12, 4  }
  0x9d   :  { %12 = sbr.rel (!%p10_p4) target bundleno = 1 (0x1), region = 68 }

// kernel: upsample_forward.6
= control target key start
LH: loop header
LB: loop body
LE: loop exit
PB: predicated region body
PF: predicated region fallthrough
CT: control target
= control target key end

     0   :  { %s2078_s21 = smov 0   ;;  %s2849_s0 = inlined_call_operand.vmem [shape: bf16[2,16,16,4], index: 0, kind: input, shape index: {}]   ;;  %s2850_s1 = inlined_call_operand.vmem [shape: bf16[3,3,4,4], index: 1, kind: input, shape index: {}]   ;;  %s2851_s2 = inlined_call_operand.vmem [shape: f32[1,4], index: 2, kind: input, shape index: {}]   ;;  %s2852_s3 = inlined_call_operand.vmem [shape: f32[1,4], index: 3, kind: input, shape index: {}]   ;;  %s2853_s4 = inlined_call_operand.vmem [shape: bf16[2,4,256], index: 4, kind: output, shape index: {0}]   ;;  %s2854_s5 = inlined_call_operand.vmem [shape: f32[2,1,4], index: 5, kind: output, shape index: {1}]   ;;  %s2855_s6 = inlined_call_operand.vmem [shape: f32[2,1,4], index: 6, kind: output, shape index: {2}]  }
   0x1 LB: > { %s1658_s22 = sadd.s32 4294967295, %s2041_s21   ;;  %p1662_p0 = scmp.ge.s32.totalorder %s2041_s21, 1  ;;  %s2041_s21 = sphi %s2078_s21, %s17_s21  }
   0x2   : > { %p217_p1 = scmp.lt.s32.totalorder %s2041_s21, 3 }
   0x4   : > { %p218_p2 = pnand %p1662_p0, %p217_p1 }
   0x6   : > { %221 = sbr.rel (%p218_p2) target bundleno = 758 (0x2f6), region = 36 }
   0xd   : > { %p253_p3 = scmp.lt.s32.totalorder %s1658_s22, 1  ;;  %vm877_vm0 = vcmask 31744   ;;  %v2091_v0 = vld [vmem:[%s2850_s1 + $0x2] sm:$0x3]  ;;  %v2096_v1 = vld [vmem:[%s2850_s1 + $0x8] sm:$0x3] }
   0xe   : > { %1779 = vmatprep.mubr.msk.bf16.mxu1 %vm877_vm0, %v2091_v0  ;;  %1851 = vmatprep.mubr.msk.bf16.mxu0 %vm877_vm0, %v2096_v1  ;;  %v2111_v2 = vld [vmem:[%s2851_s2] ss:$0 sm:$0xff]  ;;  %vm652_vm1 = vcmask 1040384   ;;  %vm653_vm2 = vsmask.f32 256  ;;  %vm1071_vm5 = vcmask 1046528  }
   0xf   : > { %s2865_s22 = smov (!%p253_p3, %s1658_s22), 1  ;;  %v2120_v11 = vld [vmem:[%s2852_s3] ss:$0 sm:$0xff]  ;;  %vm696_vm3 = vsmask.f32 7424  ;;  %vm2149_vm4 = vmand %vm652_vm1, %vm653_vm2  ;;  %vm1509_vm6 = vcmask 1043456  }
  0x10   : > { %s1682_s27 = sshll.u32 %s2865_s22, 7  ;;  %s265_s9 = scalar_lea.vmem %s2854_s5, %s2865_s22  ;;  %vm1523_vm7 = vcmask 24576  }
  0x11   : > { %s2106_s30 = scalar_lea.vmem %s2849_s0, %s1682_s27  ;;  %s1683_s27 = sshll.u32 %s2865_s22, 2 }
  0x12   : > { %v1754_v3 = vld [vmem:[%s2106_s30 + $0x38] sm:$0xff]   ;;  %v1755_v4 = vld [vmem:[%s2106_s30 + $0x40] sm:$0xff]   ;;  %v1748_v5 = vld [vmem:[%s2106_s30 + $0x8] sm:$0xff]   ;;  %s268_s12 = scalar_lea.vmem %s2855_s6, %s2865_s22 }
  0x13   : > { %v1714_v6 = vunpack.c.l.bf16 %v1754_v3  ;;  %v1715_v7 = vunpack.c.h.bf16 %v1754_v3  ;;  %v1718_v8 = vunpack.c.l.bf16 %v1755_v4  ;;  %v1719_v9 = vunpack.c.h.bf16 %v1755_v4  ;;  %v1685_v10 = vld [vmem:[%s2106_s30] sm:$0xff]   ;;  %v2139_v32 = vld [vmem:[%s2106_s30 + $0x48] sm:$0xff]   ;;  %v2142_v37 = vld [vmem:[%s2106_s30 + $0x50] sm:$0xff]  }
  0x14   : > { %v1690_v12 = vunpack.c.l.bf16 %v1748_v5  ;;  %v1691_v13 = vunpack.c.h.bf16 %v1748_v5  ;;  %v1686_v14 = vunpack.c.l.bf16 %v1685_v10  ;;  %v1687_v15 = vunpack.c.h.bf16 %v1685_v10 }
  0x15   : > { %v355_v16 = vmul.f32 %v1714_v6, %v2111_v2  ;;  %v356_v17 = vmul.f32 %v1715_v7, %v2111_v2  ;;  %v357_v18 = vmul.f32 %v1718_v8, %v2111_v2  ;;  %v358_v19 = vmul.f32 %v1719_v9, %v2111_v2 }
  0x16   : > { %v343_v20 = vmul.f32 %v1690_v12, %v2111_v2  ;;  %v344_v21 = vmul.f32 %v1691_v13, %v2111_v2  ;;  %v341_v22 = vmul.f32 %v1686_v14, %v2111_v2  ;;  %v342_v23 = vmul.f32 %v1687_v15, %v2111_v2 }
  0x17   : > { %v394_v24 = vadd.f32 %v2120_v11, %v355_v16  ;;  %v395_v25 = vadd.f32 %v2120_v11, %v356_v17  ;;  %v396_v26 = vadd.f32 %v2120_v11, %v357_v18  ;;  %v397_v27 = vadd.f32 %v2120_v11, %v358_v19 }
  0x18   : > { %v382_v28 = vadd.f32 %v2120_v11, %v343_v20  ;;  %v383_v29 = vadd.f32 %v2120_v11, %v344_v21  ;;  %v380_v30 = vadd.f32 %v2120_v11, %v341_v22  ;;  %v381_v31 = vadd.f32 %v2120_v11, %v342_v23 }
  0x19   : > { %v426_v33 = vmax.f32 %v394_v24, 0.0  ;;  %v427_v34 = vmax.f32 %v395_v25, 0.0  ;;  %v428_v35 = vmax.f32 %v396_v26, 0.0  ;;  %v429_v36 = vmax.f32 %v397_v27, 0.0 }
  0x1a   : > { %v414_v38 = vmax.f32 %v382_v28, 0.0  ;;  %v415_v39 = vmax.f32 %v383_v29, 0.0  ;;  %v412_v40 = vmax.f32 %v380_v30, 0.0  ;;  %v413_v41 = vmax.f32 %v381_v31, 0.0 }
  0x1b   : > { %v451_v42 = vpack.c.bf16 %v427_v34, %v426_v33  ;;  %v452_v43 = vpack.c.bf16 %v429_v36, %v428_v35  ;;  %v1722_v44 = vunpack.c.l.bf16 %v2139_v32  ;;  %v1723_v47 = vunpack.c.h.bf16 %v2139_v32 }
  0x1c   : > { %v445_v45 = vpack.c.bf16 %v415_v39, %v414_v38  ;;  %v444_v46 = vpack.c.bf16 %v413_v41, %v412_v40  ;;  %v1726_v48 = vunpack.c.l.bf16 %v2142_v37  ;;  %v1727_v4 = vunpack.c.h.bf16 %v2142_v37 }
  0x1d   : > { %v482_v49 = vshrl.u32 %v451_v42, 16  ;;  %v553_v50 = vshll.u32 %v451_v42, 16  ;;  %v485_v51 = vshrl.u32 %v452_v43, 16  ;;  %v557_v52 = vshll.u32 %v452_v43, 16 }
  0x1e   : > { %v461_v53 = vshrl.u32 %v445_v45, 16  ;;  %v525_v54 = vshll.u32 %v445_v45, 16  ;;  %v464_v55 = vshrl.u32 %v444_v46, 16  ;;  %v529_v56 = vshll.u32 %v444_v46, 16 }
  0x1f   : > { %v552_v57 = vrot.slane %v482_v49, 7  ;;  %v627_v58 = vrot.slane %v553_v50, 7  ;;  %v556_v59 = vrot.slane %v485_v51, 7  ;;  %v628_v60 = vrot.slane %v557_v52, 7 }
  0x20   : > { %v524_v62 = vrot.slane %v461_v53, 7  ;;  %v620_v63 = vrot.slane %v525_v54, 7  ;;  %v528_v3 = vrot.slane %v464_v55, 7  ;;  %v621_v13 = vrot.slane %v529_v56, 7 }
  0x21   : > { %v555_v5 = vor.u32 %v553_v50, %v552_v57  ;;  %v2156_v6 = vsel %vm2149_vm4, %v552_v57, %v627_v58  ;;  %v559_v7 = vor.u32 %v557_v52, %v556_v59  ;;  %v2160_v8 = vsel %vm2149_vm4, %v556_v59, %v628_v60 }
  0x22   : > { %v789_v9 = vshll.u32 %v2156_v6, 16  ;;  %v801_v10 = vshll.u32 %v2160_v8, 16  ;;  %v527_v12 = vor.u32 %v525_v54, %v524_v62  ;;  %v2174_v16 = vsel %vm2149_vm4, %v524_v62, %v620_v63 }
  0x23   : > { %v2166_v14 = vsel %vm2149_vm4, %v482_v49, %v555_v5  ;;  %v2170_v15 = vsel %vm2149_vm4, %v485_v51, %v559_v7  ;;  %v531_v17 = vor.u32 %v529_v56, %v528_v3  ;;  %v705_v25 = vshll.u32 %v2174_v16, 16  ;;  %v1749_v49 = vld [vmem:[%s2106_s30 + $0x10] sm:$0xff]   ;;  %v1750_v7 = vld [vmem:[%s2106_s30 + $0x18] sm:$0xff]  }
  0x24   : > { %v782_v18 = vshrl.u32 %v2166_v14, 16  ;;  %v784_v19 = vshll.u32 %v2166_v14, 16  ;;  %v791_v20 = vrot.slane %v789_v9, 1  ;;  %v794_v21 = vshrl.u32 %v2170_v15, 16 }
  0x25   : > { %v796_v22 = vshll.u32 %v2170_v15, 16  ;;  %v803_v23 = vrot.slane %v801_v10, 1  ;;  %v2182_v24 = vsel %vm2149_vm4, %v461_v53, %v527_v12  ;;  %v2189_v29 = vsel %vm2149_vm4, %v464_v55, %v531_v17  ;;  %v1758_v55 = vld [vmem:[%s2106_s30 + $0x58] sm:$0xff]  }
  0x26   : > { %v786_v26 = vrot.slane %v784_v19, 1  ;;  %v698_v27 = vshrl.u32 %v2182_v24, 16  ;;  %v700_v28 = vshll.u32 %v2182_v24, 16  ;;  %v707_v31 = vrot.slane %v705_v25, 1 }
  0x27   : > { %v798_v30 = vrot.slane %v796_v22, 1  ;;  %v2193_v32 = vsel %vm2149_vm4, %v528_v3, %v621_v13  ;;  %v710_v33 = vshrl.u32 %v2189_v29, 16  ;;  %v712_v36 = vshll.u32 %v2189_v29, 16 }
  0x28   : > { %v787_v34 = vor.u32 %v786_v26, %v782_v18  ;;  %v702_v35 = vrot.slane %v700_v28, 1  ;;  %v717_v38 = vshll.u32 %v2193_v32, 16  ;;  %v359_v40 = vmul.f32 %v1722_v44, %v2111_v2 }
  0x29   : > { %v799_v39 = vor.u32 %v798_v30, %v794_v21  ;;  %v360_v41 = vmul.f32 %v1723_v47, %v2111_v2  ;;  %v714_v45 = vrot.slane %v712_v36, 1  ;;  %v361_v53 = vmul.f32 %v1726_v48, %v2111_v2 }
  0x2a   : > { %v2201_v42 = vsel %vm696_vm3, %v787_v34, %v791_v20  ;;  %v703_v43 = vor.u32 %v702_v35, %v698_v27  ;;  %v719_v46 = vrot.slane %v717_v38, 1  ;;  %v398_v51 = vadd.f32 %v2120_v11, %v359_v40 }
  0x2b   : > { %1955 = vmatprep.subr.msk.bf16.mxu1 %vm877_vm0, %v2201_v42  ;;  %v2207_v50 = vsel %vm696_vm3, %v799_v39, %v803_v23  ;;  %v399_v44 = vadd.f32 %v2120_v11, %v360_v41  ;;  %v715_v52 = vor.u32 %v714_v45, %v710_v33  ;;  %v362_v54 = vmul.f32 %v1727_v4, %v2111_v2 }
  0x2c   : > { %2860 = vst [vmem:[#allocation2_spill] sm:$0xff] %v2207_v50  ;;  %1987 = vmatprep.subr.msk.bf16.mxu0 %vm877_vm0, %v2207_v50  ;;  %v708_v47 = vsel %vm696_vm3, %v703_v43, %v707_v31  ;;  %v430_v57 = vmax.f32 %v398_v51, 0.0  ;;  %v1694_v59 = vunpack.c.l.bf16 %v1749_v49  ;;  %v400_v62 = vadd.f32 %v2120_v11, %v361_v53 }
  0x2d   : > { %v2220_v56 = vsel %vm877_vm0, %v708_v47, 0  ;;  %v431_v58 = vmax.f32 %v399_v44, 0.0  ;;  %v720_v60 = vsel %vm696_vm3, %v715_v52, %v719_v46  ;;  %v401_v63 = vadd.f32 %v2120_v11, %v362_v54 }
  0x2e   : > { %1764 = vmatpush3.bf16.xpose.msra.mxu1 %v2220_v56  ;;  %v1695_v37 = vunpack.c.h.bf16 %v1749_v49  ;;  %v885_v48 = vsel %vm877_vm0, %v720_v60, 0  ;;  %v345_v4 = vmul.f32 %v1694_v59, %v2111_v2  ;;  %v1730_v5 = vunpack.c.l.bf16 %v1758_v55 }
  0x2f   : > { %1956 = vmatprep.subr.msk.bf16.mxu1 %vm877_vm0, %v2207_v50  ;;  %v453_v3 = vpack.c.bf16 %v431_v58, %v430_v57  ;;  %1836 = vmatpush3.bf16.xpose.msra.mxu0 %v885_v48  ;;  %v432_v9 = vmax.f32 %v400_v62, 0.0  ;;  %v433_v10 = vmax.f32 %v401_v63, 0.0  ;;  %v1731_v13 = vunpack.c.h.bf16 %v1758_v55 }
  0x30   : > { %v346_v12 = vmul.f32 %v1695_v37, %v2111_v2  ;;  %v384_v19 = vadd.f32 %v2120_v11, %v345_v4  ;;  %v363_v20 = vmul.f32 %v1730_v5, %v2111_v2  ;;  %v1698_v25 = vunpack.c.l.bf16 %v1750_v7 }
  0x31   : > { %v488_v17 = vshrl.u32 %v453_v3, 16  ;;  %v561_v18 = vshll.u32 %v453_v3, 16  ;;  %v454_v21 = vpack.c.bf16 %v433_v10, %v432_v9  ;;  %v364_v23 = vmul.f32 %v1731_v13, %v2111_v2 }
  0x32   : > { %v385_v22 = vadd.f32 %v2120_v11, %v346_v12  ;;  %v416_v28 = vmax.f32 %v384_v19, 0.0  ;;  %v402_v30 = vadd.f32 %v2120_v11, %v363_v20  ;;  %v1699_v40 = vunpack.c.h.bf16 %v1750_v7 }
  0x33   : > { %v560_v26 = vrot.slane %v488_v17, 7  ;;  %v629_v27 = vrot.slane %v561_v18, 7  ;;  %v491_v31 = vshrl.u32 %v454_v21, 16  ;;  %v565_v33 = vshll.u32 %v454_v21, 16 }
  0x34   : > { %v417_v34 = vmax.f32 %v385_v22, 0.0  ;;  %v403_v35 = vadd.f32 %v2120_v11, %v364_v23  ;;  %v434_v39 = vmax.f32 %v402_v30, 0.0  ;;  %v347_v44 = vmul.f32 %v1698_v25, %v2111_v2 }
  0x35   : > { %v563_v36 = vor.u32 %v561_v18, %v560_v26  ;;  %v2240_v38 = vsel %vm2149_vm4, %v560_v26, %v629_v27  ;;  %v564_v43 = vrot.slane %v491_v31, 7  ;;  %v630_v45 = vrot.slane %v565_v33, 7  ;;  %v1759_v26 = vld [vmem:[%s2106_s30 + $0x60] sm:$0xff]  }
  0x36   : > { %v813_v41 = vshll.u32 %v2240_v38, 16  ;;  %1766 = vmatpush3.bf16.xpose.msra.mxu1 %v885_v48  ;;  %v446_v46 = vpack.c.bf16 %v417_v34, %v416_v28  ;;  %v435_v51 = vmax.f32 %v403_v35, 0.0  ;;  %v348_v47 = vmul.f32 %v1699_v40, %v2111_v2 }
  0x37   : > { %v2245_v49 = vsel %vm2149_vm4, %v488_v17, %v563_v36  ;;  %v567_v55 = vor.u32 %v565_v33, %v564_v43  ;;  %v2253_v57 = vsel %vm2149_vm4, %v564_v43, %v630_v45  ;;  %v386_v48 = vadd.f32 %v2120_v11, %v347_v44 }
  0x38   : > { %v806_v52 = vshrl.u32 %v2245_v49, 16  ;;  %v808_v53 = vshll.u32 %v2245_v49, 16  ;;  %v815_v54 = vrot.slane %v813_v41, 1  ;;  %v467_v58 = vshrl.u32 %v446_v46, 16 }
  0x39   : > { %v533_v59 = vshll.u32 %v446_v46, 16  ;;  %v455_v60 = vpack.c.bf16 %v435_v51, %v434_v39  ;;  %v2257_v63 = vsel %vm2149_vm4, %v491_v31, %v567_v55  ;;  %v825_v37 = vshll.u32 %v2253_v57, 16 }
  0x3a   : > { %v810_v62 = vrot.slane %v808_v53, 1  ;;  %v818_v3 = vshrl.u32 %v2257_v63, 16  ;;  %v820_v4 = vshll.u32 %v2257_v63, 16  ;;  %v532_v5 = vrot.slane %v467_v58, 7 }
  0x3b   : > { %v622_v7 = vrot.slane %v533_v59, 7  ;;  %v827_v10 = vrot.slane %v825_v37, 1  ;;  %v494_v12 = vshrl.u32 %v455_v60, 16  ;;  %v569_v13 = vshll.u32 %v455_v60, 16 }
  0x3c   : > { %v811_v9 = vor.u32 %v810_v62, %v806_v52  ;;  %v822_v17 = vrot.slane %v820_v4, 1  ;;  %v535_v18 = vor.u32 %v533_v59, %v532_v5  ;;  %v387_v20 = vadd.f32 %v2120_v11, %v348_v47  ;;  %v1751_v47 = vld [vmem:[%s2106_s30 + $0x20] sm:$0xff]  }
  0x3d   : > { %v2265_v19 = vsel %vm2149_vm4, %v532_v5, %v622_v7  ;;  %v568_v23 = vrot.slane %v494_v12, 7  ;;  %v631_v25 = vrot.slane %v569_v13, 7  ;;  %v418_v30 = vmax.f32 %v386_v48, 0.0 }
  0x3e   : > { %v2269_v21 = vsel %vm696_vm3, %v811_v9, %v815_v54  ;;  %v729_v22 = vshll.u32 %v2265_v19, 16  ;;  %v823_v27 = vor.u32 %v822_v17, %v818_v3  ;;  %v2279_v28 = vsel %vm2149_vm4, %v467_v58, %v535_v18 }
  0x3f   : > { %1988 = vmatprep.subr.msk.bf16.mxu0 %vm877_vm0, %v2269_v21  ;;  %1957 = vmatprep.subr.msk.bf16.mxu1 %vm877_vm0, %v2269_v21  ;;  %v419_v31 = vmax.f32 %v387_v20, 0.0  ;;  %v722_v33 = vshrl.u32 %v2279_v28, 16  ;;  %v724_v34 = vshll.u32 %v2279_v28, 16  ;;  %v571_v36 = vor.u32 %v569_v13, %v568_v23 }
  0x40   : > { %1838 = vmatpush3.bf16.xpose.msra.mxu0 %v2220_v56  ;;  %1768 = vmatpush3.bf16.xpose.msra.mxu1 %v2220_v56  ;;  %v731_v35 = vrot.slane %v729_v22, 1  ;;  %v2286_v39 = vsel %vm696_vm3, %v823_v27, %v827_v10  ;;  %v2290_v40 = vsel %vm2149_vm4, %v568_v23, %v631_v25  ;;  %v1734_v43 = vunpack.c.l.bf16 %v1759_v26 }
  0x41   : > { %v447_v41 = vpack.c.bf16 %v419_v31, %v418_v30  ;;  %1989 = vmatprep.subr.msk.bf16.mxu0 %vm877_vm0, %v2286_v39  ;;  %v726_v45 = vrot.slane %v724_v34, 1  ;;  %1958 = vmatprep.subr.msk.bf16.mxu1 %vm877_vm0, %v2286_v39  ;;  %v2298_v46 = vsel %vm2149_vm4, %v494_v12, %v571_v36  ;;  %v837_v51 = vshll.u32 %v2290_v40, 16  ;;  %v1760_v12 = vld [vmem:[%s2106_s30 + $0x68] sm:$0xff]  }
  0x42   : > { %v1735_v44 = vunpack.c.h.bf16 %v1759_v26  ;;  %v830_v52 = vshrl.u32 %v2298_v46, 16  ;;  %v832_v53 = vshll.u32 %v2298_v46, 16  ;;  %v365_v60 = vmul.f32 %v1734_v43, %v2111_v2  ;;  %v1752_v34 = vld [vmem:[%s2106_s30 + $0x28] sm:$0xff]  }
  0x43   : > { %v470_v54 = vshrl.u32 %v447_v41, 16  ;;  %v537_v55 = vshll.u32 %v447_v41, 16  ;;  %v727_v58 = vor.u32 %v726_v45, %v722_v33  ;;  %v839_v59 = vrot.slane %v837_v51, 1 }
  0x44   : > { %v366_v62 = vmul.f32 %v1735_v44, %v2111_v2  ;;  %v834_v37 = vrot.slane %v832_v53, 1  ;;  %v1702_v4 = vunpack.c.l.bf16 %v1751_v47  ;;  %v404_v7 = vadd.f32 %v2120_v11, %v365_v60 }
  0x45   : > { %v536_v48 = vrot.slane %v470_v54, 7  ;;  %v623_v3 = vrot.slane %v537_v55, 7  ;;  %v732_v5 = vsel %vm696_vm3, %v727_v58, %v731_v35  ;;  %v1703_v10 = vunpack.c.h.bf16 %v1751_v47 }
  0x46   : > { %v405_v9 = vadd.f32 %v2120_v11, %v366_v62  ;;  %v2311_v13 = vsel %vm877_vm0, %v732_v5, 0  ;;  %v835_v17 = vor.u32 %v834_v37, %v830_v52  ;;  %v436_v23 = vmax.f32 %v404_v7, 0.0 }
  0x47   : > { %v539_v18 = vor.u32 %v537_v55, %v536_v48  ;;  %v2315_v20 = vsel %vm2149_vm4, %v536_v48, %v623_v3  ;;  %v349_v26 = vmul.f32 %v1702_v4, %v2111_v2  ;;  %v350_v31 = vmul.f32 %v1703_v10, %v2111_v2 }
  0x48   : > { %1840 = vmatpush3.bf16.xpose.msra.mxu0 %v2311_v13  ;;  %1770 = vmatpush3.bf16.xpose.msra.mxu1 %v2311_v13  ;;  %v741_v22 = vshll.u32 %v2315_v20, 16  ;;  %v437_v25 = vmax.f32 %v405_v9, 0.0  ;;  %v2322_v27 = vsel %vm696_vm3, %v835_v17, %v839_v59  ;;  %v1738_v33 = vunpack.c.l.bf16 %v1760_v12 }
  0x49   : > { %v2326_v30 = vsel %vm2149_vm4, %v470_v54, %v539_v18  ;;  %1990 = vmatprep.subr.msk.bf16.mxu0 %vm877_vm0, %v2322_v27  ;;  %1959 = vmatprep.subr.msk.bf16.mxu1 %vm877_vm0, %v2322_v27  ;;  %v388_v45 = vadd.f32 %v2120_v11, %v349_v26  ;;  %v389_v51 = vadd.f32 %v2120_v11, %v350_v31  ;;  %v1739_v44 = vunpack.c.h.bf16 %v1760_v12 }
  0x4a   : > { %v734_v35 = vshrl.u32 %v2326_v30, 16  ;;  %v736_v36 = vshll.u32 %v2326_v30, 16  ;;  %v743_v41 = vrot.slane %v741_v22, 1  ;;  %v456_v43 = vpack.c.bf16 %v437_v25, %v436_v23 }
  0x4b   : > { %v367_v47 = vmul.f32 %v1738_v33, %v2111_v2  ;;  %v1706_v55 = vunpack.c.l.bf16 %v1752_v34  ;;  %v420_v58 = vmax.f32 %v388_v45, 0.0  ;;  %v421_v59 = vmax.f32 %v389_v51, 0.0 }
  0x4c   : > { %v738_v52 = vrot.slane %v736_v36, 1  ;;  %v497_v53 = vshrl.u32 %v456_v43, 16  ;;  %v573_v54 = vshll.u32 %v456_v43, 16  ;;  %v368_v60 = vmul.f32 %v1739_v44, %v2111_v2 }
  0x4d   : > { %v406_v62 = vadd.f32 %v2120_v11, %v367_v47  ;;  %v1707_v4 = vunpack.c.h.bf16 %v1752_v34  ;;  %v448_v5 = vpack.c.bf16 %v421_v59, %v420_v58  ;;  %v351_v10 = vmul.f32 %v1706_v55, %v2111_v2 }
  0x4e   : > { %v739_v37 = vor.u32 %v738_v52, %v734_v35  ;;  %v572_v48 = vrot.slane %v497_v53, 7  ;;  %v632_v3 = vrot.slane %v573_v54, 7  ;;  %v407_v7 = vadd.f32 %v2120_v11, %v368_v60 }
  0x4f   : > { %v438_v9 = vmax.f32 %v406_v62, 0.0  ;;  %v352_v22 = vmul.f32 %v1707_v4, %v2111_v2  ;;  %v473_v26 = vshrl.u32 %v448_v5, 16  ;;  %v541_v31 = vshll.u32 %v448_v5, 16 }
  0x50   : > { %v744_v12 = vsel %vm696_vm3, %v739_v37, %v743_v41  ;;  %v575_v17 = vor.u32 %v573_v54, %v572_v48  ;;  %v2346_v18 = vsel %vm2149_vm4, %v572_v48, %v632_v3  ;;  %v439_v34 = vmax.f32 %v407_v7, 0.0  ;;  %v1761_v41 = vld [vmem:[%s2106_s30 + $0x70] sm:$0xff]  }
  0x51   : > { %v2350_v23 = vsel %vm877_vm0, %v744_v12, 0  ;;  %v849_v25 = vshll.u32 %v2346_v18, 16  ;;  %v390_v35 = vadd.f32 %v2120_v11, %v351_v10  ;;  %v391_v36 = vadd.f32 %v2120_v11, %v352_v22 }
  0x52   : > { %1842 = vmatpush3.bf16.xpose.msra.mxu0 %v2350_v23  ;;  %v2356_v33 = vsel %vm2149_vm4, %v497_v53, %v575_v17  ;;  %1772 = vmatpush3.bf16.xpose.msra.mxu1 %v2350_v23  ;;  %v540_v44 = vrot.slane %v473_v26, 7  ;;  %v624_v47 = vrot.slane %v541_v31, 7  ;;  %v457_v52 = vpack.c.bf16 %v439_v34, %v438_v9 }
  0x53   : > { %v842_v43 = vshrl.u32 %v2356_v33, 16  ;;  %v844_v45 = vshll.u32 %v2356_v33, 16  ;;  %v851_v51 = vrot.slane %v849_v25, 1  ;;  %v422_v54 = vmax.f32 %v390_v35, 0.0 }
  0x54   : > { %v423_v55 = vmax.f32 %v391_v36, 0.0  ;;  %v543_v58 = vor.u32 %v541_v31, %v540_v44  ;;  %v1742_v59 = vunpack.c.l.bf16 %v1761_v41  ;;  %v1743_v60 = vunpack.c.h.bf16 %v1761_v41  ;;  %v1753_v36 = vld [vmem:[%s2106_s30 + $0x30] sm:$0xff]  }
  0x55   : > { %v846_v53 = vrot.slane %v844_v45, 1  ;;  %v2366_v62 = vsel %vm2149_vm4, %v540_v44, %v624_v47  ;;  %v500_v37 = vshrl.u32 %v457_v52, 16  ;;  %v577_v48 = vshll.u32 %v457_v52, 16 }
  0x56   : > { %v449_v3 = vpack.c.bf16 %v423_v55, %v422_v54  ;;  %v2370_v5 = vsel %vm2149_vm4, %v473_v26, %v543_v58  ;;  %v753_v7 = vshll.u32 %v2366_v62, 16  ;;  %v369_v9 = vmul.f32 %v1742_v59, %v2111_v2 }
  0x57   : > { %v847_v4 = vor.u32 %v846_v53, %v842_v43  ;;  %v746_v10 = vshrl.u32 %v2370_v5, 16  ;;  %v748_v12 = vshll.u32 %v2370_v5, 16  ;;  %v576_v17 = vrot.slane %v500_v37, 7 }
  0x58   : > { %v633_v22 = vrot.slane %v577_v48, 7  ;;  %v755_v31 = vrot.slane %v753_v7, 1  ;;  %v476_v34 = vshrl.u32 %v449_v3, 16  ;;  %v545_v35 = vshll.u32 %v449_v3, 16 }
  0x59   : > { %v2377_v25 = vsel %vm696_vm3, %v847_v4, %v851_v51  ;;  %v750_v26 = vrot.slane %v748_v12, 1  ;;  %v579_v41 = vor.u32 %v577_v48, %v576_v17  ;;  %v370_v45 = vmul.f32 %v1743_v60, %v2111_v2  ;;  %v1762_v12 = vld [vmem:[%s2106_s30 + $0x78] sm:$0xff]   ;;  %s262_s30 = scalar_lea.vmem %s2853_s4, %s1683_s27 }
  0x5a   : > { %1991 = vmatprep.subr.msk.bf16.mxu0 %vm877_vm0, %v2377_v25  ;;  %1960 = vmatprep.subr.msk.bf16.mxu1 %vm877_vm0, %v2377_v25  ;;  %v2386_v43 = vsel %vm2149_vm4, %v576_v17, %v633_v22  ;;  %v544_v44 = vrot.slane %v476_v34, 7  ;;  %v625_v47 = vrot.slane %v545_v35, 7  ;;  %v408_v52 = vadd.f32 %v2120_v11, %v369_v9 }
  0x5b   : > { %v861_v51 = vshll.u32 %v2386_v43, 16  ;;  %v751_v54 = vor.u32 %v750_v26, %v746_v10  ;;  %v2393_v55 = vsel %vm2149_vm4, %v500_v37, %v579_v41  ;;  %v409_v53 = vadd.f32 %v2120_v11, %v370_v45 }
  0x5c   : > { %v1710_v58 = vunpack.c.l.bf16 %v1753_v36  ;;  %v854_v59 = vshrl.u32 %v2393_v55, 16  ;;  %v856_v48 = vshll.u32 %v2393_v55, 16  ;;  %v547_v3 = vor.u32 %v545_v35, %v544_v44 }
  0x5d   : > { %v863_v60 = vrot.slane %v861_v51, 1  ;;  %v756_v4 = vsel %vm696_vm3, %v751_v54, %v755_v31  ;;  %v2401_v7 = vsel %vm2149_vm4, %v544_v44, %v625_v47  ;;  %v440_v9 = vmax.f32 %v408_v52, 0.0 }
  0x5e   : > { %v441_v10 = vmax.f32 %v409_v53, 0.0  ;;  %v2405_v37 = vsel %vm877_vm0, %v756_v4, 0  ;;  %v858_v17 = vrot.slane %v856_v48, 1  ;;  %v2409_v22 = vsel %vm2149_vm4, %v476_v34, %v547_v3 }
  0x5f   : > { %2861 = vst [vmem:[#allocation3_spill] sm:$0xff] %v2405_v37  ;;  %v765_v26 = vshll.u32 %v2401_v7, 16  ;;  %1844 = vmatpush3.bf16.xpose.msra.mxu0 %v2405_v37  ;;  %1774 = vmatpush3.bf16.xpose.msra.mxu1 %v2405_v37  ;;  %v758_v31 = vshrl.u32 %v2409_v22, 16  ;;  %v760_v35 = vshll.u32 %v2409_v22, 16  ;;  %v1711_v45 = vunpack.c.h.bf16 %v1753_v36 }
  0x60   : > { %v458_v41 = vpack.c.bf16 %v441_v10, %v440_v9  ;;  %v859_v51 = vor.u32 %v858_v17, %v854_v59  ;;  %v353_v47 = vmul.f32 %v1710_v58, %v2111_v2  ;;  %v1746_v52 = vunpack.c.l.bf16 %v1762_v12 }
  0x61   : > { %v767_v44 = vrot.slane %v765_v26, 1  ;;  %v762_v54 = vrot.slane %v760_v35, 1  ;;  %v354_v48 = vmul.f32 %v1711_v45, %v2111_v2  ;;  %v1747_v50 = vunpack.c.h.bf16 %v1762_v12 }
  0x62   : > { %v503_v34 = vshrl.u32 %v458_v41, 16  ;;  %v581_v53 = vshll.u32 %v458_v41, 16  ;;  %v2419_v3 = vsel %vm696_vm3, %v859_v51, %v863_v60  ;;  %v392_v4 = vadd.f32 %v2120_v11, %v353_v47 }
  0x63   : > { %v371_v37 = vmul.f32 %v1746_v52, %v2111_v2  ;;  %1992 = vmatprep.subr.msk.bf16.mxu0 %vm877_vm0, %v2419_v3  ;;  %v763_v36 = vor.u32 %v762_v54, %v758_v31  ;;  %1961 = vmatprep.subr.msk.bf16.mxu1 %vm877_vm0, %v2419_v3  ;;  %v393_v9 = vadd.f32 %v2120_v11, %v354_v48  ;;  %v1082_v61 = vrot.slane %v2315_v20, 1 }
  0x64   : > { %v580_v58 = vrot.slane %v503_v34, 7  ;;  %v634_v59 = vrot.slane %v581_v53, 7  ;;  %v424_v10 = vmax.f32 %v392_v4, 0.0  ;;  %v372_v60 = vmul.f32 %v1747_v50, %v2111_v2 }
  0x65   : > { %v410_v17 = vadd.f32 %v2120_v11, %v371_v37  ;;  %v768_v12 = vsel %vm696_vm3, %v763_v36, %v767_v44  ;;  %v425_v31 = vmax.f32 %v393_v9, 0.0  ;;  %v1096_v20 = vrot.slane %v2170_v15, 1 }
  0x66   : > { %v583_v26 = vor.u32 %v581_v53, %v580_v58  ;;  %v2433_v35 = vsel %vm2149_vm4, %v580_v58, %v634_v59  ;;  %v2436_v41 = vsel %vm877_vm0, %v768_v12, 0  ;;  %v411_v51 = vadd.f32 %v2120_v11, %v372_v60 }
  0x67   : > { %v873_v45 = vshll.u32 %v2433_v35, 16  ;;  %v442_v47 = vmax.f32 %v410_v17, 0.0  ;;  %1846 = vmatpush3.bf16.xpose.msra.mxu0 %v2436_v41  ;;  %1776 = vmatpush3.bf16.xpose.msra.mxu1 %v2436_v41  ;;  %v450_v50 = vpack.c.bf16 %v425_v31, %v424_v10 }
  0x68   : > { %v2443_v2 = vsel %vm2149_vm4, %v503_v34, %v583_v26  ;;  %v443_v52 = vmax.f32 %v411_v51, 0.0 }
  0x69   : > { %v866_v37 = vshrl.u32 %v2443_v2, 16  ;;  %v868_v44 = vshll.u32 %v2443_v2, 16  ;;  %v479_v54 = vshrl.u32 %v450_v50, 16  ;;  %v549_v53 = vshll.u32 %v450_v50, 16 }
  0x6a   : > { %v875_v4 = vrot.slane %v873_v45, 1  ;;  %v459_v11 = vpack.c.bf16 %v443_v52, %v442_v47 }
  0x6b   : > { %v870_v48 = vrot.slane %v868_v44, 1  ;;  %v548_v36 = vrot.slane %v479_v54, 7  ;;  %v626_v58 = vrot.slane %v549_v53, 7  ;;  %v1078_v44 = vrot.slane %v2279_v28, 1 }
  0x6c   : > { %v506_v9 = vshrl.u32 %v459_v11, 16  ;;  %v585_v60 = vshll.u32 %v459_v11, 16 }
  0x6d   : > { %v871_v59 = vor.u32 %v870_v48, %v866_v37  ;;  %v551_v34 = vor.u32 %v549_v53, %v548_v36  ;;  %v677_v17 = vsel %vm2149_vm4, %v548_v36, %v626_v58  ;;  %v1079_v36 = vrot.slane %v2265_v19, 1 }
  0x6e   : > { %v777_v12 = vshll.u32 %v677_v17, 16  ;;  %v584_v26 = vrot.slane %v506_v9, 7  ;;  %v635_v31 = vrot.slane %v585_v60, 7  ;;  %v1084_v19 = vrot.slane %v2370_v5, 1 }
  0x6f   : > { %v2451_v10 = vsel %vm696_vm3, %v871_v59, %v875_v4  ;;  %v2457_v45 = vsel %vm2149_vm4, %v479_v54, %v551_v34  ;;  %v1080_v34 = vsel %vm1071_vm5, %v1078_v44, %v1079_v36  ;;  %v1097_v44 = vrot.slane %v2160_v8, 1 }
  0x70   : > { %1993 = vmatprep.subr.msk.bf16.mxu0 %vm877_vm0, %v2451_v10  ;;  %1962 = vmatprep.subr.msk.bf16.mxu1 %vm877_vm0, %v2451_v10  ;;  %v770_v51 = vshrl.u32 %v2457_v45, 16  ;;  %v772_v47 = vshll.u32 %v2457_v45, 16  ;;  %v587_v50 = vor.u32 %v585_v60, %v584_v26  ;;  %v2465_v37 = vsel %vm2149_vm4, %v584_v26, %v635_v31 }
  0x71   : > { %v779_v53 = vrot.slane %v777_v12, 1  ;;  %v1264_v48 = vshll.u32 %v2465_v37, 16  ;;  %v1081_v12 = vrot.slane %v2326_v30, 1  ;;  %v2510_v36 = vsel %vm877_vm0, %v2201_v42, 0  ;;  %v2529_v42 = vld [vmem:[%s2850_s1] sm:$0x3] }
  0x72   : > { %v774_v52 = vrot.slane %v772_v47, 1  ;;  %v2470_v54 = vsel %vm2149_vm4, %v506_v9, %v587_v50  ;;  %v2514_v8 = vsel %vm877_vm0, %v2182_v24, 0 }
  0x73   : > { %v1257_v4 = vshrl.u32 %v2470_v54, 16  ;;  %v1259_v11 = vshll.u32 %v2470_v54, 16  ;;  %v1266_v59 = vrot.slane %v1264_v48, 1  ;;  %v2484_v47 = vsel %vm1071_vm5, %v1081_v12, %v1082_v61 }
  0x74   : > { %v775_v58 = vor.u32 %v774_v52, %v770_v51  ;;  %v1085_v51 = vrot.slane %v2366_v62, 1  ;;  %v1088_v62 = vrot.slane %v2401_v7, 1  ;;  %v1075_v7 = vrot.slane %v2189_v29, 1 }
  0x75   : > { %v1261_v60 = vrot.slane %v1259_v11, 1  ;;  %v1091_v11 = vrot.slane %v677_v17, 1  ;;  %v1099_v17 = vrot.slane %v2245_v49, 1  ;;  %v2547_v61 = vsel %vm877_vm0, %v2189_v29, 0 }
  0x76   : > { %v780_v9 = vsel %vm696_vm3, %v775_v58, %v779_v53  ;;  %v2500_v52 = vsel %vm1071_vm5, %v1084_v19, %v1085_v51  ;;  %v1087_v53 = vrot.slane %v2409_v22, 1  ;;  %v1076_v58 = vrot.slane %v2193_v32, 1 }
  0x77   : > { %v2481_v26 = vsel %vm877_vm0, %v780_v9, 0  ;;  %v1262_v31 = vor.u32 %v1261_v60, %v1257_v4  ;;  %v1090_v4 = vrot.slane %v2457_v45, 1  ;;  %v1073_v19 = vrot.slane %v2174_v16, 1 }
  0x78   : > { %1848 = vmatpush3.bf16.xpose.msra.mxu0 %v2481_v26  ;;  %1778 = vmatpush3.bf16.xpose.msra.mxu1 %v2481_v26  ;;  %v2505_v48 = vsel %vm1071_vm5, %v1087_v53, %v1088_v62  ;;  %v1077_v32 = vsel %vm1071_vm5, %v1075_v7, %v1076_v58  ;;  %v2591_v53 = vsel %vm877_vm0, %v2279_v28, 0  ;;  %v2606_v28 = vsel %vm877_vm0, %v2484_v47, 0 }
  0x79   : > { %v2491_v50 = vsel %vm696_vm3, %v1262_v31, %v1266_v59  ;;  %1963 = vmatprep.subr.msk.bf16.mxu1 %vm877_vm0, %v2166_v14  ;;  %v2518_v59 = vsel %vm1071_vm5, %v1096_v20, %v1097_v44  ;;  %v2522_v60 = vsel %vm1071_vm5, %v1090_v4, %v1091_v11  ;;  %v2543_v12 = vsel %vm877_vm0, %v1077_v32, 0 }
  0x7a   : > { %1994 = vmatprep.subr.msk.bf16.mxu0 %vm877_vm0, %v2491_v50  ;;  %v1072_v31 = vrot.slane %v2182_v24, 1  ;;  %v1102_v24 = vrot.slane %v2257_v63, 1  ;;  %v1106_v20 = vrot.slane %v2290_v40, 1  ;;  %v2587_v44 = vsel %vm877_vm0, %v1080_v34, 0 }
  0x7b   : > { %v1108_v40 = vrot.slane %v2356_v33, 1  ;;  %v1109_v34 = vrot.slane %v2346_v18, 1  ;;  %v2610_v4 = vsel %vm877_vm0, %v2326_v30, 0  ;;  %v1111_v18 = vrot.slane %v2393_v55, 1 }
  0x7c   : > { %v1074_v16 = vsel %vm1071_vm5, %v1072_v31, %v1073_v19  ;;  %v1112_v47 = vrot.slane %v2386_v43, 1  ;;  %v2625_v30 = vsel %vm877_vm0, %v2500_v52, 0  ;;  %v2629_v58 = vsel %vm877_vm0, %v2370_v5, 0 }
  0x7d   : > { %v2573_v29 = vsel %vm877_vm0, %v1074_v16, 0  ;;  %v2613_v11 = vsel %vm1071_vm5, %v1108_v40, %v1109_v34  ;;  %v1114_v43 = vrot.slane %v2443_v2, 1  ;;  %v1115_v52 = vrot.slane %v2433_v35, 1 }
  0x7e   : > { %v2632_v7 = vsel %vm1071_vm5, %v1111_v18, %v1112_v47  ;;  %v2644_v5 = vsel %vm877_vm0, %v2505_v48, 0  ;;  %v2648_v32 = vsel %vm877_vm0, %v2409_v22, 0  ;;  %v1319_v35 = vrot.slane %v2470_v54, 1 }
  0x7f   : > { %1780 = vmatmul.mubr.msk.bf16.vlgmr.msra.gmra.mrb[0].mxu1 %vm877_vm0, %v2091_v0  ;;  %v1100_v0 = vrot.slane %v2240_v38, 1  ;;  %v2559_v38 = vld [vmem:[%s2850_s1 + $0xa] sm:$0x3]  ;;  %v1320_v48 = vrot.slane %v2465_v37, 1  ;;  %v1094_v22 = vrot.slane %v2156_v6, 1  ;;  %v2665_v31 = vsel %vm877_vm0, %v2522_v60, 0 }
  0x80   : > { %1850 = vmatpush3.bf16.xpose.msra.mxu0 %v2510_v36  ;;  %1782 = vmatpush3.bf16.xpose.msra.mxu1 %v2514_v8  ;;  %v2669_v19 = vsel %vm877_vm0, %v2457_v45, 0  ;;  %v689_v45 = vld [vmem:[%s2850_s1 + $0x4] sm:$0x3]  ;;  %v693_v60 = vld [vmem:[%s2850_s1 + $0xc] sm:$0x3] }
  0x81   : > { %1995 = vmatprep.subr.msk.bf16.mxu0 %vm877_vm0, %v2518_v59  ;;  %1964 = vmatprep.subr.msk.bf16.mxu1 %vm877_vm0, %v2170_v15  ;;  %v2550_v9 = vsel %vm1071_vm5, %v1099_v17, %v1100_v0  ;;  %v2651_v17 = vsel %vm1071_vm5, %v1114_v43, %v1115_v52  ;;  %v1093_v0 = vrot.slane %v2166_v14, 1  ;;  %v2672_v16 = vsel %vm1071_vm5, %v1319_v35, %v1320_v48 }
  0x82   : > { %1797 = vmatprep.mubr.msk.bf16.mxu1 %vm877_vm0, %v2529_v42 }
  0x83   : > { %v1095_v37 = vsel %vm1071_vm5, %v1093_v0, %v1094_v22 }
  0x84   : > { %v2681_v6 = vsel %vm877_vm0, %v1095_v37, 0 }
  0x87   : > { %1852 = vmatmul.mubr.msk.bf16.vlgmr.msra.gmra.mrb[0].mxu0 %vm877_vm0, %v2096_v1  ;;  %v1103_v1 = vrot.slane %v2253_v57, 1  ;;  %v1105_v57 = vrot.slane %v2298_v46, 1 }
  0x88   : > { %1854 = vmatpush3.bf16.xpose.msra.mxu0 %v2543_v12  ;;  %1784 = vmatpush3.bf16.xpose.msra.mxu1 %v2547_v61 }
  0x89   : > { %1996 = vmatprep.subr.msk.bf16.mxu0 %vm877_vm0, %v2550_v9  ;;  %1965 = vmatprep.subr.msk.bf16.mxu1 %vm877_vm0, %v2245_v49  ;;  %v2576_v51 = vsel %vm1071_vm5, %v1102_v24, %v1103_v1  ;;  %v2594_v62 = vsel %vm1071_vm5, %v1105_v57, %v1106_v20 }
  0x8a   : > { %1869 = vmatprep.mubr.msk.bf16.mxu0 %vm877_vm0, %v2559_v38 }
  0x90   : > { %1856 = vmatpush3.bf16.xpose.msra.mxu0 %v2573_v29  ;;  %1786 = vmatpush3.bf16.xpose.msra.mxu1 %v2514_v8 }
  0x91   : > { %1997 = vmatprep.subr.msk.bf16.mxu0 %vm877_vm0, %v2576_v51  ;;  %1966 = vmatprep.subr.msk.bf16.mxu1 %vm877_vm0, %v2257_v63 }
  0x98   : > { %1858 = vmatpush3.bf16.xpose.msra.mxu0 %v2587_v44  ;;  %1788 = vmatpush3.bf16.xpose.msra.mxu1 %v2591_v53 }
  0x99   : > { %1998 = vmatprep.subr.msk.bf16.mxu0 %vm877_vm0, %v2594_v62  ;;  %1967 = vmatprep.subr.msk.bf16.mxu1 %vm877_vm0, %v2298_v46 }
  0xa0   : > { %1860 = vmatpush3.bf16.xpose.msra.mxu0 %v2606_v28  ;;  %1790 = vmatpush3.bf16.xpose.msra.mxu1 %v2610_v4 }
  0xa1   : > { %1999 = vmatprep.subr.msk.bf16.mxu0 %vm877_vm0, %v2613_v11  ;;  %1968 = vmatprep.subr.msk.bf16.mxu1 %vm877_vm0, %v2356_v33 }
  0xa8   : > { %1862 = vmatpush3.bf16.xpose.msra.mxu0 %v2625_v30  ;;  %1792 = vmatpush3.bf16.xpose.msra.mxu1 %v2629_v58 }
  0xa9   : > { %2000 = vmatprep.subr.msk.bf16.mxu0 %vm877_vm0, %v2632_v7  ;;  %1969 = vmatprep.subr.msk.bf16.mxu1 %vm877_vm0, %v2393_v55 }
  0xb0   : > { %1864 = vmatpush3.bf16.xpose.msra.mxu0 %v2644_v5  ;;  %1794 = vmatpush3.bf16.xpose.msra.mxu1 %v2648_v32 }
  0xb1   : > { %2001 = vmatprep.subr.msk.bf16.mxu0 %vm877_vm0, %v2651_v17  ;;  %1970 = vmatprep.subr.msk.bf16.mxu1 %vm877_vm0, %v2443_v2 }
  0xb8   : > { %1866 = vmatpush3.bf16.xpose.msra.mxu0 %v2665_v31  ;;  %1796 = vmatpush3.bf16.xpose.msra.mxu1 %v2669_v19 }
  0xb9   : > { %2002 = vmatprep.subr.msk.bf16.mxu0 %vm877_vm0, %v2672_v16  ;;  %1971 = vmatprep.subr.msk.bf16.mxu1 %vm877_vm0, %v1095_v37 }
  0xbf   : > { %1798 = vmatmul.mubr.msk.bf16.vlgmr.msra.gmra.mrb[0].mxu1 %vm877_vm0, %v2529_v42  ;;  %v984_v42 = vsel %vm877_vm0, %v2166_v14, 0  ;;  %v694_v14 = vld [vmem:[%s2850_s1 + $0xe] sm:$0x3] }
  0xc0   : > { %1868 = vmatpush3.bf16.xpose.msra.mxu0 %v2681_v6  ;;  %1800 = vmatpush3.bf16.xpose.msra.mxu1 %v2573_v29 }
  0xc1   : > { %2003 = vmatprep.subr.msk.bf16.mxu0 %vm877_vm0, %v2245_v49  ;;  %1972 = vmatprep.subr.msk.bf16.mxu1 %vm877_vm0, %v2518_v59 }
  0xc2   : > { %1815 = vmatprep.mubr.msk.bf16.mxu1 %vm877_vm0, %v689_v45 }
  0xc7   : > { %1870 = vmatmul.mubr.msk.bf16.vlgmr.msra.gmra.mrb[0].mxu0 %vm877_vm0, %v2559_v38  ;;  %v690_v38 = vld [vmem:[%s2850_s1 + $0x6] sm:$0x3] }
  0xc8   : > { %1872 = vmatpush3.bf16.xpose.msra.mxu0 %v2514_v8  ;;  %1802 = vmatpush3.bf16.xpose.msra.mxu1 %v2543_v12  ;;  %v986_v12 = vsel %vm877_vm0, %v2170_v15, 0 }
  0xc9   : > { %2004 = vmatprep.subr.msk.bf16.mxu0 %vm877_vm0, %v2257_v63  ;;  %1973 = vmatprep.subr.msk.bf16.mxu1 %vm877_vm0, %v2550_v9 }
  0xca   : > { %1887 = vmatprep.mubr.msk.bf16.mxu0 %vm877_vm0, %v693_v60 }
  0xd0   : > { %1874 = vmatpush3.bf16.xpose.msra.mxu0 %v2591_v53  ;;  %1804 = vmatpush3.bf16.xpose.msra.mxu1 %v2573_v29 }
  0xd1   : > { %2005 = vmatprep.subr.msk.bf16.mxu0 %vm877_vm0, %v2298_v46  ;;  %1974 = vmatprep.subr.msk.bf16.mxu1 %vm877_vm0, %v2576_v51 }
  0xd8   : > { %1876 = vmatpush3.bf16.xpose.msra.mxu0 %v2610_v4  ;;  %1806 = vmatpush3.bf16.xpose.msra.mxu1 %v2587_v44 }
  0xd9   : > { %2006 = vmatprep.subr.msk.bf16.mxu0 %vm877_vm0, %v2356_v33  ;;  %1975 = vmatprep.subr.msk.bf16.mxu1 %vm877_vm0, %v2594_v62 }
  0xe0   : > { %1878 = vmatpush3.bf16.xpose.msra.mxu0 %v2629_v58  ;;  %1808 = vmatpush3.bf16.xpose.msra.mxu1 %v2606_v28 }
  0xe1   : > { %2007 = vmatprep.subr.msk.bf16.mxu0 %vm877_vm0, %v2393_v55  ;;  %1976 = vmatprep.subr.msk.bf16.mxu1 %vm877_vm0, %v2613_v11 }
  0xe8   : > { %1880 = vmatpush3.bf16.xpose.msra.mxu0 %v2648_v32  ;;  %1810 = vmatpush3.bf16.xpose.msra.mxu1 %v2625_v30 }
  0xe9   : > { %2008 = vmatprep.subr.msk.bf16.mxu0 %vm877_vm0, %v2443_v2  ;;  %1977 = vmatprep.subr.msk.bf16.mxu1 %vm877_vm0, %v2632_v7 }
  0xf0   : > { %1882 = vmatpush3.bf16.xpose.msra.mxu0 %v2669_v19  ;;  %1812 = vmatpush3.bf16.xpose.msra.mxu1 %v2644_v5 }
  0xf1   : > { %2009 = vmatprep.subr.msk.bf16.mxu0 %vm877_vm0, %v2470_v54  ;;  %1978 = vmatprep.subr.msk.bf16.mxu1 %vm877_vm0, %v2651_v17 }
  0xf8   : > { %1884 = vmatpush3.bf16.xpose.msra.mxu0 %v984_v42  ;;  %1814 = vmatpush3.bf16.xpose.msra.mxu1 %v2665_v31 }
  0xf9   : > { %2010 = vmatprep.subr.msk.bf16.mxu0 %vm877_vm0, %v2443_v2  ;;  %1979 = vmatprep.subr.msk.bf16.mxu1 %vm877_vm0, %v2170_v15  ;;  %v2862_v15 = vld [vmem:[#allocation3_spill] sm:$0xff] }
  0xff   : > { %1816 = vmatmul.mubr.msk.bf16.vlgmr.msra.gmra.mrb[0].mxu1 %vm877_vm0, %v689_v45 }
 0x100   : > { %1886 = vmatpush3.bf16.xpose.msra.mxu0 %v986_v12  ;;  %1818 = vmatpush3.bf16.xpose.msra.mxu1 %v2547_v61 }
 0x101   : > { %2011 = vmatprep.subr.msk.bf16.mxu0 %vm877_vm0, %v2269_v21  ;;  %1980 = vmatprep.subr.msk.bf16.mxu1 %vm877_vm0, %v2245_v49  ;;  %v1145_v21 = vsel %vm877_vm0, %v2518_v59, 0 }
 0x102   : > { %1833 = vmatprep.mubr.msk.bf16.mxu1 %vm877_vm0, %v690_v38 }
 0x107   : > { %1888 = vmatmul.mubr.msk.bf16.vlgmr.msra.gmra.mrb[0].mxu0 %vm877_vm0, %v693_v60 }
 0x108   : > { %1890 = vmatpush3.bf16.xpose.msra.mxu0 %v2220_v56  ;;  %1820 = vmatpush3.bf16.xpose.msra.mxu1 %v2514_v8  ;;  %v2863_v56 = vld [vmem:[#allocation2_spill] sm:$0xff] }
 0x109   : > { %2012 = vmatprep.subr.msk.bf16.mxu0 %vm877_vm0, %v2286_v39  ;;  %1981 = vmatprep.subr.msk.bf16.mxu1 %vm877_vm0, %v2257_v63  ;;  %v906_v49 = vsel %vm877_vm0, %v2863_v56, 0  ;;  %v695_v63 = vld [vmem:[%s2850_s1 + $0x10] sm:$0x3] }
 0x10a   : > { %1905 = vmatprep.mubr.msk.bf16.mxu0 %vm877_vm0, %v694_v14 }
 0x110   : > { %1892 = vmatpush3.bf16.xpose.msra.mxu0 %v2311_v13  ;;  %1822 = vmatpush3.bf16.xpose.msra.mxu1 %v2591_v53 }
 0x111   : > { %2013 = vmatprep.subr.msk.bf16.mxu0 %vm877_vm0, %v2322_v27  ;;  %1982 = vmatprep.subr.msk.bf16.mxu1 %vm877_vm0, %v2298_v46 }
 0x118   : > { %1894 = vmatpush3.bf16.xpose.msra.mxu0 %v2350_v23  ;;  %1824 = vmatpush3.bf16.xpose.msra.mxu1 %v2610_v4 }
 0x119   : > { %2014 = vmatprep.subr.msk.bf16.mxu0 %vm877_vm0, %v2377_v25  ;;  %1983 = vmatprep.subr.msk.bf16.mxu1 %vm877_vm0, %v2356_v33 }
 0x120   : > { %1896 = vmatpush3.bf16.xpose.msra.mxu0 %v2862_v15  ;;  %1826 = vmatpush3.bf16.xpose.msra.mxu1 %v2629_v58 }
 0x121   : > { %2015 = vmatprep.subr.msk.bf16.mxu0 %vm877_vm0, %v2419_v3  ;;  %1984 = vmatprep.subr.msk.bf16.mxu1 %vm877_vm0, %v2393_v55 }
 0x128   : > { %1898 = vmatpush3.bf16.xpose.msra.mxu0 %v2436_v41  ;;  %1828 = vmatpush3.bf16.xpose.msra.mxu1 %v2648_v32 }
 0x129   : > { %2016 = vmatprep.subr.msk.bf16.mxu0 %vm877_vm0, %v2451_v10  ;;  %1985 = vmatprep.subr.msk.bf16.mxu1 %vm877_vm0, %v2443_v2 }
 0x130   : > { %1900 = vmatpush3.bf16.xpose.msra.mxu0 %v2481_v26  ;;  %1830 = vmatpush3.bf16.xpose.msra.mxu1 %v2669_v19 }
 0x131   : > { %2017 = vmatprep.subr.msk.bf16.mxu0 %vm877_vm0, %v2491_v50  ;;  %1986 = vmatprep.subr.msk.bf16.mxu1 %vm877_vm0, %v2470_v54 }
 0x138   : > { %1902 = vmatpush3.bf16.xpose.msra.mxu0 %v2510_v36  ;;  %1832 = vmatpush3.bf16.xpose.msra.mxu1 %v984_v42 }
 0x139   : > { %2018 = vmatprep.subr.msk.bf16.mxu0 %vm877_vm0, %v2451_v10 }
 0x13f   : > { %1834 = vmatmul.mubr.msk.bf16.vlgmr.msra.gmra.mrb[0].mxu1 %vm877_vm0, %v690_v38 }
 0x140   : > { %1904 = vmatpush3.bf16.xpose.msra.mxu0 %v906_v49 }
 0x141   : > { %2019 = vmatprep.subr.msk.bf16.mxu0 %vm877_vm0, %v2550_v9  ;;  %v1516_v9 = vlaneseq }
 0x143   : > { %v1517_v24 = vand.u32 127, %v1516_v9  ;;  %v1519_v1 = vshrl.u32 %v1516_v9, 7 }
 0x147   : > { %1906 = vmatmul.mubr.msk.bf16.vlgmr.msra.gmra.mrb[0].mxu0 %vm877_vm0, %v694_v14 }
 0x148   : > { %1908 = vmatpush3.bf16.xpose.msra.mxu0 %v2573_v29  ;;  %1923 = vmatprep.mubr.msk.bf16.mxu0 %vm877_vm0, %v695_v63  ;;  %v1520_v29 = vsub.s32 %v1517_v24, %v1519_v1 }
 0x149   : > { %2020 = vmatprep.subr.msk.bf16.mxu0 %vm877_vm0, %v2576_v51 }
 0x150   : > { %1910 = vmatpush3.bf16.xpose.msra.mxu0 %v2587_v44 }
 0x151   : > { %2021 = vmatprep.subr.msk.bf16.mxu0 %vm877_vm0, %v2594_v62 }
 0x158   : > { %1912 = vmatpush3.bf16.xpose.msra.mxu0 %v2606_v28 }
 0x159   : > { %2022 = vmatprep.subr.msk.bf16.mxu0 %vm877_vm0, %v2613_v11 }
 0x160   : > { %1914 = vmatpush3.bf16.xpose.msra.mxu0 %v2625_v30 }
 0x161   : > { %2023 = vmatprep.subr.msk.bf16.mxu0 %vm877_vm0, %v2632_v7 }
 0x168   : > { %1916 = vmatpush3.bf16.xpose.msra.mxu0 %v2644_v5 }
 0x169   : > { %2024 = vmatprep.subr.msk.bf16.mxu0 %vm877_vm0, %v2651_v17 }
 0x170   : > { %1918 = vmatpush3.bf16.xpose.msra.mxu0 %v2665_v31 }
 0x171   : > { %2025 = vmatprep.subr.msk.bf16.mxu0 %vm877_vm0, %v2672_v16 }
 0x178   : > { %1920 = vmatpush3.bf16.xpose.msra.mxu0 %v2681_v6 }
 0x179   : > { %2026 = vmatprep.subr.msk.bf16.mxu0 %vm877_vm0, %v2651_v17 }
 0x180   : > { %1922 = vmatpush3.bf16.xpose.msra.mxu0 %v1145_v21 }
 0x187   : > { %1924 = vmatmul.mubr.msk.bf16.vlgmr.msra.gmra.mrb[0].mxu0 %vm877_vm0, %v695_v63 }
 0x212   : > { %v1248_v39 = vpop.f32.mrb[0].mxu1 }
 0x213   : > { %v1250_v46 = vpop.f32.mrb[1].mxu1 }
 0x214   : > { %v1252_v13 = vpop.f32.mrb[2].mxu1 }
 0x215   : > { %v1253_v27 = vpop.f32.mrb[3].mxu1 }
 0x25a   : > { %v1500_v23 = vpop.f32.mrb[0].mxu0 }
 0x25b   : > { %v1925_v33 = vadd.f32 %v1500_v23, %v1248_v39  ;;  %v1502_v25 = vpop.f32.mrb[1].mxu0 }
 0x25c   : > { %v1926_v55 = vadd.f32 %v1502_v25, %v1250_v46  ;;  %v1504_v3 = vpop.f32.mrb[2].mxu0 }
 0x25d   : > { %v1505_v41 = vpop.f32.mrb[3].mxu0  ;;  %v1510_v2 = vsel %vm1509_vm6, %v1925_v33, 0.0  ;;  %v1525_v10 = vmul.f32 %v1925_v33, %v1925_v33 }
 0x25e   : > { %v1678_v54 = vpack.c.bf16 %v1926_v55, %v1925_v33  ;;  %v1511_v26 = vsel %vm1509_vm6, %v1926_v55, 0.0  ;;  %v1526_v50 = vmul.f32 %v1926_v55, %v1926_v55 }
 0x25f   : > { %v1512_v36 = vadd.f32 %v1511_v26, %v1510_v2  ;;  %v1527_v8 = vsel %vm1509_vm6, %v1525_v10, 0.0 }
 0x260   : > { %1679 = vst.sshfl [vmem:[%s262_s30] sm:$0x33 pattern:$0x76325410] %v1678_v54  ;;  %v1528_v59 = vsel %vm1509_vm6, %v1526_v50, 0.0 }
 0x261   : > { %1513 = vadd.xlane.f32.xlu0 %v1512_v36  ;;  %v1529_v61 = vadd.f32 %v1528_v59, %v1527_v8 }
 0x265   : > { %1530 = vadd.xlane.f32.xlu0 %v1529_v61 }
 0x2ee   : > { %v1514_v51 = vpop.xlane.xlu0 %1513 }
 0x2ef   : > { %v1521_v57 = vrot.slane %v1514_v51, %v1520_v29 }
 0x2f1   : > { %1524 = vst.msk [vmem:[%s265_s9] sm:$0x1] %vm1523_vm7, %v1521_v57 }
 0x2f2   : > { %v1531_v20 = vpop.xlane.xlu0 %1530 }
 0x2f3   : > { %v1536_v44 = vrot.slane %v1531_v20, %v1520_v29 }
 0x2f5   : > { %1538 = vst.msk [vmem:[%s268_s12] sm:$0x1] %vm1523_vm7, %v1536_v44 }
 0x2f6 PF: > { %s17_s21 = sadd.s32 1, %s2041_s21  }
 0x2f7   : > { %p14_p4 = scmp.ge.s32.totalorder %s17_s21, 4  }
 0x2f9   :  { %16 = sbr.rel (!%p14_p4) target bundleno = 1 (0x1), region = 90 }

// kernel: upsample_forward.5
= control target key start
LH: loop header
LB: loop body
LE: loop exit
PB: predicated region body
PF: predicated region fallthrough
CT: control target
= control target key end

     0   :  { %s7761_s21 = smov 0   ;;  %s9444_s0 = inlined_call_operand.vmem [shape: f32[2,16,16,4], index: 0, kind: input, shape index: {}]   ;;  %s9445_s1 = inlined_call_operand.vmem [shape: bf16[2,16,16,4], index: 1, kind: input, shape index: {}]   ;;  %s9446_s2 = inlined_call_operand.vmem [shape: bf16[3,3,4,4], index: 2, kind: input, shape index: {}]   ;;  %s9447_s3 = inlined_call_operand.vmem [shape: bf16[3,3,4,4], index: 3, kind: input, shape index: {}]   ;;  %s9448_s4 = inlined_call_operand.vmem [shape: bf16[2,16,16,4], index: 4, kind: output, shape index: {0}]   ;;  %s9449_s5 = inlined_call_operand.vmem [shape: f32[2,1,4], index: 5, kind: output, shape index: {1}]   ;;  %s9450_s6 = inlined_call_operand.vmem [shape: f32[2,1,4], index: 6, kind: output, shape index: {2}]  }
   0x1 LB: > { %s5766_s22 = sadd.s32 4294967295, %s7724_s21   ;;  %p5770_p0 = scmp.ge.s32.totalorder %s7724_s21, 1  ;;  %s7724_s21 = sphi %s7761_s21, %s17_s21  }
   0x2   : > { %p227_p1 = scmp.lt.s32.totalorder %s7724_s21, 3 }
   0x4   : > { %p228_p2 = pnand %p5770_p0, %p227_p1 }
   0x6   : > { %231 = sbr.rel (%p228_p2) target bundleno = 866 (0x362), region = 36 }
   0xd   : > { %vm801_vm0 = vcmask 1041408   ;;  %v3142_v0 = vld [vmem:[%s9447_s3] sm:$0x3]  ;;  %p268_p3 = scmp.lt.s32.totalorder %s5766_s22, 1  ;;  %v566_v2 = vld [vmem:[%s9446_s2 + $0x2] sm:$0x3] }
   0xe   : > { %7653 = vmatprep.subr.msk.bf16.mxu0 %vm801_vm0, %v3142_v0  ;;  %v3197_v1 = vsel %vm801_vm0, %v3142_v0, 0  ;;  %7644 = vmatprep.subr.msk.bf16.mxu1 %vm801_vm0, %v566_v2  ;;  %v803_v3 = vsel %vm801_vm0, %v566_v2, 0  ;;  %v565_v4 = vld [vmem:[%s9446_s2] sm:$0x3]  ;;  %v3143_v5 = vld [vmem:[%s9447_s3 + $0x2] sm:$0x3] }
   0xf   : > { %6795 = vmatpush3.bf16.msra.mxu0 %v3197_v1  ;;  %s9795_s22 = smov (!%p268_p3, %s5766_s22), 1  ;;  %6489 = vmatpush3.bf16.msra.mxu1 %v803_v3  ;;  %vm530_vm1 = vcmask 1040384   ;;  %vm531_vm2 = vsmask.f32 256  ;;  %vm755_vm3 = vcmask 31744   ;;  %v7818_v16 = vsel %vm801_vm0, %v565_v4, 0 }
  0x10   : > { %s6148_s7 = sshll.u32 %s9795_s22, 7  ;;  %s6147_s8 = sshll.u32 %s9795_s22, 8  ;;  %7645 = vmatprep.subr.msk.bf16.mxu1 %vm801_vm0, %v565_v4  ;;  %7654 = vmatprep.subr.msk.bf16.mxu0 %vm801_vm0, %v3143_v5  ;;  %v7806_v6 = vld [vmem:[%s9447_s3 + $0x4] sm:$0x3]  ;;  %v3603_v22 = vsel %vm801_vm0, %v3143_v5, 0  ;;  %vm7837_vm4 = vmand %vm530_vm1, %vm531_vm2  ;;  %vm1190_vm6 = vcmask 1046528  }
  0x11   : > { %s7796_s11 = scalar_lea.vmem %s9445_s1, %s6148_s7  ;;  %s7801_s14 = scalar_lea.vmem %s9444_s0, %s6147_s8  ;;  %v7829_v28 = vsel %vm801_vm0, %v7806_v6, 0  ;;  %vm574_vm5 = vsmask.f32 7424  ;;  %vm5616_vm7 = vcmask 27648   ;;  %vm5384_vm8 = vcmask 24576  }
  0x12   : > { %v2680_v7 = vld [vmem:[%s7796_s11 + $0x8] sm:$0xf]  ;;  %v7810_v8 = vld [vmem:[%s7796_s11 + $0xc] sm:$0xf]  ;;  %v2678_v9 = vld [vmem:[%s7796_s11] sm:$0xf]  ;;  %s9303_s26 = scalar_lea.vmem %s9448_s4, %s6148_s7  ;;  %s285_s28 = scalar_lea.vmem %s9449_s5, %s9795_s22 }
  0x13   : > { %v5921_v10 = vcombine.low %v2680_v7, %v2680_v7  ;;  %v5937_v11 = vcombine.low %v2680_v7, %v7810_v8  ;;  %v2679_v12 = vld [vmem:[%s7796_s11 + $0x4] sm:$0xf]  ;;  %v5922_v13 = vcombine.low %v2678_v9, %v2678_v9  ;;  %v292_v14 = vld [vmem:[%s7801_s14 + $0x10] sm:$0xff]  ;;  %v293_v15 = vld [vmem:[%s7801_s14 + $0x18] sm:$0xff]  ;;  %s288_s8 = scalar_lea.vmem %s9450_s6, %s9795_s22 }
  0x14   : > { %v5938_v17 = vcombine.low %v2678_v9, %v2679_v12  ;;  %v5954_v18 = vcombine.low %v2679_v12, %v2679_v12  ;;  %v323_v19 = vpack.c.bf16 %v293_v15, %v292_v14  ;;  %v290_v20 = vld [vmem:[%s7801_s14] sm:$0xff]  ;;  %v291_v21 = vld [vmem:[%s7801_s14 + $0x8] sm:$0xff]  ;;  %v2682_v23 = vld [vmem:[%s7796_s11 + $0x10] sm:$0xf] }
  0x15   : > { %v2759_v24 = vshrl.u32 %v5921_v10, 16  ;;  %v2871_v25 = vshrl.u32 %v5937_v11, 16  ;;  %v2874_v26 = vshll.u32 %v5937_v11, 16  ;;  %v7825_v27 = vld [vmem:[%s7796_s11 + $0x14] sm:$0xf]  ;;  %v2762_v29 = vshrl.u32 %v5922_v13, 16 }
  0x16   : > { %v2878_v30 = vshrl.u32 %v5938_v17, 16  ;;  %v2881_v31 = vshll.u32 %v5938_v17, 16  ;;  %v339_v32 = vshrl.u32 %v323_v19, 16  ;;  %v7833_v34 = vshll.u32 %v5954_v18, 16  ;;  %v294_v62 = vld [vmem:[%s7801_s14 + $0x20] sm:$0xff]  ;;  %v295_v63 = vld [vmem:[%s7801_s14 + $0x28] sm:$0xff] }
  0x17   : > { %v7831_v33 = vrot.slane %v2871_v25, 7  ;;  %v403_v35 = vshll.u32 %v323_v19, 16  ;;  %v322_v36 = vpack.c.bf16 %v291_v21, %v290_v20  ;;  %v5923_v40 = vcombine.low %v2682_v23, %v2682_v23  ;;  %v2684_v10 = vld [vmem:[%s7796_s11 + $0x18] sm:$0xf]  ;;  %v7895_v14 = vld [vmem:[%s7796_s11 + $0x1c] sm:$0xf] }
  0x18   : > { %v7841_v38 = vrot.slane %v2878_v30, 7  ;;  %v402_v39 = vrot.slane %v339_v32, 7  ;;  %v5939_v41 = vcombine.low %v2682_v23, %v7825_v27  ;;  %v324_v13 = vpack.c.bf16 %v295_v63, %v294_v62  ;;  %v2686_v17 = vld [vmem:[%s7796_s11 + $0x20] sm:$0xf] }
  0x19   : > { %v2876_v42 = vor.u32 %v2874_v26, %v7831_v33  ;;  %v498_v43 = vrot.slane %v403_v35, 7  ;;  %v342_v44 = vshrl.u32 %v322_v36, 16  ;;  %v407_v45 = vshll.u32 %v322_v36, 16 }
  0x1a   : > { %v2883_v46 = vor.u32 %v2881_v31, %v7841_v38  ;;  %v405_v47 = vor.u32 %v403_v35, %v402_v39  ;;  %v2885_v48 = vshrl.u32 %v5939_v41, 16  ;;  %v2765_v60 = vshrl.u32 %v5923_v40, 16  ;;  %v296_v40 = vld [vmem:[%s7801_s14 + $0x30] sm:$0xff] }
  0x1b   : > { %v7850_v50 = vsel %vm7837_vm4, %v2759_v24, %v2876_v42  ;;  %v7854_v51 = vsel %vm7837_vm4, %v402_v39, %v498_v43  ;;  %v406_v52 = vrot.slane %v342_v44, 7  ;;  %v499_v53 = vrot.slane %v407_v45, 7 }
  0x1c   : > { %9595 = vst [vmem:[#allocation2_spill] sm:$0xff] %v7854_v51  ;;  %6796 = vmatprep.mubr.msk.bf16.mxu0 %vm755_vm3, %v7850_v50  ;;  %v7861_v55 = vsel %vm7837_vm4, %v2762_v29, %v2883_v46  ;;  %v7865_v56 = vsel %vm7837_vm4, %v339_v32, %v405_v47  ;;  %v583_v57 = vshll.u32 %v7854_v51, 16  ;;  %v7872_v61 = vrot.slane %v2885_v48, 7  ;;  %v298_v46 = vld [vmem:[%s7801_s14 + $0x40] sm:$0xff]  ;;  %v299_v47 = vld [vmem:[%s7801_s14 + $0x48] sm:$0xff] }
  0x1d   : > { %6797 = vmatmul.mubr.msk.bf16.vlgmr.msra.gmra.mrb[0].mxu0 %vm755_vm3, %v7861_v55  ;;  %v3405_v59 = vshll.u32 %v7861_v55, 16  ;;  %v576_v0 = vshrl.u32 %v7865_v56, 16  ;;  %v578_v1 = vshll.u32 %v7865_v56, 16  ;;  %v409_v2 = vor.u32 %v407_v45, %v406_v52  ;;  %v8079_v51 = vld [vmem:[%s7796_s11 + $0x4c] sm:$0xf] }
  0x1e   : > { %v7880_v3 = vsel %vm7837_vm4, %v406_v52, %v499_v53  ;;  %6800 = vmatprep.mubr.msk.bf16.mxu0 %vm755_vm3, %v7850_v50  ;;  %6829 = vmatpush3.bf16.msra.mxu0 %v3603_v22  ;;  %v585_v5 = vrot.slane %v583_v57, 1  ;;  %v2888_v9 = vshll.u32 %v5939_v41, 16  ;;  %v5924_v15 = vcombine.low %v2684_v10, %v2684_v10  ;;  %v297_v41 = vld [vmem:[%s7801_s14 + $0x38] sm:$0xff] }
  0x1f   : > { %9596 = vst [vmem:[#allocation3_spill] sm:$0xff] %v7880_v3  ;;  %v7884_v4 = vrot.slane %v3405_v59, 1  ;;  %v595_v7 = vshll.u32 %v7880_v3, 16  ;;  %7655 = vmatprep.subr.msk.bf16.mxu0 %vm801_vm0, %v7806_v6  ;;  %v580_v11 = vrot.slane %v578_v1, 1  ;;  %v7892_v12 = vsel %vm7837_vm4, %v342_v44, %v409_v2  ;;  %v7902_v6 = vld [vmem:[%s7796_s11 + $0x24] sm:$0xf] }
  0x20   : > { %v588_v18 = vshrl.u32 %v7892_v12, 16  ;;  %v590_v19 = vshll.u32 %v7892_v12, 16  ;;  %v2890_v21 = vor.u32 %v2888_v9, %v7872_v61  ;;  %v345_v23 = vshrl.u32 %v324_v13, 16  ;;  %v7935_v1 = vld [vmem:[%s9446_s2 + $0x4] sm:$0x3] }
  0x21   : > { %v597_v20 = vrot.slane %v595_v7, 1  ;;  %v581_v22 = vor.u32 %v580_v11, %v576_v0  ;;  %v411_v24 = vshll.u32 %v324_v13, 16  ;;  %v2768_v25 = vshrl.u32 %v5924_v15, 16  ;;  %v2688_v0 = vld [vmem:[%s7796_s11 + $0x28] sm:$0xf] }
  0x22   : > { %v592_v26 = vrot.slane %v590_v19, 1  ;;  %v7906_v29 = vsel %vm7837_vm4, %v2765_v60, %v2890_v21  ;;  %v5940_v30 = vcombine.low %v2684_v10, %v7895_v14  ;;  %v5925_v31 = vcombine.low %v2686_v17, %v2686_v17 }
  0x23   : > { %v7910_v32 = vsel %vm574_vm5, %v581_v22, %v585_v5  ;;  %v410_v35 = vrot.slane %v345_v23, 7  ;;  %v500_v36 = vrot.slane %v411_v24, 7  ;;  %v5941_v39 = vcombine.low %v2686_v17, %v7902_v6  ;;  %v7952_v17 = vld [vmem:[%s7796_s11 + $0x2c] sm:$0xf]  ;;  %v2690_v22 = vld [vmem:[%s7796_s11 + $0x30] sm:$0xf] }
  0x24   : > { %9597 = vst [vmem:[#allocation4_spill] sm:$0xff] %v7910_v32  ;;  %6490 = vmatprep.mubr.msk.bf16.mxu1 %vm755_vm3, %v7910_v32  ;;  %v593_v42 = vor.u32 %v592_v26, %v588_v18  ;;  %v2892_v43 = vshrl.u32 %v5940_v30, 16  ;;  %v2895_v44 = vshll.u32 %v5940_v30, 16  ;;  %v2771_v45 = vshrl.u32 %v5925_v31, 16  ;;  %v7963_v30 = vld [vmem:[%s7796_s11 + $0x34] sm:$0xf] }
  0x25   : > { %6801 = vmatmul.mubr.msk.bf16.gmra.mrb[4].mxu0 %vm755_vm3, %v7906_v29  ;;  %v413_v48 = vor.u32 %v411_v24, %v410_v35  ;;  %v7923_v52 = vsel %vm7837_vm4, %v410_v35, %v500_v36  ;;  %v2899_v53 = vshrl.u32 %v5941_v39, 16  ;;  %v2902_v57 = vshll.u32 %v5941_v39, 16 }
  0x26   : > { %9598 = vst [vmem:[#allocation5_spill] sm:$0xff] %v7923_v52  ;;  %v7926_v59 = vsel %vm574_vm5, %v593_v42, %v597_v20  ;;  %v607_v60 = vshll.u32 %v7923_v52, 16  ;;  %v7929_v62 = vrot.slane %v2892_v43, 7  ;;  %v325_v63 = vpack.c.bf16 %v297_v41, %v296_v40 }
  0x27   : > { %9599 = vst [vmem:[#allocation6_spill] sm:$0xff] %v7926_v59  ;;  %6491 = vmatmul.mubr.msk.bf16.vlgmr.msra.gmra.mrb[0].mxu1 %vm755_vm3, %v7926_v59  ;;  %v7941_v2 = vsel %vm7837_vm4, %v345_v23, %v413_v48  ;;  %v7943_v5 = vrot.slane %v2899_v53, 7  ;;  %v326_v7 = vpack.c.bf16 %v299_v47, %v298_v46  ;;  %v5926_v9 = vcombine.low %v2688_v0, %v2688_v0 }
  0x28   : > { %9600 = vst [vmem:[#allocation7_spill] sm:$0xff] %v7941_v2  ;;  %6523 = vmatpush3.bf16.msra.mxu1 %v7818_v16  ;;  %6494 = vmatprep.mubr.msk.bf16.mxu1 %vm755_vm3, %v7910_v32  ;;  %v600_v10 = vshrl.u32 %v7941_v2, 16  ;;  %v602_v11 = vshll.u32 %v7941_v2, 16  ;;  %v609_v13 = vrot.slane %v607_v60, 1  ;;  %v2897_v15 = vor.u32 %v2895_v44, %v7929_v62 }
  0x29   : > { %v2904_v18 = vor.u32 %v2902_v57, %v7943_v5  ;;  %v348_v19 = vshrl.u32 %v325_v63, 16  ;;  %v415_v20 = vshll.u32 %v325_v63, 16  ;;  %v351_v21 = vshrl.u32 %v326_v7, 16  ;;  %7646 = vmatprep.subr.msk.bf16.mxu1 %vm801_vm0, %v7935_v1 }
  0x2a   : > { %v604_v16 = vrot.slane %v602_v11, 1  ;;  %v7960_v23 = vsel %vm7837_vm4, %v2768_v25, %v2897_v15  ;;  %v419_v24 = vshll.u32 %v326_v7, 16  ;;  %v2774_v26 = vshrl.u32 %v5926_v9, 16  ;;  %v300_v9 = vld [vmem:[%s7801_s14 + $0x50] sm:$0xff] }
  0x2b   : > { %6804 = vmatprep.mubr.msk.bf16.mxu0 %vm755_vm3, %v7960_v23  ;;  %v7969_v31 = vsel %vm7837_vm4, %v2771_v45, %v2904_v18  ;;  %v414_v35 = vrot.slane %v348_v19, 7  ;;  %v501_v36 = vrot.slane %v415_v20, 7  ;;  %v418_v39 = vrot.slane %v351_v21, 7 }
  0x2c   : > { %v605_v40 = vor.u32 %v604_v16, %v600_v10  ;;  %v502_v25 = vrot.slane %v419_v24, 7  ;;  %v5942_v41 = vcombine.low %v2688_v0, %v7952_v17  ;;  %v5927_v42 = vcombine.low %v2690_v22, %v2690_v22  ;;  %v301_v10 = vld [vmem:[%s7801_s14 + $0x58] sm:$0xff] }
  0x2d   : > { %6805 = vmatmul.mubr.msk.bf16.gmra.mrb[8].mxu0 %vm755_vm3, %v7969_v31  ;;  %v417_v43 = vor.u32 %v415_v20, %v414_v35  ;;  %v7976_v44 = vsel %vm7837_vm4, %v414_v35, %v501_v36  ;;  %v421_v45 = vor.u32 %v419_v24, %v418_v39  ;;  %v5943_v46 = vcombine.low %v2690_v22, %v7963_v30  ;;  %v302_v20 = vld [vmem:[%s7801_s14 + $0x60] sm:$0xff] }
  0x2e   : > { %9601 = vst [vmem:[#allocation8_spill] sm:$0xff] %v7976_v44  ;;  %v7980_v47 = vsel %vm574_vm5, %v605_v40, %v609_v13  ;;  %v619_v48 = vshll.u32 %v7976_v44, 16  ;;  %v7985_v53 = vsel %vm7837_vm4, %v418_v39, %v502_v25  ;;  %v2906_v57 = vshrl.u32 %v5942_v41, 16  ;;  %v2692_v25 = vld [vmem:[%s7796_s11 + $0x38] sm:$0xf] }
  0x2f   : > { %9602 = vst [vmem:[#allocation9_spill] sm:$0xff] %v7980_v47  ;;  %9603 = vst [vmem:[#allocation10_spill] sm:$0xff] %v7985_v53  ;;  %6495 = vmatmul.mubr.msk.bf16.gmra.mrb[4].mxu1 %vm755_vm3, %v7980_v47  ;;  %v7991_v60 = vsel %vm7837_vm4, %v348_v19, %v417_v43  ;;  %v7995_v63 = vsel %vm7837_vm4, %v351_v21, %v421_v45  ;;  %v631_v0 = vshll.u32 %v7985_v53, 16  ;;  %v2909_v7 = vshll.u32 %v5942_v41, 16  ;;  %v303_v19 = vld [vmem:[%s7801_s14 + $0x68] sm:$0xff] }
  0x30   : > { %9604 = vst [vmem:[#allocation11_spill] sm:$0xff] %v7991_v60  ;;  %9605 = vst [vmem:[#allocation12_spill] sm:$0xff] %v7995_v63  ;;  %v612_v11 = vshrl.u32 %v7991_v60, 16  ;;  %v614_v13 = vshll.u32 %v7991_v60, 16  ;;  %v621_v15 = vrot.slane %v619_v48, 1  ;;  %v624_v18 = vshrl.u32 %v7995_v63, 16 }
  0x31   : > { %v626_v22 = vshll.u32 %v7995_v63, 16  ;;  %v633_v16 = vrot.slane %v631_v0, 1  ;;  %v8006_v21 = vrot.slane %v2906_v57, 7  ;;  %v2777_v24 = vshrl.u32 %v5927_v42, 16 }
  0x32   : > { %v616_v35 = vrot.slane %v614_v13, 1  ;;  %v2913_v36 = vshrl.u32 %v5943_v46, 16  ;;  %v2916_v39 = vshll.u32 %v5943_v46, 16  ;;  %v327_v40 = vpack.c.bf16 %v301_v10, %v300_v9  ;;  %v8017_v46 = vld [vmem:[%s7796_s11 + $0x3c] sm:$0xf] }
  0x33   : > { %v628_v41 = vrot.slane %v626_v22, 1  ;;  %v2911_v43 = vor.u32 %v2909_v7, %v8006_v21  ;;  %v328_v45 = vpack.c.bf16 %v303_v19, %v302_v20  ;;  %v5928_v48 = vcombine.low %v2692_v25, %v2692_v25 }
  0x34   : > { %v617_v58 = vor.u32 %v616_v35, %v612_v11  ;;  %v8010_v54 = vrot.slane %v2913_v36, 7  ;;  %v354_v49 = vshrl.u32 %v327_v40, 16  ;;  %v423_v47 = vshll.u32 %v327_v40, 16  ;;  %v2694_v35 = vld [vmem:[%s7796_s11 + $0x40] sm:$0xf] }
  0x35   : > { %v629_v0 = vor.u32 %v628_v41, %v624_v18  ;;  %v8014_v42 = vsel %vm7837_vm4, %v2774_v26, %v2911_v43  ;;  %v357_v57 = vshrl.u32 %v328_v45, 16  ;;  %v427_v13 = vshll.u32 %v328_v45, 16 }
  0x36   : > { %v8020_v9 = vsel %vm574_vm5, %v617_v58, %v621_v15  ;;  %6808 = vmatprep.mubr.msk.bf16.mxu0 %vm755_vm3, %v8014_v42  ;;  %v2918_v7 = vor.u32 %v2916_v39, %v8010_v54  ;;  %v422_v10 = vrot.slane %v354_v49, 7  ;;  %v503_v11 = vrot.slane %v423_v47, 7 }
  0x37   : > { %9606 = vst [vmem:[#allocation13_spill] sm:$0xff] %v8020_v9  ;;  %6498 = vmatprep.mubr.msk.bf16.mxu1 %vm755_vm3, %v8020_v9  ;;  %v8028_v26 = vsel %vm574_vm5, %v629_v0, %v633_v16  ;;  %v426_v18 = vrot.slane %v357_v57, 7  ;;  %v504_v20 = vrot.slane %v427_v13, 7  ;;  %v2780_v19 = vshrl.u32 %v5928_v48, 16  ;;  %v304_v48 = vld [vmem:[%s7801_s14 + $0x70] sm:$0xff]  ;;  %v305_v0 = vld [vmem:[%s7801_s14 + $0x78] sm:$0xff] }
  0x38   : > { %9607 = vst [vmem:[#allocation14_spill] sm:$0xff] %v8028_v26  ;;  %6499 = vmatmul.mubr.msk.bf16.gmra.mrb[8].mxu1 %vm755_vm3, %v8028_v26  ;;  %v8034_v58 = vsel %vm7837_vm4, %v2777_v24, %v2918_v7  ;;  %v425_v15 = vor.u32 %v423_v47, %v422_v10  ;;  %v8038_v22 = vsel %vm7837_vm4, %v422_v10, %v503_v11  ;;  %v8050_v47 = vld [vmem:[%s7796_s11 + $0x44] sm:$0xf] }
  0x39   : > { %9608 = vst [vmem:[#allocation15_spill] sm:$0xff] %v8038_v22  ;;  %v5944_v16 = vcombine.low %v2692_v25, %v8017_v46  ;;  %6809 = vmatmul.mubr.msk.bf16.gmra.mrb[12].mxu0 %vm755_vm3, %v8034_v58  ;;  %v643_v36 = vshll.u32 %v8038_v22, 16  ;;  %v429_v39 = vor.u32 %v427_v13, %v426_v18  ;;  %v8047_v24 = vsel %vm7837_vm4, %v426_v18, %v504_v20  ;;  %v306_v18 = vld [vmem:[%s7801_s14 + $0x80] sm:$0xff]  ;;  %v307_v20 = vld [vmem:[%s7801_s14 + $0x88] sm:$0xff] }
  0x3a   : > { %9609 = vst [vmem:[#allocation16_spill] sm:$0xff] %v8047_v24  ;;  %v5929_v40 = vcombine.low %v2694_v35, %v2694_v35  ;;  %v8054_v41 = vsel %vm7837_vm4, %v354_v49, %v425_v15  ;;  %v655_v25 = vshll.u32 %v8047_v24, 16  ;;  %v5945_v59 = vcombine.low %v2694_v35, %v8050_v47  ;;  %v2696_v24 = vld [vmem:[%s7796_s11 + $0x48] sm:$0xf] }
  0x3b   : > { %9610 = vst [vmem:[#allocation17_spill] sm:$0xff] %v8054_v41  ;;  %v2920_v43 = vshrl.u32 %v5944_v16, 16  ;;  %v2923_v45 = vshll.u32 %v5944_v16, 16  ;;  %v636_v13 = vshrl.u32 %v8054_v41, 16  ;;  %v638_v7 = vshll.u32 %v8054_v41, 16 }
  0x3c   : > { %v645_v10 = vrot.slane %v643_v36, 1  ;;  %v8063_v11 = vsel %vm7837_vm4, %v357_v57, %v429_v39  ;;  %v657_v26 = vrot.slane %v655_v25, 1  ;;  %v2783_v32 = vshrl.u32 %v5929_v40, 16  ;;  %v8136_v41 = vld [vmem:[%s7796_s11 + $0x5c] sm:$0xf] }
  0x3d   : > { %9611 = vst [vmem:[#allocation18_spill] sm:$0xff] %v8063_v11  ;;  %v648_v49 = vshrl.u32 %v8063_v11, 16  ;;  %v650_v15 = vshll.u32 %v8063_v11, 16  ;;  %v8069_v16 = vrot.slane %v2920_v43, 7  ;;  %v640_v9 = vrot.slane %v638_v7, 1  ;;  %9621 = vst [vmem:[#allocation28_spill] sm:$0xff] %v8136_v41 }
  0x3e   : > { %v329_v36 = vpack.c.bf16 %v305_v0, %v304_v48  ;;  %v330_v39 = vpack.c.bf16 %v307_v20, %v306_v18  ;;  %v5930_v53 = vcombine.low %v2696_v24, %v2696_v24  ;;  %v2927_v52 = vshrl.u32 %v5945_v59, 16  ;;  %v2698_v48 = vld [vmem:[%s7796_s11 + $0x50] sm:$0xf] }
  0x3f   : > { %v652_v22 = vrot.slane %v650_v15, 1  ;;  %v2925_v57 = vor.u32 %v2923_v45, %v8069_v16  ;;  %v641_v44 = vor.u32 %v640_v9, %v636_v13  ;;  %v2930_v3 = vshll.u32 %v5945_v59, 16 }
  0x40   : > { %v360_v25 = vshrl.u32 %v329_v36, 16  ;;  %v431_v7 = vshll.u32 %v329_v36, 16  ;;  %v363_v35 = vshrl.u32 %v330_v39, 16  ;;  %v8087_v9 = vrot.slane %v2927_v52, 7 }
  0x41   : > { %v653_v43 = vor.u32 %v652_v22, %v648_v49  ;;  %v8076_v40 = vsel %vm7837_vm4, %v2780_v19, %v2925_v57  ;;  %v8083_v0 = vsel %vm574_vm5, %v641_v44, %v645_v10  ;;  %v435_v45 = vshll.u32 %v330_v39, 16  ;;  %v8090_v22 = vld [vmem:[%s7796_s11 + $0x54] sm:$0xf] }
  0x42   : > { %9612 = vst [vmem:[#allocation19_spill] sm:$0xff] %v8083_v0  ;;  %6812 = vmatprep.mubr.msk.bf16.mxu0 %vm755_vm3, %v8076_v40  ;;  %9613 = vst [vmem:[#allocation20_spill] sm:$0xff] %v8087_v9  ;;  %v430_v59 = vrot.slane %v360_v25, 7  ;;  %6502 = vmatprep.mubr.msk.bf16.mxu1 %vm755_vm3, %v8083_v0  ;;  %v505_v13 = vrot.slane %v431_v7, 7  ;;  %v434_v18 = vrot.slane %v363_v35, 7  ;;  %v2786_v44 = vshrl.u32 %v5930_v53, 16 }
  0x43   : > { %9614 = vst [vmem:[#allocation21_spill] sm:$0xff] %v8090_v22  ;;  %v8095_v19 = vsel %vm574_vm5, %v653_v43, %v657_v26  ;;  %v2932_v52 = vor.u32 %v2930_v3, %v8087_v9  ;;  %v506_v20 = vrot.slane %v435_v45, 7  ;;  %v5946_v49 = vcombine.low %v2696_v24, %v8079_v51  ;;  %v308_v43 = vld [vmem:[%s7801_s14 + $0x90] sm:$0xff] }
  0x44   : > { %9615 = vst [vmem:[#allocation22_spill] sm:$0xff] %v8095_v19  ;;  %6503 = vmatmul.mubr.msk.bf16.gmra.mrb[12].mxu1 %vm755_vm3, %v8095_v19  ;;  %v433_v10 = vor.u32 %v431_v7, %v430_v59  ;;  %v8103_v15 = vsel %vm7837_vm4, %v430_v59, %v505_v13  ;;  %v437_v26 = vor.u32 %v435_v45, %v434_v18  ;;  %v309_v59 = vld [vmem:[%s7801_s14 + $0x98] sm:$0xff]  ;;  %v310_v45 = vld [vmem:[%s7801_s14 + $0xa0] sm:$0xff]  ;;  %v311_v13 = vld [vmem:[%s7801_s14 + $0xa8] sm:$0xff] }
  0x45   : > { %9616 = vst [vmem:[#allocation23_spill] sm:$0xff] %v8103_v15  ;;  %v5931_v36 = vcombine.low %v2698_v48, %v2698_v48  ;;  %v5947_v53 = vcombine.low %v2698_v48, %v8090_v22  ;;  %v8108_v57 = vsel %vm7837_vm4, %v2783_v32, %v2932_v52  ;;  %v667_v24 = vshll.u32 %v8103_v15, 16  ;;  %v2700_v19 = vld [vmem:[%s7796_s11 + $0x58] sm:$0xf] }
  0x46   : > { %9617 = vst [vmem:[#allocation24_spill] sm:$0xff] %v8108_v57  ;;  %v8112_v3 = vsel %vm7837_vm4, %v360_v25, %v433_v10  ;;  %v8117_v39 = vsel %vm7837_vm4, %v434_v18, %v506_v20  ;;  %6813 = vmatmul.mubr.msk.bf16.gmra.mrb[16].mxu0 %vm755_vm3, %v8108_v57  ;;  %v8126_v25 = vsel %vm7837_vm4, %v363_v35, %v437_v26  ;;  %v2934_v20 = vshrl.u32 %v5946_v49, 16 }
  0x47   : > { %9618 = vst [vmem:[#allocation25_spill] sm:$0xff] %v8112_v3  ;;  %9619 = vst [vmem:[#allocation26_spill] sm:$0xff] %v8117_v39  ;;  %v660_v7 = vshrl.u32 %v8112_v3, 16  ;;  %v662_v32 = vshll.u32 %v8112_v3, 16  ;;  %v679_v48 = vshll.u32 %v8117_v39, 16  ;;  %v669_v18 = vrot.slane %v667_v24, 1 }
  0x48   : > { %9620 = vst [vmem:[#allocation27_spill] sm:$0xff] %v8126_v25  ;;  %v672_v52 = vshrl.u32 %v8126_v25, 16  ;;  %v674_v10 = vshll.u32 %v8126_v25, 16  ;;  %v2937_v11 = vshll.u32 %v5946_v49, 16  ;;  %v2789_v3 = vshrl.u32 %v5931_v36, 16 }
  0x49   : > { %v664_v0 = vrot.slane %v662_v32, 1  ;;  %v681_v15 = vrot.slane %v679_v48, 1  ;;  %v8138_v26 = vrot.slane %v2934_v20, 7  ;;  %v2941_v39 = vshrl.u32 %v5947_v53, 16 }
  0x4a   : > { %v676_v35 = vrot.slane %v674_v10, 1  ;;  %v2944_v63 = vshll.u32 %v5947_v53, 16  ;;  %v331_v60 = vpack.c.bf16 %v309_v59, %v308_v43  ;;  %v332_v24 = vpack.c.bf16 %v311_v13, %v310_v45 }
  0x4b   : > { %9622 = vst [vmem:[#allocation29_spill] sm:$0xff] %v8138_v26  ;;  %v665_v57 = vor.u32 %v664_v0, %v660_v7  ;;  %v5932_v22 = vcombine.low %v2700_v19, %v2700_v19  ;;  %v2939_v25 = vor.u32 %v2937_v11, %v8138_v26  ;;  %v8141_v2 = vrot.slane %v2941_v39, 7  ;;  %v2702_v39 = vld [vmem:[%s7796_s11 + $0x60] sm:$0xf] }
  0x4c   : > { %v677_v9 = vor.u32 %v676_v35, %v672_v52  ;;  %v5948_v49 = vcombine.low %v2700_v19, %v8136_v41  ;;  %v366_v32 = vshrl.u32 %v331_v60, 16  ;;  %v439_v48 = vshll.u32 %v331_v60, 16  ;;  %v312_v35 = vld [vmem:[%s7801_s14 + $0xb0] sm:$0xff] }
  0x4d   : > { %9623 = vst [vmem:[#allocation30_spill] sm:$0xff] %v8141_v2  ;;  %v8145_v36 = vsel %vm574_vm5, %v665_v57, %v669_v18  ;;  %v369_v10 = vshrl.u32 %v332_v24, 16  ;;  %v8154_v11 = vsel %vm7837_vm4, %v2786_v44, %v2939_v25  ;;  %v2946_v53 = vor.u32 %v2944_v63, %v8141_v2 }
  0x4e   : > { %9624 = vst [vmem:[#allocation31_spill] sm:$0xff] %v8145_v36  ;;  %6506 = vmatprep.mubr.msk.bf16.mxu1 %vm755_vm3, %v8145_v36  ;;  %v8150_v0 = vsel %vm574_vm5, %v677_v9, %v681_v15  ;;  %9626 = vst [vmem:[#allocation33_spill] sm:$0xff] %v8154_v11  ;;  %v443_v19 = vshll.u32 %v332_v24, 16  ;;  %6816 = vmatprep.mubr.msk.bf16.mxu0 %vm755_vm3, %v8154_v11  ;;  %v438_v60 = vrot.slane %v366_v32, 7  ;;  %v507_v57 = vrot.slane %v439_v48, 7 }
  0x4f   : > { %9625 = vst [vmem:[#allocation32_spill] sm:$0xff] %v8150_v0  ;;  %6507 = vmatmul.mubr.msk.bf16.gmra.mrb[16].mxu1 %vm755_vm3, %v8150_v0  ;;  %v442_v43 = vrot.slane %v369_v10, 7  ;;  %v2792_v9 = vshrl.u32 %v5932_v22, 16  ;;  %v8163_v15 = vld [vmem:[%s7796_s11 + $0x64] sm:$0xf]  ;;  %v8167_v44 = vsel %vm7837_vm4, %v2789_v3, %v2946_v53  ;;  %v2948_v7 = vshrl.u32 %v5948_v49, 16 }
  0x50   : > { %9627 = vst [vmem:[#allocation34_spill] sm:$0xff] %v8163_v15  ;;  %9628 = vst [vmem:[#allocation35_spill] sm:$0xff] %v8167_v44  ;;  %v508_v63 = vrot.slane %v443_v19, 7  ;;  %v2951_v25 = vshll.u32 %v5948_v49, 16  ;;  %6817 = vmatmul.mubr.msk.bf16.gmra.mrb[20].mxu0 %vm755_vm3, %v8167_v44  ;;  %v441_v59 = vor.u32 %v439_v48, %v438_v60  ;;  %v8173_v45 = vsel %vm7837_vm4, %v438_v60, %v507_v57  ;;  %v314_v60 = vld [vmem:[%s7801_s14 + $0xc0] sm:$0xff]  ;;  %v315_v57 = vld [vmem:[%s7801_s14 + $0xc8] sm:$0xff] }
  0x51   : > { %9629 = vst [vmem:[#allocation36_spill] sm:$0xff] %v8173_v45  ;;  %v445_v22 = vor.u32 %v443_v19, %v442_v43  ;;  %v5933_v13 = vcombine.low %v2702_v39, %v2702_v39  ;;  %v691_v18 = vshll.u32 %v8173_v45, 16  ;;  %v8180_v52 = vrot.slane %v2948_v7, 7  ;;  %v313_v19 = vld [vmem:[%s7801_s14 + $0xb8] sm:$0xff]  ;;  %v2704_v45 = vld [vmem:[%s7796_s11 + $0x68] sm:$0xf] }
  0x52   : > { %v8178_v3 = vsel %vm7837_vm4, %v442_v43, %v508_v63  ;;  %v5949_v20 = vcombine.low %v2702_v39, %v8163_v15  ;;  %v8186_v24 = vsel %vm7837_vm4, %v366_v32, %v441_v59  ;;  %v333_v36 = vpack.c.bf16 %v313_v19, %v312_v35 }
  0x53   : > { %9630 = vst [vmem:[#allocation37_spill] sm:$0xff] %v8178_v3  ;;  %9631 = vst [vmem:[#allocation38_spill] sm:$0xff] %v8180_v52  ;;  %v8190_v49 = vsel %vm7837_vm4, %v369_v10, %v445_v22  ;;  %v703_v48 = vshll.u32 %v8178_v3, 16  ;;  %v2795_v53 = vshrl.u32 %v5933_v13, 16  ;;  %v684_v43 = vshrl.u32 %v8186_v24, 16 }
  0x54   : > { %9632 = vst [vmem:[#allocation39_spill] sm:$0xff] %v8186_v24  ;;  %9633 = vst [vmem:[#allocation40_spill] sm:$0xff] %v8190_v49  ;;  %v686_v39 = vshll.u32 %v8186_v24, 16  ;;  %v693_v63 = vrot.slane %v691_v18, 1  ;;  %v696_v7 = vshrl.u32 %v8190_v49, 16  ;;  %v698_v32 = vshll.u32 %v8190_v49, 16 }
  0x55   : > { %v705_v59 = vrot.slane %v703_v48, 1  ;;  %v2953_v10 = vor.u32 %v2951_v25, %v8180_v52  ;;  %v2955_v22 = vshrl.u32 %v5949_v20, 16  ;;  %v2958_v13 = vshll.u32 %v5949_v20, 16 }
  0x56   : > { %v688_v0 = vrot.slane %v686_v39, 1  ;;  %v334_v3 = vpack.c.bf16 %v315_v57, %v314_v60  ;;  %v700_v44 = vrot.slane %v698_v32, 1  ;;  %v5934_v24 = vcombine.low %v2704_v45, %v2704_v45  ;;  %v8211_v39 = vld [vmem:[%s7796_s11 + $0x6c] sm:$0xf] }
  0x57   : > { %v8204_v2 = vsel %vm7837_vm4, %v2792_v9, %v2953_v10  ;;  %v8206_v18 = vrot.slane %v2955_v22, 7  ;;  %v372_v25 = vshrl.u32 %v333_v36, 16  ;;  %v447_v48 = vshll.u32 %v333_v36, 16  ;;  %9636 = vst [vmem:[#allocation43_spill] sm:$0xff] %v8211_v39 }
  0x58   : > { %9634 = vst [vmem:[#allocation41_spill] sm:$0xff] %v8204_v2  ;;  %v689_v15 = vor.u32 %v688_v0, %v684_v43  ;;  %6820 = vmatprep.mubr.msk.bf16.mxu0 %vm755_vm3, %v8204_v2  ;;  %v375_v49 = vshrl.u32 %v334_v3, 16  ;;  %v701_v20 = vor.u32 %v700_v44, %v696_v7  ;;  %v451_v19 = vshll.u32 %v334_v3, 16 }
  0x59   : > { %9635 = vst [vmem:[#allocation42_spill] sm:$0xff] %v8206_v18  ;;  %v2960_v35 = vor.u32 %v2958_v13, %v8206_v18  ;;  %v2798_v60 = vshrl.u32 %v5934_v24, 16  ;;  %v446_v57 = vrot.slane %v372_v25, 7  ;;  %v509_v32 = vrot.slane %v447_v48, 7 }
  0x5a   : > { %v8215_v9 = vsel %vm574_vm5, %v689_v15, %v693_v63  ;;  %v450_v0 = vrot.slane %v375_v49, 7  ;;  %v8220_v36 = vsel %vm574_vm5, %v701_v20, %v705_v59  ;;  %v510_v3 = vrot.slane %v451_v19, 7  ;;  %v317_v20 = vld [vmem:[%s7801_s14 + $0xd8] sm:$0xff] }
  0x5b   : > { %9637 = vst [vmem:[#allocation44_spill] sm:$0xff] %v8215_v9  ;;  %6510 = vmatprep.mubr.msk.bf16.mxu1 %vm755_vm3, %v8215_v9  ;;  %9638 = vst [vmem:[#allocation45_spill] sm:$0xff] %v8220_v36  ;;  %v8224_v44 = vsel %vm7837_vm4, %v2795_v53, %v2960_v35  ;;  %v5950_v24 = vcombine.low %v2704_v45, %v8211_v39  ;;  %v449_v15 = vor.u32 %v447_v48, %v446_v57  ;;  %v316_v53 = vld [vmem:[%s7801_s14 + $0xd0] sm:$0xff] }
  0x5c   : > { %9639 = vst [vmem:[#allocation46_spill] sm:$0xff] %v8224_v44  ;;  %6511 = vmatmul.mubr.msk.bf16.gmra.mrb[20].mxu1 %vm755_vm3, %v8220_v36  ;;  %6821 = vmatmul.mubr.msk.bf16.gmra.mrb[24].mxu0 %vm755_vm3, %v8224_v44  ;;  %v8233_v43 = vsel %vm7837_vm4, %v446_v57, %v509_v32  ;;  %v453_v63 = vor.u32 %v451_v19, %v450_v0  ;;  %v2706_v48 = vld [vmem:[%s7796_s11 + $0x70] sm:$0xf]  ;;  %v8256_v57 = vld [vmem:[%s7796_s11 + $0x74] sm:$0xf] }
  0x5d   : > { %9640 = vst [vmem:[#allocation47_spill] sm:$0xff] %v8233_v43  ;;  %v9641_v7 = vcombine.low %v7810_v8, %v7810_v8  ;;  %v715_v59 = vshll.u32 %v8233_v43, 16  ;;  %v8242_v10 = vsel %vm7837_vm4, %v450_v0, %v510_v3  ;;  %v2962_v22 = vshrl.u32 %v5950_v24, 16  ;;  %v319_v0 = vld [vmem:[%s7801_s14 + $0xe8] sm:$0xff] }
  0x5e   : > { %9642 = vst [vmem:[#allocation48_spill] sm:$0xff] %v8242_v10  ;;  %v2965_v13 = vshll.u32 %v5950_v24, 16  ;;  %v8248_v35 = vsel %vm7837_vm4, %v372_v25, %v449_v15  ;;  %v8252_v19 = vsel %vm7837_vm4, %v375_v49, %v453_v63  ;;  %v727_v8 = vshll.u32 %v8242_v10, 16 }
  0x5f   : > { %v3031_v45 = vshll.u32 %v9641_v7, 16  ;;  %9643 = vst [vmem:[#allocation49_spill] sm:$0xff] %v8248_v35  ;;  %9644 = vst [vmem:[#allocation50_spill] sm:$0xff] %v8252_v19  ;;  %v5935_v32 = vcombine.low %v2706_v48, %v2706_v48  ;;  %v318_v7 = vld [vmem:[%s7801_s14 + $0xe0] sm:$0xff]  ;;  %v708_v3 = vshrl.u32 %v8248_v35, 16  ;;  %v710_v24 = vshll.u32 %v8248_v35, 16 }
  0x60   : > { %v717_v36 = vrot.slane %v715_v59, 1  ;;  %v720_v9 = vshrl.u32 %v8252_v19, 16  ;;  %v722_v25 = vshll.u32 %v8252_v19, 16  ;;  %v729_v15 = vrot.slane %v727_v8, 1 }
  0x61   : > { %v8264_v43 = vrot.slane %v2962_v22, 7  ;;  %v2801_v49 = vshrl.u32 %v5935_v32, 16  ;;  %v712_v63 = vrot.slane %v710_v24, 1  ;;  %v5951_v10 = vcombine.low %v2706_v48, %v8256_v57 }
  0x62   : > { %v335_v44 = vpack.c.bf16 %v317_v20, %v316_v53  ;;  %v336_v18 = vpack.c.bf16 %v319_v0, %v318_v7  ;;  %v724_v2 = vrot.slane %v722_v25, 1  ;;  %v3033_v52 = vrot.slane %v3031_v45, 3 }
  0x63   : > { %v2967_v39 = vor.u32 %v2965_v13, %v8264_v43  ;;  %v3392_v35 = vshrl.u32 %v7850_v50, 16  ;;  %v713_v59 = vor.u32 %v712_v63, %v708_v3  ;;  %v2969_v26 = vshrl.u32 %v5951_v10, 16 }
  0x64   : > { %v2972_v41 = vshll.u32 %v5951_v10, 16  ;;  %v378_v11 = vshrl.u32 %v335_v44, 16  ;;  %v725_v19 = vor.u32 %v724_v2, %v720_v9  ;;  %v455_v8 = vshll.u32 %v335_v44, 16 }
  0x65   : > { %v8271_v22 = vsel %vm7837_vm4, %v2798_v60, %v2967_v39  ;;  %v381_v32 = vshrl.u32 %v336_v18, 16  ;;  %v8274_v53 = vsel %vm574_vm5, %v713_v59, %v717_v36  ;;  %v8278_v45 = vrot.slane %v2969_v26, 7 }
  0x66   : > { %9645 = vst [vmem:[#allocation51_spill] sm:$0xff] %v8274_v53  ;;  %6824 = vmatprep.mubr.msk.bf16.mxu0 %vm755_vm3, %v8271_v22  ;;  %v454_v13 = vrot.slane %v378_v11, 7  ;;  %v459_v48 = vshll.u32 %v336_v18, 16  ;;  %6514 = vmatprep.mubr.msk.bf16.mxu1 %vm755_vm3, %v8274_v53  ;;  %v8283_v2 = vsel %vm574_vm5, %v725_v19, %v729_v15  ;;  %v511_v39 = vrot.slane %v455_v8, 7 }
  0x67   : > { %9646 = vst [vmem:[#allocation52_spill] sm:$0xff] %v8283_v2  ;;  %v458_v60 = vrot.slane %v381_v32, 7  ;;  %v8288_v9 = vsel %vm7837_vm4, %v7831_v33, %v3033_v52  ;;  %6515 = vmatmul.mubr.msk.bf16.gmra.mrb[24].mxu1 %vm755_vm3, %v8283_v2  ;;  %v2974_v26 = vor.u32 %v2972_v41, %v8278_v45  ;;  %v3394_v44 = vshll.u32 %v7850_v50, 16 }
  0x68   : > { %v457_v36 = vor.u32 %v455_v8, %v454_v13  ;;  %v512_v18 = vrot.slane %v459_v48, 7  ;;  %v8296_v10 = vsel %vm7837_vm4, %v454_v13, %v511_v39  ;;  %v3399_v19 = vshll.u32 %v8288_v9, 16 }
  0x69   : > { %v461_v20 = vor.u32 %v459_v48, %v458_v60  ;;  %v9647_v7 = vrot.slane %v7833_v34, 3  ;;  %v8308_v41 = vsel %vm7837_vm4, %v2801_v49, %v2974_v26  ;;  %v739_v0 = vshll.u32 %v8296_v10, 16 }
  0x6a   : > { %9648 = vst [vmem:[#allocation53_spill] sm:$0xff] %v8308_v41  ;;  %v8312_v52 = vsel %vm7837_vm4, %v378_v11, %v457_v36  ;;  %v8317_v3 = vsel %vm7837_vm4, %v458_v60, %v512_v18  ;;  %6825 = vmatmul.mubr.msk.bf16.gmra.mrb[28].mxu0 %vm755_vm3, %v8308_v41  ;;  %v3396_v63 = vrot.slane %v3394_v44, 1  ;;  %v3401_v13 = vrot.slane %v3399_v19, 1 }
  0x6b   : > { %v8304_v33 = vsel %vm7837_vm4, %v7841_v38, %v9647_v7  ;;  %9649 = vst [vmem:[#allocation54_spill] sm:$0xff] %v8312_v52  ;;  %9650 = vst [vmem:[#allocation55_spill] sm:$0xff] %v8317_v3  ;;  %v732_v34 = vshrl.u32 %v8312_v52, 16  ;;  %v734_v38 = vshll.u32 %v8312_v52, 16  ;;  %v8325_v24 = vsel %vm7837_vm4, %v381_v32, %v461_v20 }
  0x6c   : > { %9651 = vst [vmem:[#allocation56_spill] sm:$0xff] %v8325_v24  ;;  %v751_v11 = vshll.u32 %v8317_v3, 16  ;;  %v741_v25 = vrot.slane %v739_v0, 1  ;;  %v744_v15 = vshrl.u32 %v8325_v24, 16  ;;  %v746_v49 = vshll.u32 %v8325_v24, 16 }
  0x6d   : > { %v736_v59 = vrot.slane %v734_v38, 1  ;;  %v9652_v48 = vshrl.u32 %v7861_v55, 16  ;;  %v3397_v26 = vor.u32 %v3396_v63, %v3392_v35  ;;  %v3410_v32 = vshll.u32 %v8304_v33, 16 }
  0x6e   : > { %v753_v8 = vrot.slane %v751_v11, 1  ;;  %v748_v60 = vrot.slane %v746_v49, 1  ;;  %v5955_v36 = vcombine.low %v7825_v27, %v7825_v27  ;;  %v3414_v20 = vshrl.u32 %v7906_v29, 16 }
  0x6f   : > { %v3408_v39 = vor.u32 %v7884_v4, %v9652_v48  ;;  %v737_v18 = vor.u32 %v736_v59, %v732_v34  ;;  %v3416_v7 = vshll.u32 %v7906_v29, 16  ;;  %v5956_v44 = vcombine.low %v7895_v14, %v7895_v14 }
  0x70   : > { %v749_v19 = vor.u32 %v748_v60, %v744_v15  ;;  %v8341_v0 = vsel %vm574_vm5, %v3397_v26, %v3401_v13  ;;  %v3412_v4 = vrot.slane %v3410_v32, 1  ;;  %v3039_v38 = vshll.u32 %v5955_v36, 16  ;;  %v8369_v13 = vld [vmem:[%s9447_s3 + $0x6] sm:$0x3] }
  0x71   : > { %9653 = vst [vmem:[#allocation57_spill] sm:$0xff] %v8341_v0  ;;  %v8344_v35 = vsel %vm574_vm5, %v737_v18, %v741_v25  ;;  %6830 = vmatprep.mubr.msk.bf16.mxu0 %vm755_vm3, %v8341_v0  ;;  %v3418_v27 = vrot.slane %v3416_v7, 1  ;;  %v3043_v34 = vshll.u32 %v5956_v44, 16  ;;  %v3425_v11 = vshrl.u32 %v7960_v23, 16 }
  0x72   : > { %9654 = vst [vmem:[#allocation58_spill] sm:$0xff] %v8344_v35  ;;  %6518 = vmatprep.mubr.msk.bf16.mxu1 %vm755_vm3, %v8344_v35  ;;  %v8352_v14 = vsel %vm574_vm5, %v749_v19, %v753_v8  ;;  %v8355_v15 = vsel %vm574_vm5, %v3408_v39, %v3412_v4  ;;  %v3041_v49 = vrot.slane %v3039_v38, 3  ;;  %v3427_v25 = vshll.u32 %v7960_v23, 16 }
  0x73   : > { %9655 = vst [vmem:[#allocation59_spill] sm:$0xff] %v8352_v14  ;;  %9656 = vst [vmem:[#allocation60_spill] sm:$0xff] %v8355_v15  ;;  %6519 = vmatmul.mubr.msk.bf16.gmra.mrb[28].mxu1 %vm755_vm3, %v8352_v14  ;;  %6831 = vmatmul.mubr.msk.bf16.vlgmr.msra.gmra.mrb[0].mxu0 %vm755_vm3, %v8355_v15  ;;  %v1282_v63 = vsel %vm801_vm0, %v7935_v1, 0  ;;  %v3045_v59 = vrot.slane %v3043_v34, 3  ;;  %v5957_v8 = vcombine.low %v7902_v6, %v7902_v6  ;;  %v3438_v39 = vshll.u32 %v7969_v31, 16 }
  0x74   : > { %6524 = vmatprep.mubr.msk.bf16.mxu1 %vm755_vm3, %v7865_v56  ;;  %6834 = vmatprep.mubr.msk.bf16.mxu0 %vm755_vm3, %v8341_v0  ;;  %v8378_v48 = vsel %vm7837_vm4, %v7872_v61, %v3041_v49  ;;  %v3429_v1 = vrot.slane %v3427_v25, 1  ;;  %v5958_v6 = vcombine.low %v7952_v17, %v7952_v17  ;;  %v3419_v60 = vor.u32 %v3418_v27, %v3414_v20 }
  0x75   : > { %6863 = vmatpush3.bf16.msra.mxu0 %v7829_v28  ;;  %v3421_v26 = vshll.u32 %v8378_v48, 16  ;;  %v8388_v32 = vsel %vm7837_vm4, %v7929_v62, %v3045_v59  ;;  %v3047_v36 = vshll.u32 %v5957_v8, 16  ;;  %v3436_v7 = vshrl.u32 %v7969_v31, 16 }
  0x76   : > { %v3430_v18 = vor.u32 %v3429_v1, %v3425_v11  ;;  %v3432_v61 = vshll.u32 %v8388_v32, 16  ;;  %v3051_v44 = vshll.u32 %v5958_v6, 16  ;;  %7656 = vmatprep.subr.msk.bf16.mxu0 %vm801_vm0, %v8369_v13  ;;  %v3449_v20 = vshll.u32 %v8014_v42, 16  ;;  %v8418_v1 = vld [vmem:[%s9446_s2 + $0x6] sm:$0x3] }
  0x77   : > { %v3423_v17 = vrot.slane %v3421_v26, 1  ;;  %v3049_v28 = vrot.slane %v3047_v36, 3  ;;  %v5959_v19 = vcombine.low %v7963_v30, %v7963_v30  ;;  %v3440_v62 = vrot.slane %v3438_v39, 1 }
  0x78   : > { %v3434_v4 = vrot.slane %v3432_v61, 1  ;;  %v3053_v38 = vrot.slane %v3051_v44, 3  ;;  %v3447_v27 = vshrl.u32 %v8014_v42, 16  ;;  %v3451_v49 = vrot.slane %v3449_v20, 1 }
  0x79   : > { %v8399_v34 = vsel %vm574_vm5, %v3419_v60, %v3423_v17  ;;  %v8404_v11 = vsel %vm7837_vm4, %v7943_v5, %v3049_v28  ;;  %v3055_v25 = vshll.u32 %v5959_v19, 16  ;;  %v3460_v6 = vshll.u32 %v8034_v58, 16 }
  0x7a   : > { %9657 = vst [vmem:[#allocation61_spill] sm:$0xff] %v8399_v34  ;;  %v8407_v59 = vsel %vm574_vm5, %v3430_v18, %v3434_v4  ;;  %v3443_v30 = vshll.u32 %v8404_v11, 16  ;;  %v8413_v8 = vsel %vm7837_vm4, %v8006_v21, %v3053_v38  ;;  %v5960_v21 = vcombine.low %v8017_v46, %v8017_v46 }
  0x7b   : > { %9658 = vst [vmem:[#allocation62_spill] sm:$0xff] %v8407_v59  ;;  %6525 = vmatmul.mubr.msk.bf16.vlgmr.msra.gmra.mrb[0].mxu1 %vm755_vm3, %v7892_v12  ;;  %6835 = vmatmul.mubr.msk.bf16.gmra.mrb[4].mxu0 %vm755_vm3, %v8399_v34  ;;  %v3454_v5 = vshll.u32 %v8413_v8, 16  ;;  %v3057_v39 = vrot.slane %v3055_v25, 3  ;;  %v3441_v60 = vor.u32 %v3440_v62, %v3436_v7  ;;  %v3452_v36 = vor.u32 %v3451_v49, %v3447_v27 }
  0x7c   : > { %6557 = vmatpush3.bf16.msra.mxu1 %v1282_v63  ;;  %6528 = vmatprep.mubr.msk.bf16.mxu1 %vm755_vm3, %v7865_v56  ;;  %v3445_v26 = vrot.slane %v3443_v30, 1  ;;  %v3471_v18 = vshll.u32 %v8076_v40, 16  ;;  %v3059_v17 = vshll.u32 %v5960_v21, 16  ;;  %v5961_v46 = vcombine.low %v8050_v47, %v8050_v47 }
  0x7d   : > { %6838 = vmatprep.mubr.msk.bf16.mxu0 %vm755_vm3, %v8407_v59  ;;  %v3456_v61 = vrot.slane %v3454_v5, 1  ;;  %v8436_v44 = vsel %vm7837_vm4, %v8010_v54, %v3057_v39  ;;  %7647 = vmatprep.subr.msk.bf16.mxu1 %vm801_vm0, %v8418_v1  ;;  %v3458_v63 = vshrl.u32 %v8034_v58, 16  ;;  %v3462_v7 = vrot.slane %v3460_v6, 1  ;;  %v9661_v5 = vld [vmem:[#allocation7_spill] sm:$0xff]  ;;  %v9662_v6 = vld [vmem:[#allocation20_spill] sm:$0xff] }
  0x7e   : > { %v3465_v28 = vshll.u32 %v8436_v44, 16  ;;  %v3061_v20 = vrot.slane %v3059_v17, 3  ;;  %v3063_v19 = vshll.u32 %v5961_v46, 16  ;;  %v8445_v4 = vsel %vm574_vm5, %v3441_v60, %v3445_v26  ;;  %v9664_v26 = vld [vmem:[#allocation11_spill] sm:$0xff]  ;;  %v9666_v17 = vld [vmem:[#allocation33_spill] sm:$0xff] }
  0x7f   : > { %9659 = vst [vmem:[#allocation63_spill] sm:$0xff] %v8445_v4  ;;  %v3469_v54 = vshrl.u32 %v8076_v40, 16  ;;  %v5962_v62 = vcombine.low %v8079_v51, %v8079_v51  ;;  %v8451_v47 = vsel %vm574_vm5, %v3452_v36, %v3456_v61  ;;  %v3473_v27 = vrot.slane %v3471_v18, 1  ;;  %v9665_v36 = vld [vmem:[#allocation24_spill] sm:$0xff] }
  0x80   : > { %9660 = vst [vmem:[#allocation64_spill] sm:$0xff] %v8451_v47  ;;  %v8456_v38 = vsel %vm7837_vm4, %v8069_v16, %v3061_v20  ;;  %v3065_v49 = vrot.slane %v3063_v19, 3  ;;  %v3463_v51 = vor.u32 %v3462_v7, %v3458_v63  ;;  %v3467_v39 = vrot.slane %v3465_v28, 1  ;;  %v9663_v16 = vld [vmem:[#allocation21_spill] sm:$0xff]  ;;  %v9667_v20 = vld [vmem:[#allocation28_spill] sm:$0xff] }
  0x81   : > { %v3476_v25 = vshll.u32 %v8456_v38, 16  ;;  %v3067_v30 = vshll.u32 %v5962_v62, 16  ;;  %v5963_v60 = vcombine.low %v9663_v16, %v9663_v16  ;;  %v3482_v18 = vshll.u32 %v9665_v36, 16 }
  0x82   : > { %v8466_v21 = vsel %vm7837_vm4, %v9662_v6, %v3065_v49  ;;  %v3493_v46 = vshll.u32 %v9666_v17, 16  ;;  %v3474_v63 = vor.u32 %v3473_v27, %v3469_v54  ;;  %v5964_v19 = vcombine.low %v9667_v20, %v9667_v20  ;;  %v9668_v49 = vld [vmem:[#allocation29_spill] sm:$0xff] }
  0x83   : > { %6529 = vmatmul.mubr.msk.bf16.gmra.mrb[4].mxu1 %vm755_vm3, %v9661_v5  ;;  %6839 = vmatmul.mubr.msk.bf16.gmra.mrb[8].mxu0 %vm755_vm3, %v8445_v4  ;;  %v3069_v61 = vrot.slane %v3067_v30, 3  ;;  %v3478_v7 = vrot.slane %v3476_v25, 1  ;;  %v3071_v28 = vshll.u32 %v5963_v60, 16  ;;  %v3480_v62 = vshrl.u32 %v9665_v36, 16  ;;  %v9670_v60 = vld [vmem:[#allocation34_spill] sm:$0xff]  ;;  %v9678_v4 = vld [vmem:[#allocation41_spill] sm:$0xff] }
  0x84   : > { %6532 = vmatprep.mubr.msk.bf16.mxu1 %vm755_vm3, %v9664_v26  ;;  %6842 = vmatprep.mubr.msk.bf16.mxu0 %vm755_vm3, %v8451_v47  ;;  %v8485_v16 = vsel %vm574_vm5, %v3463_v51, %v3467_v39  ;;  %v3491_v30 = vshrl.u32 %v9666_v17, 16  ;;  %v3075_v35 = vshll.u32 %v5964_v19, 16  ;;  %v3484_v54 = vrot.slane %v3482_v18, 1  ;;  %v9673_v19 = vld [vmem:[#allocation12_spill] sm:$0xff]  ;;  %v9674_v18 = vld [vmem:[#allocation38_spill] sm:$0xff] }
  0x85   : > { %v8482_v6 = vsel %vm7837_vm4, %v9668_v49, %v3069_v61  ;;  %9669 = vst [vmem:[#allocation7_spill] sm:$0xff] %v8485_v16  ;;  %v3073_v14 = vrot.slane %v3071_v28, 3  ;;  %v3487_v27 = vshll.u32 %v8466_v21, 16  ;;  %v3495_v25 = vrot.slane %v3493_v46, 1  ;;  %v9672_v49 = vld [vmem:[#allocation30_spill] sm:$0xff] }
  0x86   : > { %v5965_v20 = vcombine.low %v9670_v60, %v9670_v60  ;;  %v8492_v2 = vsel %vm574_vm5, %v3474_v63, %v3478_v7  ;;  %v3498_v61 = vshll.u32 %v8482_v6, 16  ;;  %v3077_v39 = vrot.slane %v3075_v35, 3  ;;  %v9675_v63 = vld [vmem:[#allocation43_spill] sm:$0xff]  ;;  %v9676_v60 = vld [vmem:[#allocation17_spill] sm:$0xff] }
  0x87   : > { %9671 = vst [vmem:[#allocation20_spill] sm:$0xff] %v8492_v2  ;;  %v8498_v51 = vsel %vm7837_vm4, %v9672_v49, %v3073_v14  ;;  %v5966_v7 = vcombine.low %v9675_v63, %v9675_v63  ;;  %v3485_v35 = vor.u32 %v3484_v54, %v3480_v62  ;;  %v3489_v14 = vrot.slane %v3487_v27, 1 }
  0x88   : > { %v3079_v28 = vshll.u32 %v5965_v20, 16  ;;  %v8507_v46 = vsel %vm7837_vm4, %v9674_v18, %v3077_v39  ;;  %v9677_v20 = vld [vmem:[#allocation35_spill] sm:$0xff]  ;;  %v3500_v47 = vrot.slane %v3498_v61, 1  ;;  %v3515_v59 = vshll.u32 %v9678_v4, 16  ;;  %v9679_v39 = vld [vmem:[#allocation42_spill] sm:$0xff] }
  0x89   : > { %v3504_v49 = vshll.u32 %v9677_v20, 16  ;;  %v3083_v63 = vshll.u32 %v5966_v7, 16  ;;  %v3502_v34 = vshrl.u32 %v9677_v20, 16  ;;  %v8524_v0 = vsel %vm574_vm5, %v3485_v35, %v3489_v14  ;;  %v9682_v7 = vld [vmem:[#allocation18_spill] sm:$0xff]  ;;  %v9683_v35 = vld [vmem:[#allocation25_spill] sm:$0xff] }
  0x8a   : > { %v3081_v53 = vrot.slane %v3079_v28, 3  ;;  %9680 = vst [vmem:[#allocation21_spill] sm:$0xff] %v8524_v0  ;;  %v3509_v54 = vshll.u32 %v8498_v51, 16  ;;  %v3513_v27 = vshrl.u32 %v9678_v4, 16  ;;  %v3520_v61 = vshll.u32 %v8507_v46, 16 }
  0x8b   : > { %6533 = vmatmul.mubr.msk.bf16.gmra.mrb[8].mxu1 %vm755_vm3, %v9673_v19  ;;  %6843 = vmatmul.mubr.msk.bf16.gmra.mrb[12].mxu0 %vm755_vm3, %v8485_v16  ;;  %v3496_v16 = vor.u32 %v3495_v25, %v3491_v30  ;;  %v3506_v62 = vrot.slane %v3504_v49, 1  ;;  %v3517_v25 = vrot.slane %v3515_v59, 1  ;;  %v3085_v28 = vrot.slane %v3083_v63, 3 }
  0x8c   : > { %6536 = vmatprep.mubr.msk.bf16.mxu1 %vm755_vm3, %v9676_v60  ;;  %6846 = vmatprep.mubr.msk.bf16.mxu0 %vm755_vm3, %v8492_v2  ;;  %v8520_v18 = vsel %vm7837_vm4, %v9679_v39, %v3081_v53  ;;  %v5967_v53 = vcombine.low %v8256_v57, %v8256_v57  ;;  %v3511_v59 = vrot.slane %v3509_v54, 1  ;;  %v3522_v39 = vrot.slane %v3520_v61, 1 }
  0x8d   : > { %v8529_v30 = vsel %vm574_vm5, %v3496_v16, %v3500_v47  ;;  %v3507_v47 = vor.u32 %v3506_v62, %v3502_v34  ;;  %v9684_v16 = vld [vmem:[#allocation46_spill] sm:$0xff]  ;;  %v3518_v49 = vor.u32 %v3517_v25, %v3513_v27  ;;  %v3537_v57 = vshll.u32 %v8271_v22, 16 }
  0x8e   : > { %9681 = vst [vmem:[#allocation11_spill] sm:$0xff] %v8529_v30  ;;  %v3526_v14 = vshll.u32 %v9684_v16, 16  ;;  %v3087_v63 = vshll.u32 %v5967_v53, 16  ;;  %v8547_v2 = vsel %vm7837_vm4, %v8264_v43, %v3085_v28  ;;  %v3531_v34 = vshll.u32 %v8520_v18, 16  ;;  %v9687_v53 = vld [vmem:[#allocation27_spill] sm:$0xff] }
  0x8f   : > { %v8551_v15 = vsel %vm574_vm5, %v3507_v47, %v3511_v59  ;;  %v3535_v62 = vshrl.u32 %v8271_v22, 16  ;;  %v8556_v54 = vsel %vm574_vm5, %v3518_v49, %v3522_v39  ;;  %v3539_v27 = vrot.slane %v3537_v57, 1  ;;  %v9688_v43 = vld [vmem:[#allocation39_spill] sm:$0xff] }
  0x90   : > { %9685 = vst [vmem:[#allocation24_spill] sm:$0xff] %v8551_v15  ;;  %9686 = vst [vmem:[#allocation33_spill] sm:$0xff] %v8556_v54  ;;  %v3542_v25 = vshll.u32 %v8547_v2, 16  ;;  %v3089_v61 = vrot.slane %v3087_v63, 3  ;;  %v3533_v47 = vrot.slane %v3531_v34, 1  ;;  %v3548_v59 = vshll.u32 %v8308_v41, 16 }
  0x91   : > { %v3546_v63 = vshrl.u32 %v8308_v41, 16  ;;  %v9692_v34 = vld [vmem:[#allocation49_spill] sm:$0xff] }
  0x92   : > { %v3544_v49 = vrot.slane %v3542_v25, 1  ;;  %v8571_v39 = vsel %vm7837_vm4, %v8278_v45, %v3089_v61  ;;  %v3829_v25 = vrot.slane %v8288_v9, 1  ;;  %v3832_v9 = vrot.slane %v8304_v33, 1  ;;  %v8624_v33 = vld [vmem:[%s9447_s3 + $0x8] sm:$0x3] }
  0x93   : > { %6537 = vmatmul.mubr.msk.bf16.gmra.mrb[12].mxu1 %vm755_vm3, %v9682_v7  ;;  %6847 = vmatmul.mubr.msk.bf16.gmra.mrb[16].mxu0 %vm755_vm3, %v8524_v0  ;;  %v3524_v0 = vshrl.u32 %v9684_v16, 16  ;;  %v3553_v3 = vshll.u32 %v8571_v39, 16 }
  0x94   : > { %6540 = vmatprep.mubr.msk.bf16.mxu1 %vm755_vm3, %v9683_v35  ;;  %6850 = vmatprep.mubr.msk.bf16.mxu0 %vm755_vm3, %v8529_v30  ;;  %v3528_v30 = vrot.slane %v3526_v14, 1  ;;  %v3540_v14 = vor.u32 %v3539_v27, %v3535_v62  ;;  %v3828_v27 = vrot.slane %v7850_v50, 1 }
  0x95   : > { %v3555_v62 = vrot.slane %v3553_v3, 1  ;;  %v1191_v3 = vrot.slane %v7865_v56, 1 }
  0x96   : > { %v3529_v28 = vor.u32 %v3528_v30, %v3524_v0  ;;  %v8579_v0 = vsel %vm574_vm5, %v3540_v14, %v3544_v49  ;;  %v9691_v30 = vld [vmem:[#allocation40_spill] sm:$0xff] }
  0x97   : > { %9690 = vst [vmem:[#allocation29_spill] sm:$0xff] %v8579_v0 }
  0x98   : > { %v8574_v57 = vsel %vm574_vm5, %v3529_v28, %v3533_v47  ;;  %v8595_v28 = vsel %vm1190_vm6, %v3828_v27, %v3829_v25  ;;  %v9694_v47 = vld [vmem:[#allocation50_spill] sm:$0xff]  ;;  %v1194_v25 = vrot.slane %v7892_v12, 1 }
  0x99   : > { %9689 = vst [vmem:[#allocation28_spill] sm:$0xff] %v8574_v57  ;;  %9693 = vst [vmem:[#allocation34_spill] sm:$0xff] %v8595_v28 }
  0x9b   : > { %6541 = vmatmul.mubr.msk.bf16.gmra.mrb[16].mxu1 %vm755_vm3, %v9687_v53  ;;  %6851 = vmatmul.mubr.msk.bf16.gmra.mrb[20].mxu0 %vm755_vm3, %v8551_v15  ;;  %v3550_v15 = vrot.slane %v3548_v59, 1  ;;  %v9695_v59 = vld [vmem:[#allocation2_spill] sm:$0xff] }
  0x9c   : > { %6544 = vmatprep.mubr.msk.bf16.mxu1 %vm755_vm3, %v9688_v43  ;;  %6854 = vmatprep.mubr.msk.bf16.mxu0 %vm755_vm3, %v8556_v54  ;;  %v1192_v14 = vrot.slane %v9695_v59, 1 }
  0x9d   : > { %v3551_v45 = vor.u32 %v3550_v15, %v3546_v63  ;;  %v3831_v15 = vrot.slane %v7861_v55, 1 }
  0x9e   : > { %v8613_v63 = vsel %vm1190_vm6, %v1191_v3, %v1192_v14  ;;  %v3838_v3 = vrot.slane %v8388_v32, 1  ;;  %v1197_v32 = vrot.slane %v9661_v5, 1 }
  0x9f   : > { %v8592_v61 = vsel %vm574_vm5, %v3551_v45, %v3555_v62  ;;  %v8610_v49 = vsel %vm1190_vm6, %v3831_v15, %v3832_v9  ;;  %9696 = vst [vmem:[#allocation30_spill] sm:$0xff] %v8613_v63  ;;  %v4118_v45 = vsel %vm801_vm0, %v8369_v13, 0  ;;  %v9697_v62 = vld [vmem:[#allocation3_spill] sm:$0xff]  ;;  %v3834_v13 = vrot.slane %v7906_v29, 1 }
  0xa0   : > { %v1195_v27 = vrot.slane %v9697_v62, 1  ;;  %v3835_v15 = vrot.slane %v8378_v48, 1  ;;  %v3837_v9 = vrot.slane %v7960_v23, 1  ;;  %v1481_v62 = vsel %vm801_vm0, %v8418_v1, 0  ;;  %v8652_v48 = vld [vmem:[%s9446_s2 + $0x8] sm:$0x3] }
  0xa1   : > { %v9699_v1 = vld [vmem:[#allocation5_spill] sm:$0xff] }
  0xa2   : > { %v8639_v59 = vsel %vm1190_vm6, %v1194_v25, %v1195_v27  ;;  %v8642_v14 = vsel %vm1190_vm6, %v3834_v13, %v3835_v15  ;;  %v3840_v27 = vrot.slane %v7969_v31, 1  ;;  %v3841_v25 = vrot.slane %v8404_v11, 1  ;;  %v9700_v15 = vld [vmem:[#allocation8_spill] sm:$0xff] }
  0xa3   : > { %6545 = vmatmul.mubr.msk.bf16.gmra.mrb[20].mxu1 %vm755_vm3, %v9691_v30  ;;  %6855 = vmatmul.mubr.msk.bf16.gmra.mrb[24].mxu0 %vm755_vm3, %v8574_v57  ;;  %v1200_v13 = vrot.slane %v9664_v26, 1 }
  0xa4   : > { %6548 = vmatprep.mubr.msk.bf16.mxu1 %vm755_vm3, %v9692_v34  ;;  %6858 = vmatprep.mubr.msk.bf16.mxu0 %vm755_vm3, %v8579_v0 }
  0xab   : > { %6549 = vmatmul.mubr.msk.bf16.gmra.mrb[24].mxu1 %vm755_vm3, %v9694_v47  ;;  %6859 = vmatmul.mubr.msk.bf16.gmra.mrb[28].mxu0 %vm755_vm3, %v8592_v61 }
  0xac   : > { %6552 = vmatprep.mubr.msk.bf16.mxu1 %vm755_vm3, %v8312_v52  ;;  %6864 = vmatprep.mubr.msk.bf16.mxu0 %vm755_vm3, %v8595_v28 }
  0xb3   : > { %6553 = vmatmul.mubr.msk.bf16.gmra.mrb[28].mxu1 %vm755_vm3, %v8325_v24  ;;  %6865 = vmatmul.mubr.msk.bf16.vlgmr.msra.gmra.mrb[0].mxu0 %vm755_vm3, %v8610_v49 }
  0xb4   : > { %6558 = vmatprep.mubr.msk.bf16.mxu1 %vm755_vm3, %v8613_v63  ;;  %6868 = vmatprep.mubr.msk.bf16.mxu0 %vm755_vm3, %v8595_v28  ;;  %v8647_v28 = vsel %vm1190_vm6, %v3837_v9, %v3838_v3  ;;  %v1201_v9 = vrot.slane %v9700_v15, 1  ;;  %v3843_v3 = vrot.slane %v8014_v42, 1  ;;  %v9705_v15 = vld [vmem:[#allocation15_spill] sm:$0xff] }
  0xb5   : > { %6897 = vmatpush3.bf16.msra.mxu0 %v4118_v45  ;;  %9698 = vst [vmem:[#allocation12_spill] sm:$0xff] %v8647_v28  ;;  %v1198_v45 = vrot.slane %v9699_v1, 1 }
  0xb6   : > { %7657 = vmatprep.subr.msk.bf16.mxu0 %vm801_vm0, %v8624_v33  ;;  %v8679_v11 = vsel %vm1190_vm6, %v1200_v13, %v1201_v9  ;;  %v1206_v13 = vrot.slane %v9676_v60, 1  ;;  %v1207_v9 = vrot.slane %v9705_v15, 1 }
  0xb7   : > { %v8673_v1 = vsel %vm1190_vm6, %v1197_v32, %v1198_v45  ;;  %9702 = vst [vmem:[#allocation43_spill] sm:$0xff] %v8679_v11  ;;  %v9704_v32 = vld [vmem:[#allocation10_spill] sm:$0xff] }
  0xb8   : > { %v1204_v45 = vrot.slane %v9704_v32, 1 }
  0xbb   : > { %6559 = vmatmul.mubr.msk.bf16.vlgmr.msra.gmra.mrb[0].mxu1 %vm755_vm3, %v8639_v59  ;;  %6869 = vmatmul.mubr.msk.bf16.gmra.mrb[4].mxu0 %vm755_vm3, %v8642_v14 }
  0xbc   : > { %6591 = vmatpush3.bf16.msra.mxu1 %v1481_v62  ;;  %6562 = vmatprep.mubr.msk.bf16.mxu1 %vm755_vm3, %v8613_v63  ;;  %v3844_v62 = vrot.slane %v8413_v8, 1  ;;  %v8676_v63 = vsel %vm1190_vm6, %v3840_v27, %v3841_v25  ;;  %v1203_v8 = vrot.slane %v9673_v19, 1  ;;  %v3846_v27 = vrot.slane %v8034_v58, 1 }
  0xbd   : > { %6872 = vmatprep.mubr.msk.bf16.mxu0 %vm755_vm3, %v8647_v28  ;;  %7648 = vmatprep.subr.msk.bf16.mxu1 %vm801_vm0, %v8652_v48  ;;  %9701 = vst [vmem:[#allocation38_spill] sm:$0xff] %v8676_v63  ;;  %v3847_v25 = vrot.slane %v8436_v44, 1  ;;  %v1209_v44 = vrot.slane %v9682_v7, 1 }
  0xbe   : > { %v8682_v28 = vsel %vm1190_vm6, %v3843_v3, %v3844_v62  ;;  %v3849_v3 = vrot.slane %v8076_v40, 1  ;;  %v3850_v62 = vrot.slane %v8456_v38, 1  ;;  %v9708_v38 = vld [vmem:[#allocation16_spill] sm:$0xff] }
  0xbf   : > { %9703 = vst [vmem:[#allocation17_spill] sm:$0xff] %v8682_v28  ;;  %v8704_v32 = vsel %vm1190_vm6, %v3846_v27, %v3847_v25  ;;  %v3853_v27 = vrot.slane %v8466_v21, 1  ;;  %v1212_v25 = vrot.slane %v9683_v35, 1  ;;  %v1215_v21 = vrot.slane %v9687_v53, 1 }
  0xc3   : > { %6563 = vmatmul.mubr.msk.bf16.gmra.mrb[4].mxu1 %vm755_vm3, %v8673_v1  ;;  %6873 = vmatmul.mubr.msk.bf16.gmra.mrb[8].mxu0 %vm755_vm3, %v8676_v63  ;;  %v8710_v63 = vsel %vm1190_vm6, %v3849_v3, %v3850_v62  ;;  %v3856_v3 = vrot.slane %v8482_v6, 1  ;;  %v9712_v6 = vld [vmem:[#allocation26_spill] sm:$0xff] }
  0xc4   : > { %6566 = vmatprep.mubr.msk.bf16.mxu1 %vm755_vm3, %v8679_v11  ;;  %6876 = vmatprep.mubr.msk.bf16.mxu0 %vm755_vm3, %v8682_v28  ;;  %v8701_v11 = vsel %vm1190_vm6, %v1203_v8, %v1204_v45  ;;  %v8707_v28 = vsel %vm1190_vm6, %v1206_v13, %v1207_v9  ;;  %9707 = vst [vmem:[#allocation41_spill] sm:$0xff] %v8710_v63  ;;  %v1210_v8 = vrot.slane %v9708_v38, 1  ;;  %v3852_v45 = vrot.slane %v9665_v36, 1  ;;  %v9709_v13 = vld [vmem:[#allocation23_spill] sm:$0xff] }
  0xc5   : > { %9706 = vst [vmem:[#allocation35_spill] sm:$0xff] %v8707_v28  ;;  %v1213_v15 = vrot.slane %v9709_v13, 1  ;;  %v3855_v9 = vrot.slane %v9666_v17, 1 }
  0xc6   : > { %v8729_v62 = vsel %vm1190_vm6, %v1209_v44, %v1210_v8  ;;  %v8732_v38 = vsel %vm1190_vm6, %v3852_v45, %v3853_v27  ;;  %v1216_v44 = vrot.slane %v9712_v6, 1  ;;  %v3858_v8 = vrot.slane %v9677_v20, 1 }
  0xc7   : > { %v3859_v45 = vrot.slane %v8498_v51, 1  ;;  %v1218_v27 = vrot.slane %v9688_v43, 1  ;;  %v1221_v51 = vrot.slane %v9691_v30, 1 }
  0xc9   : > { %v8760_v6 = vsel %vm1190_vm6, %v3858_v8, %v3859_v45  ;;  %v3865_v8 = vrot.slane %v8520_v18, 1  ;;  %v1224_v45 = vrot.slane %v9692_v34, 1  ;;  %v9720_v18 = vld [vmem:[#allocation48_spill] sm:$0xff] }
  0xcb   : > { %6567 = vmatmul.mubr.msk.bf16.gmra.mrb[8].mxu1 %vm755_vm3, %v8701_v11  ;;  %6877 = vmatmul.mubr.msk.bf16.gmra.mrb[12].mxu0 %vm755_vm3, %v8704_v32 }
  0xcc   : > { %6570 = vmatprep.mubr.msk.bf16.mxu1 %vm755_vm3, %v8707_v28  ;;  %6880 = vmatprep.mubr.msk.bf16.mxu0 %vm755_vm3, %v8710_v63  ;;  %v8735_v63 = vsel %vm1190_vm6, %v1212_v25, %v1213_v15  ;;  %v8738_v28 = vsel %vm1190_vm6, %v3855_v9, %v3856_v3  ;;  %v9713_v25 = vld [vmem:[#allocation36_spill] sm:$0xff]  ;;  %v3861_v15 = vrot.slane %v9678_v4, 1  ;;  %v3862_v9 = vrot.slane %v8507_v46, 1  ;;  %v9716_v46 = vld [vmem:[#allocation37_spill] sm:$0xff] }
  0xcd   : > { %9710 = vst [vmem:[#allocation42_spill] sm:$0xff] %v8735_v63  ;;  %9711 = vst [vmem:[#allocation18_spill] sm:$0xff] %v8738_v28  ;;  %v1219_v13 = vrot.slane %v9713_v25, 1  ;;  %v8757_v3 = vsel %vm1190_vm6, %v1215_v21, %v1216_v44  ;;  %v1222_v21 = vrot.slane %v9716_v46, 1  ;;  %v3864_v44 = vrot.slane %v9684_v16, 1 }
  0xcf   : > { %v8788_v46 = vsel %vm1190_vm6, %v3864_v44, %v3865_v8  ;;  %v3871_v44 = vrot.slane %v8571_v39, 1  ;;  %v1230_v8 = vrot.slane %v8312_v52, 1  ;;  %v9722_v39 = vld [vmem:[#allocation55_spill] sm:$0xff] }
  0xd3   : > { %6571 = vmatmul.mubr.msk.bf16.gmra.mrb[12].mxu1 %vm755_vm3, %v8729_v62  ;;  %6881 = vmatmul.mubr.msk.bf16.gmra.mrb[16].mxu0 %vm755_vm3, %v8732_v38 }
  0xd4   : > { %6574 = vmatprep.mubr.msk.bf16.mxu1 %vm755_vm3, %v8735_v63  ;;  %6884 = vmatprep.mubr.msk.bf16.mxu0 %vm755_vm3, %v8738_v28  ;;  %v8763_v28 = vsel %vm1190_vm6, %v1218_v27, %v1219_v13  ;;  %v8766_v63 = vsel %vm1190_vm6, %v3861_v15, %v3862_v9  ;;  %v9717_v27 = vld [vmem:[#allocation47_spill] sm:$0xff]  ;;  %v3867_v13 = vrot.slane %v8271_v22, 1  ;;  %v3868_v15 = vrot.slane %v8547_v2, 1 }
  0xd5   : > { %9714 = vst [vmem:[#allocation25_spill] sm:$0xff] %v8763_v28  ;;  %9715 = vst [vmem:[#allocation27_spill] sm:$0xff] %v8766_v63  ;;  %v1225_v25 = vrot.slane %v9717_v27, 1  ;;  %v8785_v9 = vsel %vm1190_vm6, %v1221_v51, %v1222_v21  ;;  %v1227_v2 = vrot.slane %v9694_v47, 1  ;;  %v1228_v51 = vrot.slane %v9720_v18, 1 }
  0xd6   : > { %9718 = vst [vmem:[#allocation39_spill] sm:$0xff] %v8785_v9  ;;  %v3870_v21 = vrot.slane %v8308_v41, 1  ;;  %v4328_v18 = vsel %vm801_vm0, %v8624_v33, 0  ;;  %v570_v33 = vld [vmem:[%s9446_s2 + $0xa] sm:$0x3] }
  0xd7   : > { %v8811_v27 = vsel %vm1190_vm6, %v1227_v2, %v1228_v51  ;;  %v3147_v51 = vld [vmem:[%s9447_s3 + $0xa] sm:$0x3] }
  0xd8   : > { %9721 = vst [vmem:[#allocation50_spill] sm:$0xff] %v8811_v27 }
  0xdb   : > { %6575 = vmatmul.mubr.msk.bf16.gmra.mrb[16].mxu1 %vm755_vm3, %v8757_v3  ;;  %6885 = vmatmul.mubr.msk.bf16.gmra.mrb[20].mxu0 %vm755_vm3, %v8760_v6 }
  0xdc   : > { %6578 = vmatprep.mubr.msk.bf16.mxu1 %vm755_vm3, %v8763_v28  ;;  %6888 = vmatprep.mubr.msk.bf16.mxu0 %vm755_vm3, %v8766_v63  ;;  %v8791_v63 = vsel %vm1190_vm6, %v1224_v45, %v1225_v25  ;;  %v8794_v28 = vsel %vm1190_vm6, %v3867_v13, %v3868_v15  ;;  %v1231_v45 = vrot.slane %v8296_v10, 1  ;;  %v8814_v25 = vsel %vm1190_vm6, %v3870_v21, %v3871_v44 }
  0xdd   : > { %9719 = vst [vmem:[#allocation49_spill] sm:$0xff] %v8794_v28  ;;  %v1233_v10 = vrot.slane %v8325_v24, 1  ;;  %v1234_v15 = vrot.slane %v9722_v39, 1 }
  0xde   : > { %v8817_v13 = vsel %vm1190_vm6, %v1230_v8, %v1231_v45  ;;  %v320_v8 = vld [vmem:[%s7801_s14 + $0xf0] sm:$0xff]  ;;  %v321_v45 = vld [vmem:[%s7801_s14 + $0xf8] sm:$0xff] }
  0xdf   : > { %v8830_v2 = vsel %vm1190_vm6, %v1233_v10, %v1234_v15 }
  0xe3   : > { %6579 = vmatmul.mubr.msk.bf16.gmra.mrb[20].mxu1 %vm755_vm3, %v8785_v9  ;;  %6889 = vmatmul.mubr.msk.bf16.gmra.mrb[24].mxu0 %vm755_vm3, %v8788_v46 }
  0xe4   : > { %6582 = vmatprep.mubr.msk.bf16.mxu1 %vm755_vm3, %v8791_v63  ;;  %6892 = vmatprep.mubr.msk.bf16.mxu0 %vm755_vm3, %v8794_v28 }
  0xeb   : > { %6583 = vmatmul.mubr.msk.bf16.gmra.mrb[24].mxu1 %vm755_vm3, %v8811_v27  ;;  %6893 = vmatmul.mubr.msk.bf16.gmra.mrb[28].mxu0 %vm755_vm3, %v8814_v25 }
  0xec   : > { %6586 = vmatprep.mubr.msk.bf16.mxu1 %vm755_vm3, %v8817_v13  ;;  %6898 = vmatprep.mubr.msk.bf16.mxu0 %vm755_vm3, %v7861_v55  ;;  %v1691_v55 = vsel %vm801_vm0, %v8652_v48, 0  ;;  %v2709_v48 = vld [vmem:[%s7796_s11 + $0x7c] sm:$0xf] }
  0xf3   : > { %6587 = vmatmul.mubr.msk.bf16.gmra.mrb[28].mxu1 %vm755_vm3, %v8830_v2  ;;  %6899 = vmatmul.mubr.msk.bf16.vlgmr.msra.gmra.mrb[0].mxu0 %vm755_vm3, %v7850_v50 }
  0xf4   : > { %6592 = vmatprep.mubr.msk.bf16.mxu1 %vm755_vm3, %v7892_v12  ;;  %6902 = vmatprep.mubr.msk.bf16.mxu0 %vm755_vm3, %v7906_v29  ;;  %v2708_v12 = vld [vmem:[%s7796_s11 + $0x78] sm:$0xf] }
  0xf5   : > { %6931 = vmatpush3.bf16.msra.mxu0 %v4328_v18  ;;  %v5952_v21 = vcombine.low %v2708_v12, %v2709_v48  ;;  %v5936_v10 = vcombine.low %v2708_v12, %v2708_v12  ;;  %v337_v18 = vpack.c.bf16 %v321_v45, %v320_v8  ;;  %v9723_v45 = vld [vmem:[#allocation60_spill] sm:$0xff] }
  0xf6   : > { %7658 = vmatprep.subr.msk.bf16.mxu0 %vm801_vm0, %v3147_v51 }
  0xf7   : > { %v2976_v44 = vshrl.u32 %v5952_v21, 16  ;;  %v2979_v15 = vshll.u32 %v5952_v21, 16 }
  0xf9   : > { %v2978_v39 = vrot.slane %v2976_v44, 7  ;;  %v463_v44 = vshll.u32 %v337_v18, 16 }
  0xfb   : > { %6593 = vmatmul.mubr.msk.bf16.vlgmr.msra.gmra.mrb[0].mxu1 %vm755_vm3, %v7865_v56  ;;  %6903 = vmatmul.mubr.msk.bf16.gmra.mrb[4].mxu0 %vm755_vm3, %v7960_v23 }
  0xfc   : > { %6625 = vmatpush3.bf16.msra.mxu1 %v1691_v55  ;;  %6596 = vmatprep.mubr.msk.bf16.mxu1 %vm755_vm3, %v9661_v5  ;;  %v2804_v55 = vshrl.u32 %v5936_v10, 16 }
  0xfd   : > { %6906 = vmatprep.mubr.msk.bf16.mxu0 %vm755_vm3, %v7969_v31  ;;  %7649 = vmatprep.subr.msk.bf16.mxu1 %vm801_vm0, %v570_v33 }
 0x103   : > { %6597 = vmatmul.mubr.msk.bf16.gmra.mrb[4].mxu1 %vm755_vm3, %v9664_v26  ;;  %6907 = vmatmul.mubr.msk.bf16.gmra.mrb[8].mxu0 %vm755_vm3, %v8014_v42 }
 0x104   : > { %6600 = vmatprep.mubr.msk.bf16.mxu1 %vm755_vm3, %v9673_v19  ;;  %6910 = vmatprep.mubr.msk.bf16.mxu0 %vm755_vm3, %v8034_v58 }
 0x10b   : > { %6601 = vmatmul.mubr.msk.bf16.gmra.mrb[8].mxu1 %vm755_vm3, %v9676_v60  ;;  %6911 = vmatmul.mubr.msk.bf16.gmra.mrb[12].mxu0 %vm755_vm3, %v8076_v40 }
 0x10c   : > { %6604 = vmatprep.mubr.msk.bf16.mxu1 %vm755_vm3, %v9682_v7  ;;  %6914 = vmatprep.mubr.msk.bf16.mxu0 %vm755_vm3, %v9665_v36 }
 0x113   : > { %6605 = vmatmul.mubr.msk.bf16.gmra.mrb[12].mxu1 %vm755_vm3, %v9683_v35  ;;  %6915 = vmatmul.mubr.msk.bf16.gmra.mrb[16].mxu0 %vm755_vm3, %v9666_v17 }
 0x114   : > { %6608 = vmatprep.mubr.msk.bf16.mxu1 %vm755_vm3, %v9687_v53  ;;  %6918 = vmatprep.mubr.msk.bf16.mxu0 %vm755_vm3, %v9677_v20 }
 0x11b   : > { %6609 = vmatmul.mubr.msk.bf16.gmra.mrb[16].mxu1 %vm755_vm3, %v9688_v43  ;;  %6919 = vmatmul.mubr.msk.bf16.gmra.mrb[20].mxu0 %vm755_vm3, %v9678_v4 }
 0x11c   : > { %6612 = vmatprep.mubr.msk.bf16.mxu1 %vm755_vm3, %v9691_v30  ;;  %6922 = vmatprep.mubr.msk.bf16.mxu0 %vm755_vm3, %v9684_v16  ;;  %v2981_v16 = vor.u32 %v2979_v15, %v2978_v39  ;;  %v384_v30 = vshrl.u32 %v337_v18, 16  ;;  %v9724_v15 = vld [vmem:[#allocation57_spill] sm:$0xff]  ;;  %v3148_v18 = vld [vmem:[%s9447_s3 + $0xc] sm:$0x3] }
 0x11e   : > { %v8906_v12 = vsel %vm7837_vm4, %v2804_v55, %v2981_v16  ;;  %v462_v21 = vrot.slane %v384_v30, 7  ;;  %v4532_v16 = vsel %vm801_vm0, %v3147_v51, 0  ;;  %v9725_v55 = vld [vmem:[#allocation6_spill] sm:$0xff]  ;;  %v571_v51 = vld [vmem:[%s9446_s2 + $0xc] sm:$0x3] }
 0x120   : > { %v465_v8 = vor.u32 %v463_v44, %v462_v21 }
 0x122   : > { %v8918_v10 = vsel %vm7837_vm4, %v384_v30, %v465_v8  ;;  %v1895_v30 = vsel %vm801_vm0, %v570_v33, 0  ;;  %v9727_v8 = vld [vmem:[#allocation4_spill] sm:$0xff]  ;;  %v9731_v33 = vld [vmem:[#allocation13_spill] sm:$0xff] }
 0x123   : > { %6613 = vmatmul.mubr.msk.bf16.gmra.mrb[20].mxu1 %vm755_vm3, %v9692_v34  ;;  %6923 = vmatmul.mubr.msk.bf16.gmra.mrb[24].mxu0 %vm755_vm3, %v8271_v22 }
 0x124   : > { %6616 = vmatprep.mubr.msk.bf16.mxu1 %vm755_vm3, %v9694_v47  ;;  %6926 = vmatprep.mubr.msk.bf16.mxu0 %vm755_vm3, %v8308_v41  ;;  %v9743_v41 = vld [vmem:[#allocation44_spill] sm:$0xff] }
 0x12b   : > { %6617 = vmatmul.mubr.msk.bf16.gmra.mrb[24].mxu1 %vm755_vm3, %v8312_v52  ;;  %6927 = vmatmul.mubr.msk.bf16.gmra.mrb[28].mxu0 %vm755_vm3, %v8906_v12 }
 0x12c   : > { %6620 = vmatprep.mubr.msk.bf16.mxu1 %vm755_vm3, %v8325_v24  ;;  %6932 = vmatprep.mubr.msk.bf16.mxu0 %vm755_vm3, %v9723_v45  ;;  %v9726_v45 = vld [vmem:[#allocation61_spill] sm:$0xff]  ;;  %v9733_v24 = vld [vmem:[#allocation14_spill] sm:$0xff] }
 0x133   : > { %6621 = vmatmul.mubr.msk.bf16.gmra.mrb[28].mxu1 %vm755_vm3, %v8918_v10  ;;  %6933 = vmatmul.mubr.msk.bf16.vlgmr.msra.gmra.mrb[0].mxu0 %vm755_vm3, %v9724_v15  ;;  %v9728_v15 = vld [vmem:[#allocation62_spill] sm:$0xff] }
 0x134   : > { %6626 = vmatprep.mubr.msk.bf16.mxu1 %vm755_vm3, %v9725_v55  ;;  %6936 = vmatprep.mubr.msk.bf16.mxu0 %vm755_vm3, %v9726_v45  ;;  %v9729_v55 = vld [vmem:[#allocation9_spill] sm:$0xff]  ;;  %v9730_v45 = vld [vmem:[#allocation63_spill] sm:$0xff] }
 0x135   : > { %6965 = vmatpush3.bf16.msra.mxu0 %v4532_v16  ;;  %v9732_v16 = vld [vmem:[#allocation64_spill] sm:$0xff] }
 0x136   : > { %7659 = vmatprep.subr.msk.bf16.mxu0 %vm801_vm0, %v3148_v18 }
 0x13b   : > { %6627 = vmatmul.mubr.msk.bf16.vlgmr.msra.gmra.mrb[0].mxu1 %vm755_vm3, %v9727_v8  ;;  %6937 = vmatmul.mubr.msk.bf16.gmra.mrb[4].mxu0 %vm755_vm3, %v9728_v15  ;;  %v9734_v8 = vld [vmem:[#allocation7_spill] sm:$0xff]  ;;  %v9738_v15 = vld [vmem:[#allocation21_spill] sm:$0xff] }
 0x13c   : > { %6659 = vmatpush3.bf16.msra.mxu1 %v1895_v30  ;;  %6630 = vmatprep.mubr.msk.bf16.mxu1 %vm755_vm3, %v9729_v55  ;;  %v9735_v30 = vld [vmem:[#allocation19_spill] sm:$0xff]  ;;  %v9736_v55 = vld [vmem:[#allocation20_spill] sm:$0xff] }
 0x13d   : > { %6940 = vmatprep.mubr.msk.bf16.mxu0 %vm755_vm3, %v9730_v45  ;;  %7650 = vmatprep.subr.msk.bf16.mxu1 %vm801_vm0, %v571_v51  ;;  %v9737_v45 = vld [vmem:[#allocation22_spill] sm:$0xff] }
 0x143   : > { %6631 = vmatmul.mubr.msk.bf16.gmra.mrb[4].mxu1 %vm755_vm3, %v9731_v33  ;;  %6941 = vmatmul.mubr.msk.bf16.gmra.mrb[8].mxu0 %vm755_vm3, %v9732_v16  ;;  %v5968_v33 = vcombine.low %v2709_v48, %v2709_v48  ;;  %v9739_v16 = vld [vmem:[#allocation31_spill] sm:$0xff]  ;;  %v9744_v48 = vld [vmem:[#allocation45_spill] sm:$0xff] }
 0x144   : > { %6634 = vmatprep.mubr.msk.bf16.mxu1 %vm755_vm3, %v9733_v24  ;;  %6944 = vmatprep.mubr.msk.bf16.mxu0 %vm755_vm3, %v9734_v8  ;;  %v9740_v24 = vld [vmem:[#allocation11_spill] sm:$0xff]  ;;  %v9741_v8 = vld [vmem:[#allocation32_spill] sm:$0xff] }
 0x14b   : > { %6635 = vmatmul.mubr.msk.bf16.gmra.mrb[8].mxu1 %vm755_vm3, %v9735_v30  ;;  %6945 = vmatmul.mubr.msk.bf16.gmra.mrb[12].mxu0 %vm755_vm3, %v9736_v55  ;;  %v9742_v30 = vld [vmem:[#allocation24_spill] sm:$0xff]  ;;  %v3091_v55 = vshll.u32 %v5968_v33, 16 }
 0x14c   : > { %6638 = vmatprep.mubr.msk.bf16.mxu1 %vm755_vm3, %v9737_v45  ;;  %6948 = vmatprep.mubr.msk.bf16.mxu0 %vm755_vm3, %v9738_v15  ;;  %v9747_v15 = vld [vmem:[#allocation58_spill] sm:$0xff] }
 0x14d   : > { %v3093_v52 = vrot.slane %v3091_v55, 3  ;;  %v4313_v55 = vshrl.u32 %v8906_v12, 16 }
 0x153   : > { %6639 = vmatmul.mubr.msk.bf16.gmra.mrb[12].mxu1 %vm755_vm3, %v9739_v16  ;;  %6949 = vmatmul.mubr.msk.bf16.gmra.mrb[16].mxu0 %vm755_vm3, %v9740_v24  ;;  %v4315_v24 = vshll.u32 %v8906_v12, 16  ;;  %v9745_v16 = vld [vmem:[#allocation51_spill] sm:$0xff] }
 0x154   : > { %6642 = vmatprep.mubr.msk.bf16.mxu1 %vm755_vm3, %v9741_v8  ;;  %6952 = vmatprep.mubr.msk.bf16.mxu0 %vm755_vm3, %v9742_v30  ;;  %v8981_v8 = vsel %vm7837_vm4, %v2978_v39, %v3093_v52  ;;  %v513_v30 = vrot.slane %v463_v44, 7 }
 0x155   : > { %v4317_v33 = vrot.slane %v4315_v24, 1 }
 0x156   : > { %v564_v24 = vsel %vm7837_vm4, %v462_v21, %v513_v30  ;;  %v9749_v21 = vld [vmem:[#allocation34_spill] sm:$0xff]  ;;  %v3149_v30 = vld [vmem:[%s9447_s3 + $0xe] sm:$0x3] }
 0x157   : > { %v4318_v52 = vor.u32 %v4317_v33, %v4313_v55  ;;  %v9748_v55 = vld [vmem:[#allocation59_spill] sm:$0xff] }
 0x15b   : > { %6643 = vmatmul.mubr.msk.bf16.gmra.mrb[16].mxu1 %vm755_vm3, %v9743_v41  ;;  %6953 = vmatmul.mubr.msk.bf16.gmra.mrb[20].mxu0 %vm755_vm3, %v8556_v54  ;;  %v4320_v41 = vshll.u32 %v8981_v8, 16 }
 0x15c   : > { %6646 = vmatprep.mubr.msk.bf16.mxu1 %vm755_vm3, %v9744_v48  ;;  %6956 = vmatprep.mubr.msk.bf16.mxu0 %vm755_vm3, %v8574_v57  ;;  %v9746_v48 = vld [vmem:[#allocation52_spill] sm:$0xff]  ;;  %v1678_v57 = vshll.u32 %v8918_v10, 16 }
 0x15d   : > { %v4322_v39 = vrot.slane %v4320_v41, 1 }
 0x15e   : > { %v1680_v54 = vrot.slane %v1678_v57, 1  ;;  %v4728_v57 = vsel %vm801_vm0, %v3148_v18, 0  ;;  %v9751_v18 = vld [vmem:[#allocation12_spill] sm:$0xff] }
 0x15f   : > { %v8997_v44 = vsel %vm574_vm5, %v4318_v52, %v4322_v39  ;;  %v9755_v52 = vld [vmem:[#allocation35_spill] sm:$0xff]  ;;  %v9756_v39 = vld [vmem:[#allocation41_spill] sm:$0xff] }
 0x163   : > { %6647 = vmatmul.mubr.msk.bf16.gmra.mrb[20].mxu1 %vm755_vm3, %v9745_v16  ;;  %6957 = vmatmul.mubr.msk.bf16.gmra.mrb[24].mxu0 %vm755_vm3, %v8579_v0  ;;  %v1676_v16 = vshrl.u32 %v8918_v10, 16  ;;  %v1683_v0 = vshll.u32 %v564_v24, 16 }
 0x164   : > { %6650 = vmatprep.mubr.msk.bf16.mxu1 %vm755_vm3, %v9746_v48  ;;  %6960 = vmatprep.mubr.msk.bf16.mxu0 %vm755_vm3, %v8592_v61 }
 0x165   : > { %v1681_v41 = vor.u32 %v1680_v54, %v1676_v16  ;;  %v1685_v33 = vrot.slane %v1683_v0, 1  ;;  %v2091_v54 = vsel %vm801_vm0, %v571_v51, 0  ;;  %v572_v0 = vld [vmem:[%s9446_s2 + $0xe] sm:$0x3]  ;;  %v9754_v16 = vld [vmem:[#allocation17_spill] sm:$0xff] }
 0x166   : > { %v9753_v51 = vld [vmem:[#allocation43_spill] sm:$0xff] }
 0x167   : > { %v9009_v37 = vsel %vm574_vm5, %v1681_v41, %v1685_v33  ;;  %v9757_v41 = vld [vmem:[#allocation42_spill] sm:$0xff] }
 0x168   : > { %v9758_v33 = vld [vmem:[#allocation18_spill] sm:$0xff] }
 0x16b   : > { %6651 = vmatmul.mubr.msk.bf16.gmra.mrb[24].mxu1 %vm755_vm3, %v9747_v15  ;;  %6961 = vmatmul.mubr.msk.bf16.gmra.mrb[28].mxu0 %vm755_vm3, %v8997_v44 }
 0x16c   : > { %6654 = vmatprep.mubr.msk.bf16.mxu1 %vm755_vm3, %v9748_v55  ;;  %6966 = vmatprep.mubr.msk.bf16.mxu0 %vm755_vm3, %v8610_v49  ;;  %v9750_v49 = vld [vmem:[#allocation30_spill] sm:$0xff] }
 0x173   : > { %6655 = vmatmul.mubr.msk.bf16.gmra.mrb[28].mxu1 %vm755_vm3, %v9009_v37  ;;  %6967 = vmatmul.mubr.msk.bf16.vlgmr.msra.gmra.mrb[0].mxu0 %vm755_vm3, %v9749_v21 }
 0x174   : > { %6660 = vmatprep.mubr.msk.bf16.mxu1 %vm755_vm3, %v8639_v59  ;;  %6970 = vmatprep.mubr.msk.bf16.mxu0 %vm755_vm3, %v8642_v14  ;;  %v9752_v59 = vld [vmem:[#allocation38_spill] sm:$0xff] }
 0x175   : > { %6999 = vmatpush3.bf16.msra.mxu0 %v4728_v57  ;;  %v9759_v57 = vld [vmem:[#allocation25_spill] sm:$0xff] }
 0x176   : > { %7660 = vmatprep.subr.msk.bf16.mxu0 %vm801_vm0, %v3149_v30 }
 0x17b   : > { %6661 = vmatmul.mubr.msk.bf16.vlgmr.msra.gmra.mrb[0].mxu1 %vm755_vm3, %v9750_v49  ;;  %6971 = vmatmul.mubr.msk.bf16.gmra.mrb[4].mxu0 %vm755_vm3, %v9751_v18 }
 0x17c   : > { %6693 = vmatpush3.bf16.msra.mxu1 %v2091_v54  ;;  %6664 = vmatprep.mubr.msk.bf16.mxu1 %vm755_vm3, %v8673_v1  ;;  %v9760_v54 = vld [vmem:[#allocation27_spill] sm:$0xff] }
 0x17d   : > { %6974 = vmatprep.mubr.msk.bf16.mxu0 %vm755_vm3, %v9752_v59  ;;  %7651 = vmatprep.subr.msk.bf16.mxu1 %vm801_vm0, %v572_v0 }
 0x183   : > { %6665 = vmatmul.mubr.msk.bf16.gmra.mrb[4].mxu1 %vm755_vm3, %v9753_v51  ;;  %6975 = vmatmul.mubr.msk.bf16.gmra.mrb[8].mxu0 %vm755_vm3, %v9754_v16 }
 0x184   : > { %6668 = vmatprep.mubr.msk.bf16.mxu1 %vm755_vm3, %v8701_v11  ;;  %6978 = vmatprep.mubr.msk.bf16.mxu0 %vm755_vm3, %v8704_v32 }
 0x18b   : > { %6669 = vmatmul.mubr.msk.bf16.gmra.mrb[8].mxu1 %vm755_vm3, %v9755_v52  ;;  %6979 = vmatmul.mubr.msk.bf16.gmra.mrb[12].mxu0 %vm755_vm3, %v9756_v39 }
 0x18c   : > { %6672 = vmatprep.mubr.msk.bf16.mxu1 %vm755_vm3, %v8729_v62  ;;  %6982 = vmatprep.mubr.msk.bf16.mxu0 %vm755_vm3, %v8732_v38 }
 0x193   : > { %6673 = vmatmul.mubr.msk.bf16.gmra.mrb[12].mxu1 %vm755_vm3, %v9757_v41  ;;  %6983 = vmatmul.mubr.msk.bf16.gmra.mrb[16].mxu0 %vm755_vm3, %v9758_v33 }
 0x194   : > { %6676 = vmatprep.mubr.msk.bf16.mxu1 %vm755_vm3, %v8757_v3  ;;  %6986 = vmatprep.mubr.msk.bf16.mxu0 %vm755_vm3, %v8760_v6 }
 0x19b   : > { %6677 = vmatmul.mubr.msk.bf16.gmra.mrb[16].mxu1 %vm755_vm3, %v9759_v57  ;;  %6987 = vmatmul.mubr.msk.bf16.gmra.mrb[20].mxu0 %vm755_vm3, %v9760_v54  ;;  %v4525_v54 = vrot.slane %v8906_v12, 1  ;;  %v4526_v57 = vrot.slane %v8981_v8, 1 }
 0x19c   : > { %6680 = vmatprep.mubr.msk.bf16.mxu1 %vm755_vm3, %v8785_v9  ;;  %6990 = vmatprep.mubr.msk.bf16.mxu0 %vm755_vm3, %v8788_v46 }
 0x19d   : > { %v9080_v9 = vsel %vm1190_vm6, %v4525_v54, %v4526_v57  ;;  %v4924_v57 = vsel %vm801_vm0, %v3149_v30, 0  ;;  %v3150_v54 = vld [vmem:[%s9447_s3 + $0x10] sm:$0x3] }
 0x19e   : > { %v9786_v30 = vld [vmem:[#allocation28_spill] sm:$0xff] }
 0x1a3   : > { %6681 = vmatmul.mubr.msk.bf16.gmra.mrb[20].mxu1 %vm755_vm3, %v8791_v63  ;;  %6991 = vmatmul.mubr.msk.bf16.gmra.mrb[24].mxu0 %vm755_vm3, %v8794_v28  ;;  %v1889_v28 = vrot.slane %v564_v24, 1  ;;  %v9784_v24 = vld [vmem:[#allocation33_spill] sm:$0xff] }
 0x1a4   : > { %6684 = vmatprep.mubr.msk.bf16.mxu1 %vm755_vm3, %v8811_v27  ;;  %6994 = vmatprep.mubr.msk.bf16.mxu0 %vm755_vm3, %v8814_v25  ;;  %v1888_v27 = vrot.slane %v8918_v10, 1 }
 0x1a6   : > { %v9092_v8 = vsel %vm1190_vm6, %v1888_v27, %v1889_v28  ;;  %v573_v28 = vld [vmem:[%s9446_s2 + $0x10] sm:$0x3] }
 0x1a7   : > { %v9781_v27 = vld [vmem:[#allocation32_spill] sm:$0xff] }
 0x1ab   : > { %6685 = vmatmul.mubr.msk.bf16.gmra.mrb[24].mxu1 %vm755_vm3, %v8817_v13  ;;  %6995 = vmatmul.mubr.msk.bf16.gmra.mrb[28].mxu0 %vm755_vm3, %v9080_v9 }
 0x1ac   : > { %6688 = vmatprep.mubr.msk.bf16.mxu1 %vm755_vm3, %v8830_v2  ;;  %7000 = vmatprep.mubr.msk.bf16.mxu0 %vm755_vm3, %v7850_v50  ;;  %v2287_v50 = vsel %vm801_vm0, %v572_v0, 0  ;;  %v9787_v0 = vld [vmem:[#allocation51_spill] sm:$0xff] }
 0x1b3   : > { %6689 = vmatmul.mubr.msk.bf16.gmra.mrb[28].mxu1 %vm755_vm3, %v9092_v8  ;;  %7001 = vmatmul.mubr.msk.bf16.vlgmr.msra.gmra.mrb[0].mxu0 %vm755_vm3, %v7906_v29  ;;  %v9762_v29 = vld [vmem:[#allocation46_spill] sm:$0xff] }
 0x1b4   : > { %6694 = vmatprep.mubr.msk.bf16.mxu1 %vm755_vm3, %v7865_v56  ;;  %7004 = vmatprep.mubr.msk.bf16.mxu0 %vm755_vm3, %v7960_v23  ;;  %v9761_v56 = vld [vmem:[#allocation40_spill] sm:$0xff]  ;;  %v9763_v23 = vld [vmem:[#allocation53_spill] sm:$0xff] }
 0x1b5   : > { %7033 = vmatpush3.bf16.msra.mxu0 %v4924_v57  ;;  %v9788_v57 = vld [vmem:[#allocation29_spill] sm:$0xff] }
 0x1b6   : > { %7661 = vmatprep.subr.msk.bf16.mxu0 %vm801_vm0, %v3150_v54 }
 0x1bb   : > { %6695 = vmatmul.mubr.msk.bf16.vlgmr.msra.gmra.mrb[0].mxu1 %vm755_vm3, %v9661_v5  ;;  %7005 = vmatmul.mubr.msk.bf16.gmra.mrb[4].mxu0 %vm755_vm3, %v7969_v31  ;;  %v9764_v31 = vld [vmem:[#allocation54_spill] sm:$0xff] }
 0x1bc   : > { %6727 = vmatpush3.bf16.msra.mxu1 %v2287_v50  ;;  %6698 = vmatprep.mubr.msk.bf16.mxu1 %vm755_vm3, %v9664_v26  ;;  %v9769_v5 = vld [vmem:[#allocation62_spill] sm:$0xff]  ;;  %v2483_v26 = vsel %vm801_vm0, %v573_v28, 0 }
 0x1bd   : > { %7008 = vmatprep.mubr.msk.bf16.mxu0 %vm755_vm3, %v8014_v42  ;;  %7652 = vmatprep.subr.msk.bf16.mxu1 %vm801_vm0, %v573_v28  ;;  %v9765_v42 = vld [vmem:[#allocation56_spill] sm:$0xff] }
 0x1c3   : > { %6699 = vmatmul.mubr.msk.bf16.gmra.mrb[4].mxu1 %vm755_vm3, %v9673_v19  ;;  %7009 = vmatmul.mubr.msk.bf16.gmra.mrb[8].mxu0 %vm755_vm3, %v8034_v58  ;;  %v9766_v58 = vld [vmem:[#allocation57_spill] sm:$0xff] }
 0x1c4   : > { %6702 = vmatprep.mubr.msk.bf16.mxu1 %vm755_vm3, %v9676_v60  ;;  %7012 = vmatprep.mubr.msk.bf16.mxu0 %vm755_vm3, %v8076_v40  ;;  %v5120_v40 = vsel %vm801_vm0, %v3150_v54, 0  ;;  %v9772_v19 = vld [vmem:[#allocation13_spill] sm:$0xff]  ;;  %v9773_v60 = vld [vmem:[#allocation64_spill] sm:$0xff] }
 0x1cb   : > { %6703 = vmatmul.mubr.msk.bf16.gmra.mrb[8].mxu1 %vm755_vm3, %v9682_v7  ;;  %7013 = vmatmul.mubr.msk.bf16.gmra.mrb[12].mxu0 %vm755_vm3, %v9665_v36  ;;  %v9770_v36 = vld [vmem:[#allocation9_spill] sm:$0xff]  ;;  %v9775_v7 = vld [vmem:[#allocation7_spill] sm:$0xff] }
 0x1cc   : > { %6706 = vmatprep.mubr.msk.bf16.mxu1 %vm755_vm3, %v9683_v35  ;;  %7016 = vmatprep.mubr.msk.bf16.mxu0 %vm755_vm3, %v9666_v17  ;;  %v9771_v17 = vld [vmem:[#allocation63_spill] sm:$0xff] }
 0x1cd   : > { %v9776_v35 = vld [vmem:[#allocation19_spill] sm:$0xff] }
 0x1d3   : > { %6707 = vmatmul.mubr.msk.bf16.gmra.mrb[12].mxu1 %vm755_vm3, %v9687_v53  ;;  %7017 = vmatmul.mubr.msk.bf16.gmra.mrb[16].mxu0 %vm755_vm3, %v9677_v20  ;;  %v9774_v20 = vld [vmem:[#allocation14_spill] sm:$0xff]  ;;  %v9777_v53 = vld [vmem:[#allocation20_spill] sm:$0xff] }
 0x1d4   : > { %6710 = vmatprep.mubr.msk.bf16.mxu1 %vm755_vm3, %v9688_v43  ;;  %7020 = vmatprep.mubr.msk.bf16.mxu0 %vm755_vm3, %v9678_v4  ;;  %v9768_v4 = vld [vmem:[#allocation4_spill] sm:$0xff]  ;;  %v9778_v43 = vld [vmem:[#allocation21_spill] sm:$0xff] }
 0x1db   : > { %6711 = vmatmul.mubr.msk.bf16.gmra.mrb[16].mxu1 %vm755_vm3, %v9761_v56  ;;  %7021 = vmatmul.mubr.msk.bf16.gmra.mrb[20].mxu0 %vm755_vm3, %v9762_v29 }
 0x1dc   : > { %6714 = vmatprep.mubr.msk.bf16.mxu1 %vm755_vm3, %v9692_v34  ;;  %7024 = vmatprep.mubr.msk.bf16.mxu0 %vm755_vm3, %v8271_v22  ;;  %v9767_v22 = vld [vmem:[#allocation61_spill] sm:$0xff]  ;;  %v9779_v34 = vld [vmem:[#allocation31_spill] sm:$0xff] }
 0x1e3   : > { %6715 = vmatmul.mubr.msk.bf16.gmra.mrb[20].mxu1 %vm755_vm3, %v9694_v47  ;;  %7025 = vmatmul.mubr.msk.bf16.gmra.mrb[24].mxu0 %vm755_vm3, %v9763_v23  ;;  %v9780_v47 = vld [vmem:[#allocation11_spill] sm:$0xff] }
 0x1e4   : > { %6718 = vmatprep.mubr.msk.bf16.mxu1 %vm755_vm3, %v9764_v31  ;;  %7028 = vmatprep.mubr.msk.bf16.mxu0 %vm755_vm3, %v8906_v12  ;;  %v9782_v12 = vld [vmem:[#allocation24_spill] sm:$0xff] }
 0x1eb   : > { %6719 = vmatmul.mubr.msk.bf16.gmra.mrb[24].mxu1 %vm755_vm3, %v9765_v42  ;;  %7029 = vmatmul.mubr.msk.bf16.gmra.mrb[28].mxu0 %vm755_vm3, %v9763_v23 }
 0x1ec   : > { %6722 = vmatprep.mubr.msk.bf16.mxu1 %vm755_vm3, %v8918_v10  ;;  %7034 = vmatprep.mubr.msk.bf16.mxu0 %vm755_vm3, %v9766_v58  ;;  %v9783_v10 = vld [vmem:[#allocation44_spill] sm:$0xff] }
 0x1f3   : > { %6723 = vmatmul.mubr.msk.bf16.gmra.mrb[28].mxu1 %vm755_vm3, %v9765_v42  ;;  %7035 = vmatmul.mubr.msk.bf16.vlgmr.msra.gmra.mrb[0].mxu0 %vm755_vm3, %v9767_v22 }
 0x1f4   : > { %6728 = vmatprep.mubr.msk.bf16.mxu1 %vm755_vm3, %v9768_v4  ;;  %7038 = vmatprep.mubr.msk.bf16.mxu0 %vm755_vm3, %v9769_v5 }
 0x1f5   : > { %7067 = vmatpush3.bf16.msra.mxu0 %v5120_v40 }
 0x1fb   : > { %6729 = vmatmul.mubr.msk.bf16.vlgmr.msra.gmra.mrb[0].mxu1 %vm755_vm3, %v9770_v36  ;;  %7039 = vmatmul.mubr.msk.bf16.gmra.mrb[4].mxu0 %vm755_vm3, %v9771_v17 }
 0x1fc   : > { %6761 = vmatpush3.bf16.msra.mxu1 %v2483_v26  ;;  %6732 = vmatprep.mubr.msk.bf16.mxu1 %vm755_vm3, %v9772_v19 }
 0x1fd   : > { %7042 = vmatprep.mubr.msk.bf16.mxu0 %vm755_vm3, %v9773_v60 }
 0x203   : > { %6733 = vmatmul.mubr.msk.bf16.gmra.mrb[4].mxu1 %vm755_vm3, %v9774_v20  ;;  %7043 = vmatmul.mubr.msk.bf16.gmra.mrb[8].mxu0 %vm755_vm3, %v9775_v7 }
 0x204   : > { %6736 = vmatprep.mubr.msk.bf16.mxu1 %vm755_vm3, %v9776_v35  ;;  %7046 = vmatprep.mubr.msk.bf16.mxu0 %vm755_vm3, %v9777_v53 }
 0x20b   : > { %6737 = vmatmul.mubr.msk.bf16.gmra.mrb[8].mxu1 %vm755_vm3, %v9737_v45  ;;  %7047 = vmatmul.mubr.msk.bf16.gmra.mrb[12].mxu0 %vm755_vm3, %v9778_v43  ;;  %v9785_v45 = vld [vmem:[#allocation45_spill] sm:$0xff] }
 0x20c   : > { %6740 = vmatprep.mubr.msk.bf16.mxu1 %vm755_vm3, %v9779_v34  ;;  %7050 = vmatprep.mubr.msk.bf16.mxu0 %vm755_vm3, %v9780_v47 }
 0x213   : > { %6741 = vmatmul.mubr.msk.bf16.gmra.mrb[12].mxu1 %vm755_vm3, %v9781_v27  ;;  %7051 = vmatmul.mubr.msk.bf16.gmra.mrb[16].mxu0 %vm755_vm3, %v9782_v12 }
 0x214   : > { %6744 = vmatprep.mubr.msk.bf16.mxu1 %vm755_vm3, %v9783_v10  ;;  %7054 = vmatprep.mubr.msk.bf16.mxu0 %vm755_vm3, %v9784_v24 }
 0x21b   : > { %6745 = vmatmul.mubr.msk.bf16.gmra.mrb[16].mxu1 %vm755_vm3, %v9785_v45  ;;  %7055 = vmatmul.mubr.msk.bf16.gmra.mrb[20].mxu0 %vm755_vm3, %v9786_v30 }
 0x21c   : > { %6748 = vmatprep.mubr.msk.bf16.mxu1 %vm755_vm3, %v9787_v0  ;;  %7058 = vmatprep.mubr.msk.bf16.mxu0 %vm755_vm3, %v9788_v57 }
 0x223   : > { %6749 = vmatmul.mubr.msk.bf16.gmra.mrb[20].mxu1 %vm755_vm3, %v9746_v48  ;;  %7059 = vmatmul.mubr.msk.bf16.gmra.mrb[24].mxu0 %vm755_vm3, %v8592_v61 }
 0x224   : > { %6752 = vmatprep.mubr.msk.bf16.mxu1 %vm755_vm3, %v9747_v15  ;;  %7062 = vmatprep.mubr.msk.bf16.mxu0 %vm755_vm3, %v8997_v44 }
 0x22b   : > { %6753 = vmatmul.mubr.msk.bf16.gmra.mrb[24].mxu1 %vm755_vm3, %v9748_v55  ;;  %7063 = vmatmul.mubr.msk.bf16.gmra.mrb[28].mxu0 %vm755_vm3, %v8592_v61  ;;  %v9789_v61 = vld [vmem:[#allocation25_spill] sm:$0xff] }
 0x22c   : > { %6756 = vmatprep.mubr.msk.bf16.mxu1 %vm755_vm3, %v9009_v37  ;;  %7068 = vmatprep.mubr.msk.bf16.mxu0 %vm755_vm3, %v9749_v21 }
 0x233   : > { %6757 = vmatmul.mubr.msk.bf16.gmra.mrb[28].mxu1 %vm755_vm3, %v9748_v55  ;;  %7069 = vmatmul.mubr.msk.bf16.vlgmr.msra.gmra.mrb[0].mxu0 %vm755_vm3, %v8642_v14  ;;  %v9790_v14 = vld [vmem:[#allocation27_spill] sm:$0xff] }
 0x234   : > { %6762 = vmatprep.mubr.msk.bf16.mxu1 %vm755_vm3, %v9750_v49  ;;  %7072 = vmatprep.mubr.msk.bf16.mxu0 %vm755_vm3, %v9751_v18 }
 0x23b   : > { %6763 = vmatmul.mubr.msk.bf16.vlgmr.msra.gmra.mrb[0].mxu1 %vm755_vm3, %v8673_v1  ;;  %7073 = vmatmul.mubr.msk.bf16.gmra.mrb[4].mxu0 %vm755_vm3, %v9752_v59  ;;  %v9791_v1 = vld [vmem:[#allocation39_spill] sm:$0xff] }
 0x23c   : > { %6766 = vmatprep.mubr.msk.bf16.mxu1 %vm755_vm3, %v9753_v51  ;;  %7076 = vmatprep.mubr.msk.bf16.mxu0 %vm755_vm3, %v9754_v16 }
 0x243   : > { %6767 = vmatmul.mubr.msk.bf16.gmra.mrb[4].mxu1 %vm755_vm3, %v8701_v11  ;;  %7077 = vmatmul.mubr.msk.bf16.gmra.mrb[8].mxu0 %vm755_vm3, %v8704_v32  ;;  %v9792_v11 = vld [vmem:[#allocation49_spill] sm:$0xff]  ;;  %v9793_v32 = vld [vmem:[#allocation50_spill] sm:$0xff] }
 0x244   : > { %6770 = vmatprep.mubr.msk.bf16.mxu1 %vm755_vm3, %v9755_v52  ;;  %7080 = vmatprep.mubr.msk.bf16.mxu0 %vm755_vm3, %v9756_v39 }
 0x24b   : > { %6771 = vmatmul.mubr.msk.bf16.gmra.mrb[8].mxu1 %vm755_vm3, %v8729_v62  ;;  %7081 = vmatmul.mubr.msk.bf16.gmra.mrb[12].mxu0 %vm755_vm3, %v8732_v38 }
 0x24c   : > { %6774 = vmatprep.mubr.msk.bf16.mxu1 %vm755_vm3, %v9757_v41  ;;  %7084 = vmatprep.mubr.msk.bf16.mxu0 %vm755_vm3, %v9758_v33 }
 0x253   : > { %6775 = vmatmul.mubr.msk.bf16.gmra.mrb[12].mxu1 %vm755_vm3, %v8757_v3  ;;  %7085 = vmatmul.mubr.msk.bf16.gmra.mrb[16].mxu0 %vm755_vm3, %v8760_v6 }
 0x254   : > { %6778 = vmatprep.mubr.msk.bf16.mxu1 %vm755_vm3, %v9789_v61  ;;  %7088 = vmatprep.mubr.msk.bf16.mxu0 %vm755_vm3, %v9790_v14 }
 0x25b   : > { %6779 = vmatmul.mubr.msk.bf16.gmra.mrb[16].mxu1 %vm755_vm3, %v9791_v1  ;;  %7089 = vmatmul.mubr.msk.bf16.gmra.mrb[20].mxu0 %vm755_vm3, %v8788_v46 }
 0x25c   : > { %6782 = vmatprep.mubr.msk.bf16.mxu1 %vm755_vm3, %v8791_v63  ;;  %7092 = vmatprep.mubr.msk.bf16.mxu0 %vm755_vm3, %v9792_v11 }
 0x263   : > { %6783 = vmatmul.mubr.msk.bf16.gmra.mrb[20].mxu1 %vm755_vm3, %v9793_v32  ;;  %7093 = vmatmul.mubr.msk.bf16.gmra.mrb[24].mxu0 %vm755_vm3, %v8814_v25 }
 0x264   : > { %6786 = vmatprep.mubr.msk.bf16.mxu1 %vm755_vm3, %v8817_v13  ;;  %7096 = vmatprep.mubr.msk.bf16.mxu0 %vm755_vm3, %v9080_v9 }
 0x26b   : > { %6787 = vmatmul.mubr.msk.bf16.gmra.mrb[24].mxu1 %vm755_vm3, %v8830_v2  ;;  %7097 = vmatmul.mubr.msk.bf16.gmra.mrb[28].mxu0 %vm755_vm3, %v8814_v25 }
 0x26c   : > { %6790 = vmatprep.mubr.msk.bf16.mxu1 %vm755_vm3, %v9092_v8 }
 0x273   : > { %6791 = vmatmul.mubr.msk.bf16.gmra.mrb[28].mxu1 %vm755_vm3, %v8830_v2 }
 0x306   : > { %v7070_v63 = vpop.f32.mrb[0].mxu0 }
 0x307   : > { %v5156_v62 = vpop.f32.mrb[1].mxu0 }
 0x308   : > { %v7071_v38 = vpop.f32.mrb[2].mxu0 }
 0x309   : > { %v5159_v3 = vpop.f32.mrb[3].mxu0 }
 0x30e   : > { %v6764_v6 = vpop.f32.mrb[0].mxu1  ;;  %v7074_v46 = vpop.f32.mrb[4].mxu0 }
 0x30f   : > { %v7100_v13 = vadd.f32 %v7070_v63, %v6764_v6  ;;  %v2519_v9 = vpop.f32.mrb[1].mxu1  ;;  %v5172_v15 = vpop.f32.mrb[5].mxu0 }
 0x310   : > { %v7101_v25 = vadd.f32 %v5156_v62, %v2519_v9  ;;  %v6765_v2 = vpop.f32.mrb[2].mxu1  ;;  %v7075_v48 = vpop.f32.mrb[6].mxu0 }
 0x311   : > { %v6152_v44 = vpack.c.bf16 %v7100_v13, %v7100_v13  ;;  %v7102_v55 = vadd.f32 %v7071_v38, %v6765_v2  ;;  %v2522_v37 = vpop.f32.mrb[3].mxu1  ;;  %v5175_v21 = vpop.f32.mrb[7].mxu0  ;;  %v5388_v51 = vmul.f32 %v7100_v13, %v7100_v13  ;;  %v5318_v50 = vsel %vm755_vm3, %v7100_v13, 0.0 }
 0x312   : > { %v5386_v49 = vmul.f32 %v7101_v25, %v7101_v25  ;;  %v6150_v18 = vpack.c.bf16 %v7101_v25, %v7101_v25  ;;  %v7103_v59 = vadd.f32 %v5159_v3, %v2522_v37  ;;  %v5315_v52 = vsel %vm755_vm3, %v7101_v25, 0.0 }
 0x313   : > { %5619 = vst.msk [vmem:[%s9303_s26 + $0x8] sm:$0xf] %vm5616_vm7, %v6152_v44  ;;  %v6153_v16 = vpack.c.bf16 %v7102_v55, %v7102_v55  ;;  %v5389_v8 = vmul.f32 %v7102_v55, %v7102_v55  ;;  %v5421_v4 = vsel %vm755_vm3, %v5388_v51, 0.0  ;;  %v5320_v17 = vsel %vm755_vm3, %v7102_v55, 0.0 }
 0x314   : > { %5617 = vst.msk [vmem:[%s9303_s26] sm:$0xf] %vm5616_vm7, %v6150_v18  ;;  %v5316_v39 = vsel %vm755_vm3, %v7103_v59, 0.0  ;;  %v5387_v41 = vmul.f32 %v7103_v59, %v7103_v59  ;;  %v6151_v33 = vpack.c.bf16 %v7103_v59, %v7103_v59  ;;  %v5418_v28 = vsel %vm755_vm3, %v5386_v49, 0.0 }
 0x315   : > { %5620 = vst.msk [vmem:[%s9303_s26 + $0xc] sm:$0xf] %vm5616_vm7, %v6153_v16  ;;  %v5317_v54 = vadd.f32 %v5316_v39, %v5315_v52  ;;  %v5423_v19 = vsel %vm755_vm3, %v5389_v8, 0.0 }
 0x316   : > { %v5419_v56 = vsel %vm755_vm3, %v5387_v41, 0.0  ;;  %5618 = vst.msk [vmem:[%s9303_s26 + $0x4] sm:$0xf] %vm5616_vm7, %v6151_v33  ;;  %v6768_v29 = vpop.f32.mrb[4].mxu1  ;;  %v7078_v23 = vpop.f32.mrb[8].mxu0 }
 0x317   : > { %v5319_v31 = vadd.f32 %v5318_v50, %v5317_v54  ;;  %v5420_v42 = vadd.f32 %v5419_v56, %v5418_v28  ;;  %v7104_v58 = vadd.f32 %v7074_v46, %v6768_v29  ;;  %v2535_v40 = vpop.f32.mrb[5].mxu1  ;;  %v5188_v22 = vpop.f32.mrb[9].mxu0 }
 0x318   : > { %v7105_v5 = vadd.f32 %v5172_v15, %v2535_v40  ;;  %v6769_v26 = vpop.f32.mrb[6].mxu1  ;;  %v7079_v36 = vpop.f32.mrb[10].mxu0 }
 0x319   : > { %v5422_v60 = vadd.f32 %v5421_v4, %v5420_v42  ;;  %v6156_v20 = vpack.c.bf16 %v7104_v58, %v7104_v58  ;;  %v2538_v7 = vpop.f32.mrb[7].mxu1  ;;  %v5191_v35 = vpop.f32.mrb[11].mxu0  ;;  %v5321_v53 = vadd.f32 %v5320_v17, %v5319_v31  ;;  %v7106_v12 = vadd.f32 %v7075_v48, %v6769_v26 }
 0x31a   : > { %v5322_v43 = vsel %vm755_vm3, %v7105_v5, 0.0  ;;  %v5390_v34 = vmul.f32 %v7105_v5, %v7105_v5  ;;  %v6154_v47 = vpack.c.bf16 %v7105_v5, %v7105_v5  ;;  %v7107_v10 = vadd.f32 %v5175_v21, %v2538_v7 }
 0x31b   : > { %5623 = vst.msk [vmem:[%s9303_s26 + $0x18] sm:$0xf] %vm5616_vm7, %v6156_v20  ;;  %v5424_v27 = vadd.f32 %v5423_v19, %v5422_v60  ;;  %v5323_v24 = vadd.f32 %v5322_v43, %v5321_v53  ;;  %v5392_v30 = vmul.f32 %v7104_v58, %v7104_v58  ;;  %v6157_v57 = vpack.c.bf16 %v7106_v12, %v7106_v12 }
 0x31c   : > { %v5425_v45 = vsel %vm755_vm3, %v5390_v34, 0.0  ;;  %5621 = vst.msk [vmem:[%s9303_s26 + $0x10] sm:$0xf] %vm5616_vm7, %v6154_v47  ;;  %v5324_v61 = vsel %vm755_vm3, %v7107_v10, 0.0  ;;  %v5391_v14 = vmul.f32 %v7107_v10, %v7107_v10  ;;  %v6155_v1 = vpack.c.bf16 %v7107_v10, %v7107_v10 }
 0x31d   : > { %v5426_v0 = vadd.f32 %v5425_v45, %v5424_v27  ;;  %5624 = vst.msk [vmem:[%s9303_s26 + $0x1c] sm:$0xf] %vm5616_vm7, %v6157_v57  ;;  %v5325_v63 = vadd.f32 %v5324_v61, %v5323_v24  ;;  %v5326_v6 = vsel %vm755_vm3, %v7104_v58, 0.0  ;;  %v5393_v46 = vmul.f32 %v7106_v12, %v7106_v12 }
 0x31e   : > { %v6772_v11 = vpop.f32.mrb[8].mxu1  ;;  %v7082_v32 = vpop.f32.mrb[12].mxu0  ;;  %v5427_v13 = vsel %vm755_vm3, %v5391_v14, 0.0  ;;  %5622 = vst.msk [vmem:[%s9303_s26 + $0x14] sm:$0xf] %vm5616_vm7, %v6155_v1  ;;  %v5429_v2 = vsel %vm755_vm3, %v5392_v30, 0.0 }
 0x31f   : > { %v7108_v62 = vadd.f32 %v7078_v23, %v6772_v11  ;;  %v2551_v38 = vpop.f32.mrb[9].mxu1  ;;  %v5204_v3 = vpop.f32.mrb[13].mxu0  ;;  %v5328_v48 = vsel %vm755_vm3, %v7106_v12, 0.0  ;;  %v5327_v44 = vadd.f32 %v5326_v6, %v5325_v63  ;;  %v5428_v55 = vadd.f32 %v5427_v13, %v5426_v0 }
 0x320   : > { %v7109_v9 = vadd.f32 %v5188_v22, %v2551_v38  ;;  %v6773_v15 = vpop.f32.mrb[10].mxu1  ;;  %v7083_v25 = vpop.f32.mrb[14].mxu0  ;;  %v5431_v41 = vsel %vm755_vm3, %v5393_v46, 0.0 }
 0x321   : > { %v2554_v37 = vpop.f32.mrb[11].mxu1  ;;  %v5207_v21 = vpop.f32.mrb[15].mxu0  ;;  %v6160_v49 = vpack.c.bf16 %v7108_v62, %v7108_v62  ;;  %v5430_v16 = vadd.f32 %v5429_v2, %v5428_v55  ;;  %v5329_v52 = vadd.f32 %v5328_v48, %v5327_v44  ;;  %v7110_v39 = vadd.f32 %v7079_v36, %v6773_v15 }
 0x322   : > { %v5330_v18 = vsel %vm755_vm3, %v7109_v9, 0.0  ;;  %v5394_v59 = vmul.f32 %v7109_v9, %v7109_v9  ;;  %v6158_v51 = vpack.c.bf16 %v7109_v9, %v7109_v9  ;;  %v7111_v8 = vadd.f32 %v5191_v35, %v2554_v37 }
 0x323   : > { %5627 = vst.msk [vmem:[%s9303_s26 + $0x28] sm:$0xf] %vm5616_vm7, %v6160_v49  ;;  %v5396_v54 = vmul.f32 %v7108_v62, %v7108_v62  ;;  %v5331_v50 = vadd.f32 %v5330_v18, %v5329_v52  ;;  %v5432_v28 = vadd.f32 %v5431_v41, %v5430_v16  ;;  %v6161_v56 = vpack.c.bf16 %v7110_v39, %v7110_v39 }
 0x324   : > { %v5433_v33 = vsel %vm755_vm3, %v5394_v59, 0.0  ;;  %5625 = vst.msk [vmem:[%s9303_s26 + $0x20] sm:$0xf] %vm5616_vm7, %v6158_v51  ;;  %v5332_v29 = vsel %vm755_vm3, %v7111_v8, 0.0  ;;  %v5395_v23 = vmul.f32 %v7111_v8, %v7111_v8  ;;  %v6159_v31 = vpack.c.bf16 %v7111_v8, %v7111_v8 }
 0x325   : > { %v5434_v40 = vadd.f32 %v5433_v33, %v5432_v28  ;;  %v5333_v22 = vadd.f32 %v5332_v29, %v5331_v50  ;;  %v5334_v36 = vsel %vm755_vm3, %v7108_v62, 0.0  ;;  %v5397_v17 = vmul.f32 %v7110_v39, %v7110_v39  ;;  %5628 = vst.msk [vmem:[%s9303_s26 + $0x2c] sm:$0xf] %vm5616_vm7, %v6161_v56 }
 0x326   : > { %v6776_v42 = vpop.f32.mrb[12].mxu1  ;;  %v7086_v58 = vpop.f32.mrb[16].mxu0  ;;  %v5435_v19 = vsel %vm755_vm3, %v5395_v23, 0.0  ;;  %5626 = vst.msk [vmem:[%s9303_s26 + $0x24] sm:$0xf] %vm5616_vm7, %v6159_v31  ;;  %v5437_v35 = vsel %vm755_vm3, %v5396_v54, 0.0 }
 0x327   : > { %v7112_v4 = vadd.f32 %v7082_v32, %v6776_v42  ;;  %v2567_v5 = vpop.f32.mrb[13].mxu1  ;;  %v5220_v26 = vpop.f32.mrb[17].mxu0  ;;  %v5336_v53 = vsel %vm755_vm3, %v7110_v39, 0.0  ;;  %v5335_v43 = vadd.f32 %v5334_v36, %v5333_v22  ;;  %v5436_v34 = vadd.f32 %v5435_v19, %v5434_v40 }
 0x328   : > { %v7113_v60 = vadd.f32 %v5204_v3, %v2567_v5  ;;  %v6777_v20 = vpop.f32.mrb[14].mxu1  ;;  %v7087_v7 = vpop.f32.mrb[18].mxu0  ;;  %v5439_v61 = vsel %vm755_vm3, %v5397_v17, 0.0 }
 0x329   : > { %v2570_v47 = vpop.f32.mrb[15].mxu1  ;;  %v5223_v27 = vpop.f32.mrb[19].mxu0  ;;  %v6164_v12 = vpack.c.bf16 %v7112_v4, %v7112_v4  ;;  %v5438_v30 = vadd.f32 %v5437_v35, %v5436_v34  ;;  %v5337_v0 = vadd.f32 %v5336_v53, %v5335_v43  ;;  %v7114_v57 = vadd.f32 %v7083_v25, %v6777_v20 }
 0x32a   : > { %v5338_v10 = vsel %vm755_vm3, %v7113_v60, 0.0  ;;  %v5398_v24 = vmul.f32 %v7113_v60, %v7113_v60  ;;  %v6162_v45 = vpack.c.bf16 %v7113_v60, %v7113_v60  ;;  %v7115_v1 = vadd.f32 %v5207_v21, %v2570_v47 }
 0x32b   : > { %5631 = vst.msk [vmem:[%s9303_s26 + $0x38] sm:$0xf] %vm5616_vm7, %v6164_v12  ;;  %v5400_v11 = vmul.f32 %v7112_v4, %v7112_v4  ;;  %v5339_v32 = vadd.f32 %v5338_v10, %v5337_v0  ;;  %v5440_v63 = vadd.f32 %v5439_v61, %v5438_v30  ;;  %v6165_v62 = vpack.c.bf16 %v7114_v57, %v7114_v57 }
 0x32c   : > { %v5441_v14 = vsel %vm755_vm3, %v5398_v24, 0.0  ;;  %5629 = vst.msk [vmem:[%s9303_s26 + $0x30] sm:$0xf] %vm5616_vm7, %v6162_v45  ;;  %v5340_v38 = vsel %vm755_vm3, %v7115_v1, 0.0  ;;  %v5399_v3 = vmul.f32 %v7115_v1, %v7115_v1  ;;  %v6163_v6 = vpack.c.bf16 %v7115_v1, %v7115_v1 }
 0x32d   : > { %v5442_v9 = vadd.f32 %v5441_v14, %v5440_v63  ;;  %v5341_v15 = vadd.f32 %v5340_v38, %v5339_v32  ;;  %v5342_v44 = vsel %vm755_vm3, %v7112_v4, 0.0  ;;  %v5401_v55 = vmul.f32 %v7114_v57, %v7114_v57  ;;  %5632 = vst.msk [vmem:[%s9303_s26 + $0x3c] sm:$0xf] %vm5616_vm7, %v6165_v62 }
 0x32e   : > { %v6780_v46 = vpop.f32.mrb[16].mxu1  ;;  %v7090_v13 = vpop.f32.mrb[20].mxu0  ;;  %v5443_v37 = vsel %vm755_vm3, %v5399_v3, 0.0  ;;  %5630 = vst.msk [vmem:[%s9303_s26 + $0x34] sm:$0xf] %vm5616_vm7, %v6163_v6  ;;  %v5445_v59 = vsel %vm755_vm3, %v5400_v11, 0.0 }
 0x32f   : > { %v7116_v25 = vadd.f32 %v7086_v58, %v6780_v46  ;;  %v2583_v2 = vpop.f32.mrb[17].mxu1  ;;  %v5236_v48 = vpop.f32.mrb[21].mxu0  ;;  %v5344_v51 = vsel %vm755_vm3, %v7114_v57, 0.0  ;;  %v5343_v16 = vadd.f32 %v5342_v44, %v5341_v15  ;;  %v5444_v52 = vadd.f32 %v5443_v37, %v5442_v9 }
 0x330   : > { %v7117_v21 = vadd.f32 %v5220_v26, %v2583_v2  ;;  %v6781_v49 = vpop.f32.mrb[18].mxu1  ;;  %v7091_v18 = vpop.f32.mrb[22].mxu0  ;;  %v5447_v23 = vsel %vm755_vm3, %v5401_v55, 0.0 }
 0x331   : > { %v2586_v39 = vpop.f32.mrb[19].mxu1  ;;  %v5239_v41 = vpop.f32.mrb[23].mxu0  ;;  %v6168_v33 = vpack.c.bf16 %v7116_v25, %v7116_v25  ;;  %v5446_v28 = vadd.f32 %v5445_v59, %v5444_v52  ;;  %v5345_v56 = vadd.f32 %v5344_v51, %v5343_v16  ;;  %v7118_v29 = vadd.f32 %v7087_v7, %v6781_v49 }
 0x332   : > { %v5346_v8 = vsel %vm755_vm3, %v7117_v21, 0.0  ;;  %v5402_v54 = vmul.f32 %v7117_v21, %v7117_v21  ;;  %v6166_v50 = vpack.c.bf16 %v7117_v21, %v7117_v21  ;;  %v7119_v42 = vadd.f32 %v5223_v27, %v2586_v39 }
 0x333   : > { %5635 = vst.msk [vmem:[%s9303_s26 + $0x48] sm:$0xf] %vm5616_vm7, %v6168_v33  ;;  %v5404_v58 = vmul.f32 %v7116_v25, %v7116_v25  ;;  %v5347_v40 = vadd.f32 %v5346_v8, %v5345_v56  ;;  %v5448_v22 = vadd.f32 %v5447_v23, %v5446_v28  ;;  %v6169_v4 = vpack.c.bf16 %v7118_v29, %v7118_v29 }
 0x334   : > { %v5449_v31 = vsel %vm755_vm3, %v5402_v54, 0.0  ;;  %5633 = vst.msk [vmem:[%s9303_s26 + $0x40] sm:$0xf] %vm5616_vm7, %v6166_v50  ;;  %v5348_v5 = vsel %vm755_vm3, %v7119_v42, 0.0  ;;  %v5403_v26 = vmul.f32 %v7119_v42, %v7119_v42  ;;  %v6167_v36 = vpack.c.bf16 %v7119_v42, %v7119_v42 }
 0x335   : > { %v5450_v60 = vadd.f32 %v5449_v31, %v5448_v22  ;;  %v5349_v20 = vadd.f32 %v5348_v5, %v5347_v40  ;;  %v5350_v43 = vsel %vm755_vm3, %v7116_v25, 0.0  ;;  %v5405_v34 = vmul.f32 %v7118_v29, %v7118_v29  ;;  %5636 = vst.msk [vmem:[%s9303_s26 + $0x4c] sm:$0xf] %vm5616_vm7, %v6169_v4 }
 0x336   : > { %v6784_v17 = vpop.f32.mrb[20].mxu1  ;;  %v7094_v19 = vpop.f32.mrb[24].mxu0  ;;  %v5451_v47 = vsel %vm755_vm3, %v5403_v26, 0.0  ;;  %5634 = vst.msk [vmem:[%s9303_s26 + $0x44] sm:$0xf] %vm5616_vm7, %v6167_v36  ;;  %v5453_v24 = vsel %vm755_vm3, %v5404_v58, 0.0 }
 0x337   : > { %v7120_v7 = vadd.f32 %v7090_v13, %v6784_v17  ;;  %v2599_v35 = vpop.f32.mrb[21].mxu1  ;;  %v5252_v53 = vpop.f32.mrb[25].mxu0  ;;  %v5352_v45 = vsel %vm755_vm3, %v7118_v29, 0.0  ;;  %v5351_v30 = vadd.f32 %v5350_v43, %v5349_v20  ;;  %v5452_v0 = vadd.f32 %v5451_v47, %v5450_v60 }
 0x338   : > { %v7121_v27 = vadd.f32 %v5236_v48, %v2599_v35  ;;  %v6785_v12 = vpop.f32.mrb[22].mxu1  ;;  %v7095_v10 = vpop.f32.mrb[26].mxu0  ;;  %v5455_v3 = vsel %vm755_vm3, %v5405_v34, 0.0 }
 0x339   : > { %v2602_v57 = vpop.f32.mrb[23].mxu1  ;;  %v5255_v61 = vpop.f32.mrb[27].mxu0  ;;  %v6172_v14 = vpack.c.bf16 %v7120_v7, %v7120_v7  ;;  %v5454_v63 = vadd.f32 %v5453_v24, %v5452_v0  ;;  %v5353_v62 = vadd.f32 %v5352_v45, %v5351_v30  ;;  %v7122_v38 = vadd.f32 %v7091_v18, %v6785_v12 }
 0x33a   : > { %v5354_v1 = vsel %vm755_vm3, %v7121_v27, 0.0  ;;  %v5406_v11 = vmul.f32 %v7121_v27, %v7121_v27  ;;  %v6170_v32 = vpack.c.bf16 %v7121_v27, %v7121_v27  ;;  %v7123_v46 = vadd.f32 %v5239_v41, %v2602_v57 }
 0x33b   : > { %5639 = vst.msk [vmem:[%s9303_s26 + $0x58] sm:$0xf] %vm5616_vm7, %v6172_v14  ;;  %v5408_v13 = vmul.f32 %v7120_v7, %v7120_v7  ;;  %v5355_v9 = vadd.f32 %v5354_v1, %v5353_v62  ;;  %v5456_v15 = vadd.f32 %v5455_v3, %v5454_v63  ;;  %v6173_v25 = vpack.c.bf16 %v7122_v38, %v7122_v38 }
 0x33c   : > { %v5457_v6 = vsel %vm755_vm3, %v5406_v11, 0.0  ;;  %5637 = vst.msk [vmem:[%s9303_s26 + $0x50] sm:$0xf] %vm5616_vm7, %v6170_v32  ;;  %v5356_v2 = vsel %vm755_vm3, %v7123_v46, 0.0  ;;  %v5407_v48 = vmul.f32 %v7123_v46, %v7123_v46  ;;  %v6171_v44 = vpack.c.bf16 %v7123_v46, %v7123_v46 }
 0x33d   : > { %v5458_v21 = vadd.f32 %v5457_v6, %v5456_v15  ;;  %v5357_v49 = vadd.f32 %v5356_v2, %v5355_v9  ;;  %v5358_v16 = vsel %vm755_vm3, %v7120_v7, 0.0  ;;  %v5409_v52 = vmul.f32 %v7122_v38, %v7122_v38  ;;  %5640 = vst.msk [vmem:[%s9303_s26 + $0x5c] sm:$0xf] %vm5616_vm7, %v6173_v25 }
 0x33e   : > { %v6788_v55 = vpop.f32.mrb[24].mxu1  ;;  %v7098_v37 = vpop.f32.mrb[28].mxu0  ;;  %v5459_v39 = vsel %vm755_vm3, %v5407_v48, 0.0  ;;  %5638 = vst.msk [vmem:[%s9303_s26 + $0x54] sm:$0xf] %vm5616_vm7, %v6171_v44  ;;  %v5461_v54 = vsel %vm755_vm3, %v5408_v13, 0.0 }
 0x33f   : > { %v7124_v18 = vadd.f32 %v7094_v19, %v6788_v55  ;;  %v2615_v59 = vpop.f32.mrb[25].mxu1  ;;  %v5268_v51 = vpop.f32.mrb[29].mxu0  ;;  %v5360_v50 = vsel %vm755_vm3, %v7122_v38, 0.0  ;;  %v5359_v28 = vadd.f32 %v5358_v16, %v5357_v49  ;;  %v5460_v56 = vadd.f32 %v5459_v39, %v5458_v21 }
 0x340   : > { %v7125_v41 = vadd.f32 %v5252_v53, %v2615_v59  ;;  %v6789_v33 = vpop.f32.mrb[26].mxu1  ;;  %v7099_v8 = vpop.f32.mrb[30].mxu0  ;;  %v5463_v26 = vsel %vm755_vm3, %v5409_v52, 0.0 }
 0x341   : > { %v2618_v29 = vpop.f32.mrb[27].mxu1  ;;  %v5271_v23 = vpop.f32.mrb[31].mxu0  ;;  %v6176_v31 = vpack.c.bf16 %v7124_v18, %v7124_v18  ;;  %v5462_v22 = vadd.f32 %v5461_v54, %v5460_v56  ;;  %v5361_v4 = vadd.f32 %v5360_v50, %v5359_v28  ;;  %v7126_v5 = vadd.f32 %v7095_v10, %v6789_v33 }
 0x342   : > { %v5362_v42 = vsel %vm755_vm3, %v7125_v41, 0.0  ;;  %v5410_v58 = vmul.f32 %v7125_v41, %v7125_v41  ;;  %v6174_v40 = vpack.c.bf16 %v7125_v41, %v7125_v41  ;;  %v7127_v17 = vadd.f32 %v5255_v61, %v2618_v29 }
 0x343   : > { %5643 = vst.msk [vmem:[%s9303_s26 + $0x68] sm:$0xf] %vm5616_vm7, %v6176_v31  ;;  %v5412_v19 = vmul.f32 %v7124_v18, %v7124_v18  ;;  %v5363_v60 = vadd.f32 %v5362_v42, %v5361_v4  ;;  %v5464_v20 = vadd.f32 %v5463_v26, %v5462_v22  ;;  %v6177_v7 = vpack.c.bf16 %v7126_v5, %v7126_v5 }
 0x344   : > { %v5465_v36 = vsel %vm755_vm3, %v5410_v58, 0.0  ;;  %5641 = vst.msk [vmem:[%s9303_s26 + $0x60] sm:$0xf] %vm5616_vm7, %v6174_v40  ;;  %v5364_v35 = vsel %vm755_vm3, %v7127_v17, 0.0  ;;  %v5411_v53 = vmul.f32 %v7127_v17, %v7127_v17  ;;  %v6175_v43 = vpack.c.bf16 %v7127_v17, %v7127_v17 }
 0x345   : > { %v5466_v47 = vadd.f32 %v5465_v36, %v5464_v20  ;;  %v5365_v27 = vadd.f32 %v5364_v35, %v5363_v60  ;;  %v5366_v24 = vsel %vm755_vm3, %v7124_v18, 0.0  ;;  %v5413_v45 = vmul.f32 %v7126_v5, %v7126_v5  ;;  %5644 = vst.msk [vmem:[%s9303_s26 + $0x6c] sm:$0xf] %vm5616_vm7, %v6177_v7 }
 0x346   : > { %v6792_v34 = vpop.f32.mrb[28].mxu1  ;;  %v5467_v30 = vsel %vm755_vm3, %v5411_v53, 0.0  ;;  %5642 = vst.msk [vmem:[%s9303_s26 + $0x64] sm:$0xf] %vm5616_vm7, %v6175_v43  ;;  %v5469_v61 = vsel %vm755_vm3, %v5412_v19, 0.0  ;;  %v5368_v14 = vsel %vm755_vm3, %v7126_v5, 0.0 }
 0x347   : > { %v7128_v12 = vadd.f32 %v7098_v37, %v6792_v34  ;;  %v2631_v10 = vpop.f32.mrb[29].mxu1  ;;  %v5367_v1 = vadd.f32 %v5366_v24, %v5365_v27  ;;  %v5468_v11 = vadd.f32 %v5467_v30, %v5466_v47  ;;  %v5471_v9 = vsel %vm755_vm3, %v5413_v45, 0.0 }
 0x348   : > { %v7129_v0 = vadd.f32 %v5268_v51, %v2631_v10  ;;  %v6793_v57 = vpop.f32.mrb[30].mxu1 }
 0x349   : > { %v2634_v32 = vpop.f32.mrb[31].mxu1  ;;  %v6180_v63 = vpack.c.bf16 %v7128_v12, %v7128_v12  ;;  %v5470_v6 = vadd.f32 %v5469_v61, %v5468_v11  ;;  %v5369_v46 = vadd.f32 %v5368_v14, %v5367_v1  ;;  %v7130_v13 = vadd.f32 %v7099_v8, %v6793_v57 }
 0x34a   : > { %v5370_v62 = vsel %vm755_vm3, %v7129_v0, 0.0  ;;  %v5414_v38 = vmul.f32 %v7129_v0, %v7129_v0  ;;  %v6178_v3 = vpack.c.bf16 %v7129_v0, %v7129_v0  ;;  %v7131_v25 = vadd.f32 %v5271_v23, %v2634_v32 }
 0x34b   : > { %5647 = vst.msk [vmem:[%s9303_s26 + $0x78] sm:$0xf] %vm5616_vm7, %v6180_v63  ;;  %v5416_v2 = vmul.f32 %v7128_v12, %v7128_v12  ;;  %v5371_v48 = vadd.f32 %v5370_v62, %v5369_v46  ;;  %v5472_v44 = vadd.f32 %v5471_v9, %v5470_v6  ;;  %v6181_v55 = vpack.c.bf16 %v7130_v13, %v7130_v13 }
 0x34c   : > { %v5473_v15 = vsel %vm755_vm3, %v5414_v38, 0.0  ;;  %5645 = vst.msk [vmem:[%s9303_s26 + $0x70] sm:$0xf] %vm5616_vm7, %v6178_v3  ;;  %v5372_v37 = vsel %vm755_vm3, %v7131_v25, 0.0  ;;  %v5415_v21 = vmul.f32 %v7131_v25, %v7131_v25  ;;  %v6179_v49 = vpack.c.bf16 %v7131_v25, %v7131_v25 }
 0x34d   : > { %v5474_v18 = vadd.f32 %v5473_v15, %v5472_v44  ;;  %v5373_v59 = vadd.f32 %v5372_v37, %v5371_v48  ;;  %v5374_v51 = vsel %vm755_vm3, %v7128_v12, 0.0  ;;  %v5417_v16 = vmul.f32 %v7130_v13, %v7130_v13  ;;  %5648 = vst.msk [vmem:[%s9303_s26 + $0x7c] sm:$0xf] %vm5616_vm7, %v6181_v55 }
 0x34e   : > { %v5475_v52 = vsel %vm755_vm3, %v5415_v21, 0.0  ;;  %5646 = vst.msk [vmem:[%s9303_s26 + $0x74] sm:$0xf] %vm5616_vm7, %v6179_v49  ;;  %v5477_v33 = vsel %vm755_vm3, %v5416_v2, 0.0  ;;  %v5376_v8 = vsel %vm755_vm3, %v7130_v13, 0.0 }
 0x34f   : > { %v5375_v39 = vadd.f32 %v5374_v51, %v5373_v59  ;;  %v5476_v41 = vadd.f32 %v5475_v52, %v5474_v18  ;;  %v5479_v28 = vsel %vm755_vm3, %v5417_v16, 0.0 }
 0x351   : > { %v5377_v54 = vadd.f32 %v5376_v8, %v5375_v39  ;;  %v5478_v50 = vadd.f32 %v5477_v33, %v5476_v41 }
 0x353   : > { %v5378_v56 = vrot.slane %v5377_v54, 4  ;;  %v5480_v29 = vadd.f32 %v5479_v28, %v5478_v50 }
 0x355   : > { %v5379_v23 = vadd.f32 %v5378_v56, %v5377_v54  ;;  %v5481_v31 = vrot.slane %v5480_v29, 4 }
 0x357   : > { %v5380_v42 = vrot.slane %v5379_v23, 2  ;;  %v5482_v58 = vadd.f32 %v5481_v31, %v5480_v29 }
 0x359   : > { %v5381_v40 = vadd.f32 %v5380_v42, %v5379_v23  ;;  %v5483_v22 = vrot.slane %v5482_v58, 2 }
 0x35b   : > { %v5382_v4 = vrot.slane %v5381_v40, 1  ;;  %v5484_v5 = vadd.f32 %v5483_v22, %v5482_v58 }
 0x35d   : > { %v5383_v26 = vadd.f32 %v5382_v4, %v5381_v40  ;;  %v5485_v36 = vrot.slane %v5484_v5, 1 }
 0x35f   : > { %5385 = vst.msk [vmem:[%s285_s28] sm:$0x1] %vm5384_vm8, %v5383_v26  ;;  %v5486_v17 = vadd.f32 %v5485_v36, %v5484_v5 }
 0x361   : > { %5487 = vst.msk [vmem:[%s288_s8] sm:$0x1] %vm5384_vm8, %v5486_v17 }
 0x362 PF: > { %s17_s21 = sadd.s32 1, %s7724_s21  }
 0x363   : > { %p14_p4 = scmp.ge.s32.totalorder %s17_s21, 4  }
 0x365   :  { %16 = sbr.rel (!%p14_p4) target bundleno = 1 (0x1), region = 93 }

</bundles_post_ra>
